<compile_context>
chip_gen: v6e
topology: v6e:2x2x1
jax: 0.10.0
libtpu: 0.0.40
codegen_flags: <defaults>
</compile_context>

<pallas_src>
import jax
import jax.numpy as jnp
from jax import lax
from jax.experimental import pallas as pl
from jax.experimental.pallas import tpu as pltpu

# ---- tiny ViT config (scaled-down stand-in for vit_tiny_patch16_224) ----
IMG_IN = 16            # incoming image spatial size (stands in for CIFAR 32)
VIT_IMG = 32           # transform resizes to this (stands in for 224)
PATCH = 8              # patch size (stands in for 16)
CHANNELS = 3
EMBED = 64             # embed dim (stands in for 192)
HEADS = 2              # (stands in for 3)
DEPTH = 2              # (stands in for 12)
MLP_HIDDEN = 4 * EMBED
NUM_CLASSES = 10
CLASSES_PAD = 128      # lane-dense head output
GRID_SIDE = VIT_IMG // PATCH
NUM_PATCHES = GRID_SIDE * GRID_SIDE          # 16
SEQ = NUM_PATCHES + 1                        # 17 real tokens
SEQ_PAD = 24                                 # 8-aligned per-batch token block
PATCH_ROW0 = SEQ_PAD - NUM_PATCHES           # 8: patches in rows 8..23, cls row 0
HEAD_DIM = EMBED // HEADS
LN_EPS = 1e-6
PATCH_DIM = CHANNELS * PATCH * PATCH
NEG_INF = -1e30


# ----------------------------- kernel helpers -----------------------------
def _layernorm(x, gamma, beta):
    mu = jnp.mean(x, axis=-1, keepdims=True)
    var = jnp.mean((x - mu) ** 2, axis=-1, keepdims=True)
    return (x - mu) * lax.rsqrt(var + LN_EPS) * gamma + beta


def _gelu_exact(x):
    # nn.GELU default (erf form), as used by timm ViT.
    return 0.5 * x * (1.0 + lax.erf(x * (1.0 / jnp.sqrt(jnp.float32(2.0)))))


# --------------------------- fused ViT kernel ------------------------------
def _make_vit_kernel(batch):
    B = batch
    M = B * SEQ_PAD
    scale = float(HEAD_DIM) ** -0.5

    def kernel(patch_ref, pw_ref, pb_ref, cls_ref, pos_ref,
               ln1g_ref, ln1b_ref, wqkv_ref, bqkv_ref, wo_ref, bo_ref,
               ln2g_ref, ln2b_ref, w1_ref, b1_ref, w2_ref, b2_ref,
               lnfg_ref, lnfb_ref, hw_ref, hb_ref, o_ref, x_scr):
        # ---- Normalize(mean=.5,std=.5) + patch embed (conv as one bf16 matmul) ----
        p = ((patch_ref[...] - 0.5) * 2.0).astype(jnp.bfloat16)       # (B*NP, C*P*P)
        tok = jnp.dot(p, pw_ref[...],
                      preferred_element_type=jnp.float32) + pb_ref[...]  # (B*NP, D) f32

        # ---- assemble [cls | pad | patches] per-batch 24-row blocks in scratch ----
        x_scr[...] = jnp.zeros_like(x_scr)
        cls = cls_ref[...]                                             # (1, D)
        for b in range(B):                                             # static, B small
            r0 = b * SEQ_PAD
            x_scr[r0:r0 + 1, :] = cls
            x_scr[r0 + PATCH_ROW0:r0 + SEQ_PAD, :] = \
                tok[b * NUM_PATCHES:(b + 1) * NUM_PATCHES, :]          # aligned store
        x = x_scr[...] + pos_ref[...]                                  # (M, D) f32

        # key mask: rows 1..PATCH_ROW0-1 of each 24-row block are padding
        kidx = lax.broadcasted_iota(jnp.int32, (1, SEQ_PAD), 1)
        key_mask = jnp.where((kidx == 0) | (kidx >= PATCH_ROW0),
                             0.0, NEG_INF).astype(jnp.float32)         # (1, SEQ_PAD)

        for d in range(DEPTH):                                         # static unroll
            # ---------------- multi-head self-attention ----------------
            xn = _layernorm(x, ln1g_ref[d], ln1b_ref[d])
            qkv = jnp.dot(xn.astype(jnp.bfloat16), wqkv_ref[d],
                          preferred_element_type=jnp.float32) + bqkv_ref[d]
            qkv = qkv.astype(jnp.bfloat16)                             # (M, 3D)

            # q.k^T per (head, batch) — dot_general, no materialized transpose
            s_tiles = []
            for h in range(HEADS):
                c0 = h * HEAD_DIM
                for b in range(B):
                    r0 = b * SEQ_PAD
                    qh = qkv[r0:r0 + SEQ_PAD, c0:c0 + HEAD_DIM]
                    kh = qkv[r0:r0 + SEQ_PAD, EMBED + c0:EMBED + c0 + HEAD_DIM]
                    s_tiles.append(lax.dot_general(
                        qh, kh, (((1,), (1,)), ((), ())),
                        preferred_element_type=jnp.float32))
            # batched softmax over all B*H tiles at once
            scores = jnp.concatenate(s_tiles, axis=0) * scale + key_mask
            scores = scores - jnp.max(scores, axis=-1, keepdims=True)
            e = jnp.exp(scores)
            probs = (e * pl.reciprocal(jnp.sum(e, axis=-1, keepdims=True),
                                       approx=True)).astype(jnp.bfloat16)

            # P @ V per (head, batch), then lane-concat heads -> one out-proj dot
            head_ctx = []
            for h in range(HEADS):
                c0 = 2 * EMBED + h * HEAD_DIM
                rows = []
                for b in range(B):
                    t = h * B + b
                    ph = probs[t * SEQ_PAD:(t + 1) * SEQ_PAD, :]
                    vh = qkv[b * SEQ_PAD:(b + 1) * SEQ_PAD, c0:c0 + HEAD_DIM]
                    rows.append(jnp.dot(ph, vh,
                                        preferred_element_type=jnp.float32))
                head_ctx.append(jnp.concatenate(rows, axis=0))         # (M, Dh)
            ctx = jnp.concatenate(head_ctx, axis=1).astype(jnp.bfloat16)  # (M, D)
            x = x + jnp.dot(ctx, wo_ref[d],
                            preferred_element_type=jnp.float32) + bo_ref[d]

            # --------------------------- MLP ---------------------------
            xn2 = _layernorm(x, ln2g_ref[d], ln2b_ref[d])
            h1 = jnp.dot(xn2.astype(jnp.bfloat16), w1_ref[d],
                         preferred_element_type=jnp.float32) + b1_ref[d]
            h1 = _gelu_exact(h1)
            h2 = jnp.dot(h1.astype(jnp.bfloat16), w2_ref[d],
                         preferred_element_type=jnp.float32) + b2_ref[d]
            x = x + h2

        # ---- final LN + lane-dense (128-wide) head on the whole slab ----
        # cls rows (row 0 of each 24-row block) and the 10 real classes are
        # sliced out in the wrapper; extra rows/lanes are negligible filler.
        xn = _layernorm(x, lnfg_ref[...], lnfb_ref[...])
        o_ref[...] = (jnp.dot(xn.astype(jnp.bfloat16), hw_ref[...],
                              preferred_element_type=jnp.float32)
                      + hb_ref[...]).astype(o_ref.dtype)

    return kernel


# ----------------------------- forward (glue) -----------------------------
def vit_forward(x, params):
    B = x.shape[0]
    # transform: Resize(VIT_IMG); Normalize(.5,.5) is folded into the kernel.
    x = jax.image.resize(x, (B, CHANNELS, VIT_IMG, VIT_IMG), method='bilinear')

    # patchify: pure layout glue; the conv-as-matmul runs inside the kernel.
    g = GRID_SIDE
    patches = x.reshape(B, CHANNELS, g, PATCH, g, PATCH)
    patches = patches.transpose(0, 2, 4, 1, 3, 5)              # (B, gy, gx, C, p, p)
    patches = patches.reshape(B * NUM_PATCHES, PATCH_DIM)

    bf = lambda a: a.astype(jnp.bfloat16)

    # positional embedding laid out to match the padded per-batch token blocks
    pos = params['pos_embed']                                  # (SEQ, D)
    pos_pad = jnp.zeros((SEQ_PAD, EMBED), jnp.float32)
    pos_pad = pos_pad.at[0:1].set(pos[0:1])
    pos_pad = pos_pad.at[PATCH_ROW0:SEQ_PAD].set(pos[1:SEQ])
    pos_full = jnp.tile(pos_pad, (B, 1))                       # (B*SEQ_PAD, D)

    # lane-dense head: pad classes 10 -> 128 with zeros
    hw_pad = jnp.zeros((EMBED, CLASSES_PAD), jnp.float32)
    hw_pad = hw_pad.at[:, :NUM_CLASSES].set(params['head_w'])
    hb_pad = jnp.zeros((1, CLASSES_PAD), jnp.float32)
    hb_pad = hb_pad.at[:, :NUM_CLASSES].set(params['head_b'])

    inputs = (patches, bf(params['patch_w']), params['patch_b'],
              params['cls_token'], pos_full,
              params['blk_ln1_g'], params['blk_ln1_b'],
              bf(params['blk_wqkv']), params['blk_bqkv'],
              bf(params['blk_wo']), params['blk_bo'],
              params['blk_ln2_g'], params['blk_ln2_b'],
              bf(params['blk_w1']), params['blk_b1'],
              bf(params['blk_w2']), params['blk_b2'],
              params['ln_g'], params['ln_b'],
              bf(hw_pad), hb_pad)

    out = pl.pallas_call(
        _make_vit_kernel(B),
        out_shape=jax.ShapeDtypeStruct((B * SEQ_PAD, CLASSES_PAD), jnp.float32),
        # grid-less single program: no pipeline double-buffering of the weights
        in_specs=[pl.BlockSpec(memory_space=pltpu.MemorySpace.VMEM)
                  for _ in inputs],
        out_specs=pl.BlockSpec(memory_space=pltpu.MemorySpace.VMEM),
        scratch_shapes=[pltpu.VMEM((B * SEQ_PAD, EMBED), jnp.float32)],
    )(*inputs)

    # cls token is row 0 of each padded per-batch block; keep the 10 real classes.
    return out.reshape(B, SEQ_PAD, CLASSES_PAD)[:, 0, :NUM_CLASSES]


# ----------------------------- parameter init -----------------------------
def init_params(key):
    keys = iter(jax.random.split(key, 64))

    def w(shape, scale=0.02):
        return (scale * jax.random.normal(next(keys), shape)).astype(jnp.float32)

    def stack(fn):
        return jnp.stack([fn() for _ in range(DEPTH)], axis=0)

    return dict(
        patch_w=w((PATCH_DIM, EMBED)),
        patch_b=jnp.zeros((1, EMBED), jnp.float32),
        cls_token=w((1, EMBED)),
        pos_embed=w((SEQ, EMBED)),
        ln_g=jnp.ones((1, EMBED), jnp.float32),
        ln_b=jnp.zeros((1, EMBED), jnp.float32),
        head_w=w((EMBED, NUM_CLASSES)),
        head_b=jnp.zeros((1, NUM_CLASSES), jnp.float32),      # nn.init.zeros_
        # per-block params stacked along a leading DEPTH axis
        blk_ln1_g=jnp.ones((DEPTH, 1, EMBED), jnp.float32),
        blk_ln1_b=jnp.zeros((DEPTH, 1, EMBED), jnp.float32),
        blk_wqkv=stack(lambda: w((EMBED, 3 * EMBED))),
        blk_bqkv=jnp.zeros((DEPTH, 1, 3 * EMBED), jnp.float32),
        blk_wo=stack(lambda: w((EMBED, EMBED))),
        blk_bo=jnp.zeros((DEPTH, 1, EMBED), jnp.float32),
        blk_ln2_g=jnp.ones((DEPTH, 1, EMBED), jnp.float32),
        blk_ln2_b=jnp.zeros((DEPTH, 1, EMBED), jnp.float32),
        blk_w1=stack(lambda: w((EMBED, MLP_HIDDEN))),
        blk_b1=jnp.zeros((DEPTH, 1, MLP_HIDDEN), jnp.float32),
        blk_w2=stack(lambda: w((MLP_HIDDEN, EMBED))),
        blk_b2=jnp.zeros((DEPTH, 1, EMBED), jnp.float32),
    )


# ----------------------------------- main ----------------------------------
if __name__ == "__main__":
    key = jax.random.PRNGKey(0)
    pkey, xkey = jax.random.split(key)
    params = init_params(pkey)
    # NCHW input, values in [0, 1] like a normalized image tensor
    x = jax.random.uniform(xkey, (2, CHANNELS, IMG_IN, IMG_IN), jnp.float32)

    forward = jax.jit(vit_forward)
    logits = jax.block_until_ready(forward(x, params))
    assert logits.shape == (2, NUM_CLASSES), logits.shape
    assert bool(jnp.all(jnp.isfinite(logits)))
    print("KERNEL_OK")
</pallas_src>

<mosaic_0001>
module attributes {stable_mosaic.version = 11 : i64} {
  func.func @kernel(%arg0: memref<32x192xf32, #tpu.memory_space<vmem>>, %arg1: memref<192x64xbf16, #tpu.memory_space<vmem>>, %arg2: memref<1x64xf32, #tpu.memory_space<vmem>>, %arg3: memref<1x64xf32, #tpu.memory_space<vmem>>, %arg4: memref<48x64xf32, #tpu.memory_space<vmem>>, %arg5: memref<2x1x64xf32, #tpu.memory_space<vmem>>, %arg6: memref<2x1x64xf32, #tpu.memory_space<vmem>>, %arg7: memref<2x64x192xbf16, #tpu.memory_space<vmem>>, %arg8: memref<2x1x192xf32, #tpu.memory_space<vmem>>, %arg9: memref<2x64x64xbf16, #tpu.memory_space<vmem>>, %arg10: memref<2x1x64xf32, #tpu.memory_space<vmem>>, %arg11: memref<2x1x64xf32, #tpu.memory_space<vmem>>, %arg12: memref<2x1x64xf32, #tpu.memory_space<vmem>>, %arg13: memref<2x64x256xbf16, #tpu.memory_space<vmem>>, %arg14: memref<2x1x256xf32, #tpu.memory_space<vmem>>, %arg15: memref<2x256x64xbf16, #tpu.memory_space<vmem>>, %arg16: memref<2x1x64xf32, #tpu.memory_space<vmem>>, %arg17: memref<1x64xf32, #tpu.memory_space<vmem>>, %arg18: memref<1x64xf32, #tpu.memory_space<vmem>>, %arg19: memref<64x128xbf16, #tpu.memory_space<vmem>>, %arg20: memref<1x128xf32, #tpu.memory_space<vmem>>, %arg21: memref<48x128xf32, #tpu.memory_space<vmem>>, %arg22: memref<48x64xf32, #tpu.memory_space<vmem>>) attributes {dimension_semantics = [], scalar_prefetch = 0 : i64, scratch_operands = 1 : i64, tpu.core_type = #tpu.core_type<tc>} {
    %c0 = arith.constant 0 : index
    %c0_0 = arith.constant 0 : index
    %0 = vector.load %arg0[%c0, %c0_0] : memref<32x192xf32, #tpu.memory_space<vmem>>, vector<32x192xf32>
    %cst = arith.constant 5.000000e-01 : f32
    %1 = vector.broadcast %cst : f32 to vector<32x192xf32>
    %2 = arith.subf %0, %1 : vector<32x192xf32>
    %cst_1 = arith.constant 2.000000e+00 : f32
    %3 = vector.broadcast %cst_1 : f32 to vector<32x192xf32>
    %4 = arith.mulf %2, %3 : vector<32x192xf32>
    %5 = arith.truncf %4 : vector<32x192xf32> to vector<32x192xbf16>
    %c0_2 = arith.constant 0 : index
    %c0_3 = arith.constant 0 : index
    %6 = vector.load %arg1[%c0_2, %c0_3] : memref<192x64xbf16, #tpu.memory_space<vmem>>, vector<192x64xbf16>
    %cst_4 = arith.constant dense<0.000000e+00> : vector<32x64xf32>
    %7 = tpu.matmul %5, %6, %cst_4 {dimension_numbers = #tpu.dot_dimension_numbers<[1], [0], [0], [1], [0, 0, 1, 1], [], []>} : vector<32x192xbf16>, vector<192x64xbf16>, vector<32x64xf32> -> vector<32x64xf32>
    %c0_5 = arith.constant 0 : index
    %c0_6 = arith.constant 0 : index
    %8 = vector.load %arg2[%c0_5, %c0_6] : memref<1x64xf32, #tpu.memory_space<vmem>>, vector<1x64xf32>
    %9 = vector.broadcast %8 : vector<1x64xf32> to vector<32x64xf32>
    %10 = arith.addf %7, %9 : vector<32x64xf32>
    %cst_7 = arith.constant 0.000000e+00 : f32
    %11 = vector.broadcast %cst_7 : f32 to vector<48x64xf32>
    %c0_8 = arith.constant 0 : index
    %c0_9 = arith.constant 0 : index
    %12 = vector.load %arg22[%c0_8, %c0_9] : memref<48x64xf32, #tpu.memory_space<vmem>>, vector<48x64xf32>
    tpu.vector_store %arg22[%c0_8, %c0_9], %11 {strides = array<i32>} : memref<48x64xf32, #tpu.memory_space<vmem>>, vector<48x64xf32>,
    %c0_10 = arith.constant 0 : index
    %c0_11 = arith.constant 0 : index
    %13 = vector.load %arg3[%c0_10, %c0_11] : memref<1x64xf32, #tpu.memory_space<vmem>>, vector<1x64xf32>
    %c0_12 = arith.constant 0 : index
    %c0_13 = arith.constant 0 : index
    %14 = vector.load %arg22[%c0_12, %c0_13] : memref<48x64xf32, #tpu.memory_space<vmem>>, vector<1x64xf32>
    tpu.vector_store %arg22[%c0_12, %c0_13], %13 {strides = array<i32>} : memref<48x64xf32, #tpu.memory_space<vmem>>, vector<1x64xf32>,
    %15 = vector.extract_strided_slice %10 {offsets = [0, 0], sizes = [16, 64], strides = [1, 1]} : vector<32x64xf32> to vector<16x64xf32>
    %c8 = arith.constant 8 : index
    %c0_14 = arith.constant 0 : index
    %16 = vector.load %arg22[%c8, %c0_14] : memref<48x64xf32, #tpu.memory_space<vmem>>, vector<16x64xf32>
    tpu.vector_store %arg22[%c8, %c0_14], %15 {strides = array<i32>} : memref<48x64xf32, #tpu.memory_space<vmem>>, vector<16x64xf32>,
    %c24 = arith.constant 24 : index
    %c0_15 = arith.constant 0 : index
    %17 = vector.load %arg22[%c24, %c0_15] : memref<48x64xf32, #tpu.memory_space<vmem>>, vector<1x64xf32>
    tpu.vector_store %arg22[%c24, %c0_15], %13 {strides = array<i32>} : memref<48x64xf32, #tpu.memory_space<vmem>>, vector<1x64xf32>,
    %18 = vector.extract_strided_slice %10 {offsets = [16, 0], sizes = [16, 64], strides = [1, 1]} : vector<32x64xf32> to vector<16x64xf32>
    %c32 = arith.constant 32 : index
    %c0_16 = arith.constant 0 : index
    %19 = vector.load %arg22[%c32, %c0_16] : memref<48x64xf32, #tpu.memory_space<vmem>>, vector<16x64xf32>
    tpu.vector_store %arg22[%c32, %c0_16], %18 {strides = array<i32>} : memref<48x64xf32, #tpu.memory_space<vmem>>, vector<16x64xf32>,
    %c0_17 = arith.constant 0 : index
    %c0_18 = arith.constant 0 : index
    %20 = vector.load %arg22[%c0_17, %c0_18] : memref<48x64xf32, #tpu.memory_space<vmem>>, vector<48x64xf32>
    %c0_19 = arith.constant 0 : index
    %c0_20 = arith.constant 0 : index
    %21 = vector.load %arg4[%c0_19, %c0_20] : memref<48x64xf32, #tpu.memory_space<vmem>>, vector<48x64xf32>
    %22 = arith.addf %20, %21 : vector<48x64xf32>
    %23 = tpu.iota {dimensions = array<i32: 1>} : vector<1x24xi32>
    %c0_i32 = arith.constant 0 : i32
    %24 = vector.broadcast %c0_i32 : i32 to vector<1x24xi32>
    %25 = arith.cmpi eq, %23, %24 : vector<1x24xi32>
    %c8_i32 = arith.constant 8 : i32
    %26 = vector.broadcast %c8_i32 : i32 to vector<1x24xi32>
    %27 = arith.cmpi sge, %23, %26 : vector<1x24xi32>
    %28 = arith.ori %25, %27 : vector<1x24xi1>
    %cst_21 = arith.constant 0.000000e+00 : f32
    %cst_22 = arith.constant -1.000000e+30 : f32
    %29 = vector.broadcast %cst_21 : f32 to vector<1x24xf32>
    %30 = vector.broadcast %cst_22 : f32 to vector<1x24xf32>
    %31 = arith.select %28, %29, %30 : vector<1x24xi1>, vector<1x24xf32>
    %c0_23 = arith.constant 0 : index
    %c0_24 = arith.constant 0 : index
    %c0_25 = arith.constant 0 : index
    %32 = vector.load %arg5[%c0_23, %c0_24, %c0_25] : memref<2x1x64xf32, #tpu.memory_space<vmem>>, vector<1x1x64xf32>
    %33 = vector.shape_cast %32 : vector<1x1x64xf32> to vector<1x64xf32>
    %c0_26 = arith.constant 0 : index
    %c0_27 = arith.constant 0 : index
    %c0_28 = arith.constant 0 : index
    %34 = vector.load %arg6[%c0_26, %c0_27, %c0_28] : memref<2x1x64xf32, #tpu.memory_space<vmem>>, vector<1x1x64xf32>
    %35 = vector.shape_cast %34 : vector<1x1x64xf32> to vector<1x64xf32>
    %cst_29 = arith.constant dense<0.000000e+00> : vector<48xf32>
    %36 = vector.multi_reduction <add>, %22, %cst_29 [1] : vector<48x64xf32> to vector<48xf32>
    %37 = vector.shape_cast %36 : vector<48xf32> to vector<48x1xf32>
    %cst_30 = arith.constant 6.400000e+01 : f32
    %38 = vector.broadcast %cst_30 : f32 to vector<48x1xf32>
    %39 = arith.divf %37, %38 : vector<48x1xf32>
    %40 = vector.broadcast %39 : vector<48x1xf32> to vector<48x64xf32>
    %41 = arith.subf %22, %40 : vector<48x64xf32>
    %42 = arith.mulf %41, %41 : vector<48x64xf32>
    %cst_31 = arith.constant dense<0.000000e+00> : vector<48xf32>
    %43 = vector.multi_reduction <add>, %42, %cst_31 [1] : vector<48x64xf32> to vector<48xf32>
    %44 = vector.shape_cast %43 : vector<48xf32> to vector<48x1xf32>
    %cst_32 = arith.constant 6.400000e+01 : f32
    %45 = vector.broadcast %cst_32 : f32 to vector<48x1xf32>
    %46 = arith.divf %44, %45 : vector<48x1xf32>
    %47 = vector.broadcast %39 : vector<48x1xf32> to vector<48x64xf32>
    %48 = arith.subf %22, %47 : vector<48x64xf32>
    %cst_33 = arith.constant 9.99999997E-7 : f32
    %49 = vector.broadcast %cst_33 : f32 to vector<48x1xf32>
    %50 = arith.addf %46, %49 : vector<48x1xf32>
    %51 = math.rsqrt %50 : vector<48x1xf32>
    %52 = vector.broadcast %51 : vector<48x1xf32> to vector<48x64xf32>
    %53 = arith.mulf %48, %52 : vector<48x64xf32>
    %54 = vector.broadcast %33 : vector<1x64xf32> to vector<48x64xf32>
    %55 = arith.mulf %53, %54 : vector<48x64xf32>
    %56 = vector.broadcast %35 : vector<1x64xf32> to vector<48x64xf32>
    %57 = arith.addf %55, %56 : vector<48x64xf32>
    %58 = arith.truncf %57 : vector<48x64xf32> to vector<48x64xbf16>
    %c0_34 = arith.constant 0 : index
    %c0_35 = arith.constant 0 : index
    %c0_36 = arith.constant 0 : index
    %59 = vector.load %arg7[%c0_34, %c0_35, %c0_36] : memref<2x64x192xbf16, #tpu.memory_space<vmem>>, vector<1x64x192xbf16>
    %60 = vector.shape_cast %59 : vector<1x64x192xbf16> to vector<64x192xbf16>
    %cst_37 = arith.constant dense<0.000000e+00> : vector<48x192xf32>
    %61 = tpu.matmul %58, %60, %cst_37 {dimension_numbers = #tpu.dot_dimension_numbers<[1], [0], [0], [1], [0, 0, 1, 1], [], []>} : vector<48x64xbf16>, vector<64x192xbf16>, vector<48x192xf32> -> vector<48x192xf32>
    %c0_38 = arith.constant 0 : index
    %c0_39 = arith.constant 0 : index
    %c0_40 = arith.constant 0 : index
    %62 = vector.load %arg8[%c0_38, %c0_39, %c0_40] : memref<2x1x192xf32, #tpu.memory_space<vmem>>, vector<1x1x192xf32>
    %63 = vector.shape_cast %62 : vector<1x1x192xf32> to vector<1x192xf32>
    %64 = vector.broadcast %63 : vector<1x192xf32> to vector<48x192xf32>
    %65 = arith.addf %61, %64 : vector<48x192xf32>
    %66 = arith.truncf %65 : vector<48x192xf32> to vector<48x192xbf16>
    %67 = vector.extract_strided_slice %66 {offsets = [0, 0], sizes = [24, 32], strides = [1, 1]} : vector<48x192xbf16> to vector<24x32xbf16>
    %68 = vector.extract_strided_slice %66 {offsets = [0, 64], sizes = [24, 32], strides = [1, 1]} : vector<48x192xbf16> to vector<24x32xbf16>
    %cst_41 = arith.constant dense<0.000000e+00> : vector<24x24xf32>
    %69 = tpu.matmul %67, %68, %cst_41 {dimension_numbers = #tpu.dot_dimension_numbers<[1], [1], [0], [0], [0, 0, 1, 0], [], []>} : vector<24x32xbf16>, vector<24x32xbf16>, vector<24x24xf32> -> vector<24x24xf32>
    %70 = vector.extract_strided_slice %66 {offsets = [24, 0], sizes = [24, 32], strides = [1, 1]} : vector<48x192xbf16> to vector<24x32xbf16>
    %71 = vector.extract_strided_slice %66 {offsets = [24, 64], sizes = [24, 32], strides = [1, 1]} : vector<48x192xbf16> to vector<24x32xbf16>
    %cst_42 = arith.constant dense<0.000000e+00> : vector<24x24xf32>
    %72 = tpu.matmul %70, %71, %cst_42 {dimension_numbers = #tpu.dot_dimension_numbers<[1], [1], [0], [0], [0, 0, 1, 0], [], []>} : vector<24x32xbf16>, vector<24x32xbf16>, vector<24x24xf32> -> vector<24x24xf32>
    %73 = vector.extract_strided_slice %66 {offsets = [0, 32], sizes = [24, 32], strides = [1, 1]} : vector<48x192xbf16> to vector<24x32xbf16>
    %74 = vector.extract_strided_slice %66 {offsets = [0, 96], sizes = [24, 32], strides = [1, 1]} : vector<48x192xbf16> to vector<24x32xbf16>
    %cst_43 = arith.constant dense<0.000000e+00> : vector<24x24xf32>
    %75 = tpu.matmul %73, %74, %cst_43 {dimension_numbers = #tpu.dot_dimension_numbers<[1], [1], [0], [0], [0, 0, 1, 0], [], []>} : vector<24x32xbf16>, vector<24x32xbf16>, vector<24x24xf32> -> vector<24x24xf32>
    %76 = vector.extract_strided_slice %66 {offsets = [24, 32], sizes = [24, 32], strides = [1, 1]} : vector<48x192xbf16> to vector<24x32xbf16>
    %77 = vector.extract_strided_slice %66 {offsets = [24, 96], sizes = [24, 32], strides = [1, 1]} : vector<48x192xbf16> to vector<24x32xbf16>
    %cst_44 = arith.constant dense<0.000000e+00> : vector<24x24xf32>
    %78 = tpu.matmul %76, %77, %cst_44 {dimension_numbers = #tpu.dot_dimension_numbers<[1], [1], [0], [0], [0, 0, 1, 0], [], []>} : vector<24x32xbf16>, vector<24x32xbf16>, vector<24x24xf32> -> vector<24x24xf32>
    %79 = tpu.concatenate %69, %72, %75, %78 in 0 : vector<24x24xf32>, vector<24x24xf32>, vector<24x24xf32>, vector<24x24xf32> -> vector<96x24xf32>
    %cst_45 = arith.constant 0.176776692 : f32
    %80 = vector.broadcast %cst_45 : f32 to vector<96x24xf32>
    %81 = arith.mulf %79, %80 : vector<96x24xf32>
    %82 = vector.broadcast %31 : vector<1x24xf32> to vector<96x24xf32>
    %83 = arith.addf %81, %82 : vector<96x24xf32>
    %cst_46 = arith.constant dense<0xFF800000> : vector<96xf32>
    %84 = vector.multi_reduction <maximumf>, %83, %cst_46 [1] : vector<96x24xf32> to vector<96xf32>
    %85 = vector.shape_cast %84 : vector<96xf32> to vector<96x1xf32>
    %86 = vector.broadcast %85 : vector<96x1xf32> to vector<96x24xf32>
    %87 = arith.subf %83, %86 : vector<96x24xf32>
    %88 = math.exp %87 : vector<96x24xf32>
    %cst_47 = arith.constant dense<0.000000e+00> : vector<96xf32>
    %89 = vector.multi_reduction <add>, %88, %cst_47 [1] : vector<96x24xf32> to vector<96xf32>
    %90 = vector.shape_cast %89 : vector<96xf32> to vector<96x1xf32>
    %91 = tpu.reciprocal %90 {approx = true} : vector<96x1xf32> -> vector<96x1xf32>
    %92 = vector.broadcast %91 : vector<96x1xf32> to vector<96x24xf32>
    %93 = arith.mulf %88, %92 : vector<96x24xf32>
    %94 = arith.truncf %93 : vector<96x24xf32> to vector<96x24xbf16>
    %95 = vector.extract_strided_slice %94 {offsets = [0, 0], sizes = [24, 24], strides = [1, 1]} : vector<96x24xbf16> to vector<24x24xbf16>
    %96 = vector.extract_strided_slice %66 {offsets = [0, 128], sizes = [24, 32], strides = [1, 1]} : vector<48x192xbf16> to vector<24x32xbf16>
    %cst_48 = arith.constant dense<0.000000e+00> : vector<24x32xf32>
    %97 = tpu.matmul %95, %96, %cst_48 {dimension_numbers = #tpu.dot_dimension_numbers<[1], [0], [0], [1], [0, 0, 1, 1], [], []>} : vector<24x24xbf16>, vector<24x32xbf16>, vector<24x32xf32> -> vector<24x32xf32>
    %98 = vector.extract_strided_slice %94 {offsets = [24, 0], sizes = [24, 24], strides = [1, 1]} : vector<96x24xbf16> to vector<24x24xbf16>
    %99 = vector.extract_strided_slice %66 {offsets = [24, 128], sizes = [24, 32], strides = [1, 1]} : vector<48x192xbf16> to vector<24x32xbf16>
    %cst_49 = arith.constant dense<0.000000e+00> : vector<24x32xf32>
    %100 = tpu.matmul %98, %99, %cst_49 {dimension_numbers = #tpu.dot_dimension_numbers<[1], [0], [0], [1], [0, 0, 1, 1], [], []>} : vector<24x24xbf16>, vector<24x32xbf16>, vector<24x32xf32> -> vector<24x32xf32>
    %101 = tpu.concatenate %97, %100 in 0 : vector<24x32xf32>, vector<24x32xf32> -> vector<48x32xf32>
    %102 = vector.extract_strided_slice %94 {offsets = [48, 0], sizes = [24, 24], strides = [1, 1]} : vector<96x24xbf16> to vector<24x24xbf16>
    %103 = vector.extract_strided_slice %66 {offsets = [0, 160], sizes = [24, 32], strides = [1, 1]} : vector<48x192xbf16> to vector<24x32xbf16>
    %cst_50 = arith.constant dense<0.000000e+00> : vector<24x32xf32>
    %104 = tpu.matmul %102, %103, %cst_50 {dimension_numbers = #tpu.dot_dimension_numbers<[1], [0], [0], [1], [0, 0, 1, 1], [], []>} : vector<24x24xbf16>, vector<24x32xbf16>, vector<24x32xf32> -> vector<24x32xf32>
    %105 = vector.extract_strided_slice %94 {offsets = [72, 0], sizes = [24, 24], strides = [1, 1]} : vector<96x24xbf16> to vector<24x24xbf16>
    %106 = vector.extract_strided_slice %66 {offsets = [24, 160], sizes = [24, 32], strides = [1, 1]} : vector<48x192xbf16> to vector<24x32xbf16>
    %cst_51 = arith.constant dense<0.000000e+00> : vector<24x32xf32>
    %107 = tpu.matmul %105, %106, %cst_51 {dimension_numbers = #tpu.dot_dimension_numbers<[1], [0], [0], [1], [0, 0, 1, 1], [], []>} : vector<24x24xbf16>, vector<24x32xbf16>, vector<24x32xf32> -> vector<24x32xf32>
    %108 = tpu.concatenate %104, %107 in 0 : vector<24x32xf32>, vector<24x32xf32> -> vector<48x32xf32>
    %109 = tpu.concatenate %101, %108 in 1 : vector<48x32xf32>, vector<48x32xf32> -> vector<48x64xf32>
    %110 = arith.truncf %109 : vector<48x64xf32> to vector<48x64xbf16>
    %c0_52 = arith.constant 0 : index
    %c0_53 = arith.constant 0 : index
    %c0_54 = arith.constant 0 : index
    %111 = vector.load %arg9[%c0_52, %c0_53, %c0_54] : memref<2x64x64xbf16, #tpu.memory_space<vmem>>, vector<1x64x64xbf16>
    %112 = vector.shape_cast %111 : vector<1x64x64xbf16> to vector<64x64xbf16>
    %cst_55 = arith.constant dense<0.000000e+00> : vector<48x64xf32>
    %113 = tpu.matmul %110, %112, %cst_55 {dimension_numbers = #tpu.dot_dimension_numbers<[1], [0], [0], [1], [0, 0, 1, 1], [], []>} : vector<48x64xbf16>, vector<64x64xbf16>, vector<48x64xf32> -> vector<48x64xf32>
    %114 = arith.addf %22, %113 : vector<48x64xf32>
    %c0_56 = arith.constant 0 : index
    %c0_57 = arith.constant 0 : index
    %c0_58 = arith.constant 0 : index
    %115 = vector.load %arg10[%c0_56, %c0_57, %c0_58] : memref<2x1x64xf32, #tpu.memory_space<vmem>>, vector<1x1x64xf32>
    %116 = vector.shape_cast %115 : vector<1x1x64xf32> to vector<1x64xf32>
    %117 = vector.broadcast %116 : vector<1x64xf32> to vector<48x64xf32>
    %118 = arith.addf %114, %117 : vector<48x64xf32>
    %c0_59 = arith.constant 0 : index
    %c0_60 = arith.constant 0 : index
    %c0_61 = arith.constant 0 : index
    %119 = vector.load %arg11[%c0_59, %c0_60, %c0_61] : memref<2x1x64xf32, #tpu.memory_space<vmem>>, vector<1x1x64xf32>
    %120 = vector.shape_cast %119 : vector<1x1x64xf32> to vector<1x64xf32>
    %c0_62 = arith.constant 0 : index
    %c0_63 = arith.constant 0 : index
    %c0_64 = arith.constant 0 : index
    %121 = vector.load %arg12[%c0_62, %c0_63, %c0_64] : memref<2x1x64xf32, #tpu.memory_space<vmem>>, vector<1x1x64xf32>
    %122 = vector.shape_cast %121 : vector<1x1x64xf32> to vector<1x64xf32>
    %cst_65 = arith.constant dense<0.000000e+00> : vector<48xf32>
    %123 = vector.multi_reduction <add>, %118, %cst_65 [1] : vector<48x64xf32> to vector<48xf32>
    %124 = vector.shape_cast %123 : vector<48xf32> to vector<48x1xf32>
    %cst_66 = arith.constant 6.400000e+01 : f32
    %125 = vector.broadcast %cst_66 : f32 to vector<48x1xf32>
    %126 = arith.divf %124, %125 : vector<48x1xf32>
    %127 = vector.broadcast %126 : vector<48x1xf32> to vector<48x64xf32>
    %128 = arith.subf %118, %127 : vector<48x64xf32>
    %129 = arith.mulf %128, %128 : vector<48x64xf32>
    %cst_67 = arith.constant dense<0.000000e+00> : vector<48xf32>
    %130 = vector.multi_reduction <add>, %129, %cst_67 [1] : vector<48x64xf32> to vector<48xf32>
    %131 = vector.shape_cast %130 : vector<48xf32> to vector<48x1xf32>
    %cst_68 = arith.constant 6.400000e+01 : f32
    %132 = vector.broadcast %cst_68 : f32 to vector<48x1xf32>
    %133 = arith.divf %131, %132 : vector<48x1xf32>
    %134 = vector.broadcast %126 : vector<48x1xf32> to vector<48x64xf32>
    %135 = arith.subf %118, %134 : vector<48x64xf32>
    %cst_69 = arith.constant 9.99999997E-7 : f32
    %136 = vector.broadcast %cst_69 : f32 to vector<48x1xf32>
    %137 = arith.addf %133, %136 : vector<48x1xf32>
    %138 = math.rsqrt %137 : vector<48x1xf32>
    %139 = vector.broadcast %138 : vector<48x1xf32> to vector<48x64xf32>
    %140 = arith.mulf %135, %139 : vector<48x64xf32>
    %141 = vector.broadcast %120 : vector<1x64xf32> to vector<48x64xf32>
    %142 = arith.mulf %140, %141 : vector<48x64xf32>
    %143 = vector.broadcast %122 : vector<1x64xf32> to vector<48x64xf32>
    %144 = arith.addf %142, %143 : vector<48x64xf32>
    %145 = arith.truncf %144 : vector<48x64xf32> to vector<48x64xbf16>
    %c0_70 = arith.constant 0 : index
    %c0_71 = arith.constant 0 : index
    %c0_72 = arith.constant 0 : index
    %146 = vector.load %arg13[%c0_70, %c0_71, %c0_72] : memref<2x64x256xbf16, #tpu.memory_space<vmem>>, vector<1x64x256xbf16>
    %147 = vector.shape_cast %146 : vector<1x64x256xbf16> to vector<64x256xbf16>
    %cst_73 = arith.constant dense<0.000000e+00> : vector<48x256xf32>
    %148 = tpu.matmul %145, %147, %cst_73 {dimension_numbers = #tpu.dot_dimension_numbers<[1], [0], [0], [1], [0, 0, 1, 1], [], []>} : vector<48x64xbf16>, vector<64x256xbf16>, vector<48x256xf32> -> vector<48x256xf32>
    %c0_74 = arith.constant 0 : index
    %c0_75 = arith.constant 0 : index
    %c0_76 = arith.constant 0 : index
    %149 = vector.load %arg14[%c0_74, %c0_75, %c0_76] : memref<2x1x256xf32, #tpu.memory_space<vmem>>, vector<1x1x256xf32>
    %150 = vector.shape_cast %149 : vector<1x1x256xf32> to vector<1x256xf32>
    %151 = vector.broadcast %150 : vector<1x256xf32> to vector<48x256xf32>
    %152 = arith.addf %148, %151 : vector<48x256xf32>
    %cst_77 = arith.constant 5.000000e-01 : f32
    %153 = vector.broadcast %cst_77 : f32 to vector<48x256xf32>
    %154 = arith.mulf %153, %152 : vector<48x256xf32>
    %cst_78 = arith.constant 2.000000e+00 : f32
    %155 = math.sqrt %cst_78 : f32
    %cst_79 = arith.constant 1.000000e+00 : f32
    %156 = arith.divf %cst_79, %155 : f32
    %157 = vector.broadcast %156 : f32 to vector<48x256xf32>
    %158 = arith.mulf %152, %157 : vector<48x256xf32>
    %159 = math.erf %158 : vector<48x256xf32>
    %cst_80 = arith.constant 1.000000e+00 : f32
    %160 = vector.broadcast %cst_80 : f32 to vector<48x256xf32>
    %161 = arith.addf %160, %159 : vector<48x256xf32>
    %162 = arith.mulf %154, %161 : vector<48x256xf32>
    %163 = arith.truncf %162 : vector<48x256xf32> to vector<48x256xbf16>
    %c0_81 = arith.constant 0 : index
    %c0_82 = arith.constant 0 : index
    %c0_83 = arith.constant 0 : index
    %164 = vector.load %arg15[%c0_81, %c0_82, %c0_83] : memref<2x256x64xbf16, #tpu.memory_space<vmem>>, vector<1x256x64xbf16>
    %165 = vector.shape_cast %164 : vector<1x256x64xbf16> to vector<256x64xbf16>
    %cst_84 = arith.constant dense<0.000000e+00> : vector<48x64xf32>
    %166 = tpu.matmul %163, %165, %cst_84 {dimension_numbers = #tpu.dot_dimension_numbers<[1], [0], [0], [1], [0, 0, 1, 1], [], []>} : vector<48x256xbf16>, vector<256x64xbf16>, vector<48x64xf32> -> vector<48x64xf32>
    %c0_85 = arith.constant 0 : index
    %c0_86 = arith.constant 0 : index
    %c0_87 = arith.constant 0 : index
    %167 = vector.load %arg16[%c0_85, %c0_86, %c0_87] : memref<2x1x64xf32, #tpu.memory_space<vmem>>, vector<1x1x64xf32>
    %168 = vector.shape_cast %167 : vector<1x1x64xf32> to vector<1x64xf32>
    %169 = vector.broadcast %168 : vector<1x64xf32> to vector<48x64xf32>
    %170 = arith.addf %166, %169 : vector<48x64xf32>
    %171 = arith.addf %118, %170 : vector<48x64xf32>
    %c1 = arith.constant 1 : index
    %c0_88 = arith.constant 0 : index
    %c0_89 = arith.constant 0 : index
    %172 = vector.load %arg5[%c1, %c0_88, %c0_89] : memref<2x1x64xf32, #tpu.memory_space<vmem>>, vector<1x1x64xf32>
    %173 = vector.shape_cast %172 : vector<1x1x64xf32> to vector<1x64xf32>
    %c1_90 = arith.constant 1 : index
    %c0_91 = arith.constant 0 : index
    %c0_92 = arith.constant 0 : index
    %174 = vector.load %arg6[%c1_90, %c0_91, %c0_92] : memref<2x1x64xf32, #tpu.memory_space<vmem>>, vector<1x1x64xf32>
    %175 = vector.shape_cast %174 : vector<1x1x64xf32> to vector<1x64xf32>
    %cst_93 = arith.constant dense<0.000000e+00> : vector<48xf32>
    %176 = vector.multi_reduction <add>, %171, %cst_93 [1] : vector<48x64xf32> to vector<48xf32>
    %177 = vector.shape_cast %176 : vector<48xf32> to vector<48x1xf32>
    %cst_94 = arith.constant 6.400000e+01 : f32
    %178 = vector.broadcast %cst_94 : f32 to vector<48x1xf32>
    %179 = arith.divf %177, %178 : vector<48x1xf32>
    %180 = vector.broadcast %179 : vector<48x1xf32> to vector<48x64xf32>
    %181 = arith.subf %171, %180 : vector<48x64xf32>
    %182 = arith.mulf %181, %181 : vector<48x64xf32>
    %cst_95 = arith.constant dense<0.000000e+00> : vector<48xf32>
    %183 = vector.multi_reduction <add>, %182, %cst_95 [1] : vector<48x64xf32> to vector<48xf32>
    %184 = vector.shape_cast %183 : vector<48xf32> to vector<48x1xf32>
    %cst_96 = arith.constant 6.400000e+01 : f32
    %185 = vector.broadcast %cst_96 : f32 to vector<48x1xf32>
    %186 = arith.divf %184, %185 : vector<48x1xf32>
    %187 = vector.broadcast %179 : vector<48x1xf32> to vector<48x64xf32>
    %188 = arith.subf %171, %187 : vector<48x64xf32>
    %cst_97 = arith.constant 9.99999997E-7 : f32
    %189 = vector.broadcast %cst_97 : f32 to vector<48x1xf32>
    %190 = arith.addf %186, %189 : vector<48x1xf32>
    %191 = math.rsqrt %190 : vector<48x1xf32>
    %192 = vector.broadcast %191 : vector<48x1xf32> to vector<48x64xf32>
    %193 = arith.mulf %188, %192 : vector<48x64xf32>
    %194 = vector.broadcast %173 : vector<1x64xf32> to vector<48x64xf32>
    %195 = arith.mulf %193, %194 : vector<48x64xf32>
    %196 = vector.broadcast %175 : vector<1x64xf32> to vector<48x64xf32>
    %197 = arith.addf %195, %196 : vector<48x64xf32>
    %198 = arith.truncf %197 : vector<48x64xf32> to vector<48x64xbf16>
    %c1_98 = arith.constant 1 : index
    %c0_99 = arith.constant 0 : index
    %c0_100 = arith.constant 0 : index
    %199 = vector.load %arg7[%c1_98, %c0_99, %c0_100] : memref<2x64x192xbf16, #tpu.memory_space<vmem>>, vector<1x64x192xbf16>
    %200 = vector.shape_cast %199 : vector<1x64x192xbf16> to vector<64x192xbf16>
    %cst_101 = arith.constant dense<0.000000e+00> : vector<48x192xf32>
    %201 = tpu.matmul %198, %200, %cst_101 {dimension_numbers = #tpu.dot_dimension_numbers<[1], [0], [0], [1], [0, 0, 1, 1], [], []>} : vector<48x64xbf16>, vector<64x192xbf16>, vector<48x192xf32> -> vector<48x192xf32>
    %c1_102 = arith.constant 1 : index
    %c0_103 = arith.constant 0 : index
    %c0_104 = arith.constant 0 : index
    %202 = vector.load %arg8[%c1_102, %c0_103, %c0_104] : memref<2x1x192xf32, #tpu.memory_space<vmem>>, vector<1x1x192xf32>
    %203 = vector.shape_cast %202 : vector<1x1x192xf32> to vector<1x192xf32>
    %204 = vector.broadcast %203 : vector<1x192xf32> to vector<48x192xf32>
    %205 = arith.addf %201, %204 : vector<48x192xf32>
    %206 = arith.truncf %205 : vector<48x192xf32> to vector<48x192xbf16>
    %207 = vector.extract_strided_slice %206 {offsets = [0, 0], sizes = [24, 32], strides = [1, 1]} : vector<48x192xbf16> to vector<24x32xbf16>
    %208 = vector.extract_strided_slice %206 {offsets = [0, 64], sizes = [24, 32], strides = [1, 1]} : vector<48x192xbf16> to vector<24x32xbf16>
    %cst_105 = arith.constant dense<0.000000e+00> : vector<24x24xf32>
    %209 = tpu.matmul %207, %208, %cst_105 {dimension_numbers = #tpu.dot_dimension_numbers<[1], [1], [0], [0], [0, 0, 1, 0], [], []>} : vector<24x32xbf16>, vector<24x32xbf16>, vector<24x24xf32> -> vector<24x24xf32>
    %210 = vector.extract_strided_slice %206 {offsets = [24, 0], sizes = [24, 32], strides = [1, 1]} : vector<48x192xbf16> to vector<24x32xbf16>
    %211 = vector.extract_strided_slice %206 {offsets = [24, 64], sizes = [24, 32], strides = [1, 1]} : vector<48x192xbf16> to vector<24x32xbf16>
    %cst_106 = arith.constant dense<0.000000e+00> : vector<24x24xf32>
    %212 = tpu.matmul %210, %211, %cst_106 {dimension_numbers = #tpu.dot_dimension_numbers<[1], [1], [0], [0], [0, 0, 1, 0], [], []>} : vector<24x32xbf16>, vector<24x32xbf16>, vector<24x24xf32> -> vector<24x24xf32>
    %213 = vector.extract_strided_slice %206 {offsets = [0, 32], sizes = [24, 32], strides = [1, 1]} : vector<48x192xbf16> to vector<24x32xbf16>
    %214 = vector.extract_strided_slice %206 {offsets = [0, 96], sizes = [24, 32], strides = [1, 1]} : vector<48x192xbf16> to vector<24x32xbf16>
    %cst_107 = arith.constant dense<0.000000e+00> : vector<24x24xf32>
    %215 = tpu.matmul %213, %214, %cst_107 {dimension_numbers = #tpu.dot_dimension_numbers<[1], [1], [0], [0], [0, 0, 1, 0], [], []>} : vector<24x32xbf16>, vector<24x32xbf16>, vector<24x24xf32> -> vector<24x24xf32>
    %216 = vector.extract_strided_slice %206 {offsets = [24, 32], sizes = [24, 32], strides = [1, 1]} : vector<48x192xbf16> to vector<24x32xbf16>
    %217 = vector.extract_strided_slice %206 {offsets = [24, 96], sizes = [24, 32], strides = [1, 1]} : vector<48x192xbf16> to vector<24x32xbf16>
    %cst_108 = arith.constant dense<0.000000e+00> : vector<24x24xf32>
    %218 = tpu.matmul %216, %217, %cst_108 {dimension_numbers = #tpu.dot_dimension_numbers<[1], [1], [0], [0], [0, 0, 1, 0], [], []>} : vector<24x32xbf16>, vector<24x32xbf16>, vector<24x24xf32> -> vector<24x24xf32>
    %219 = tpu.concatenate %209, %212, %215, %218 in 0 : vector<24x24xf32>, vector<24x24xf32>, vector<24x24xf32>, vector<24x24xf32> -> vector<96x24xf32>
    %cst_109 = arith.constant 0.176776692 : f32
    %220 = vector.broadcast %cst_109 : f32 to vector<96x24xf32>
    %221 = arith.mulf %219, %220 : vector<96x24xf32>
    %222 = vector.broadcast %31 : vector<1x24xf32> to vector<96x24xf32>
    %223 = arith.addf %221, %222 : vector<96x24xf32>
    %cst_110 = arith.constant dense<0xFF800000> : vector<96xf32>
    %224 = vector.multi_reduction <maximumf>, %223, %cst_110 [1] : vector<96x24xf32> to vector<96xf32>
    %225 = vector.shape_cast %224 : vector<96xf32> to vector<96x1xf32>
    %226 = vector.broadcast %225 : vector<96x1xf32> to vector<96x24xf32>
    %227 = arith.subf %223, %226 : vector<96x24xf32>
    %228 = math.exp %227 : vector<96x24xf32>
    %cst_111 = arith.constant dense<0.000000e+00> : vector<96xf32>
    %229 = vector.multi_reduction <add>, %228, %cst_111 [1] : vector<96x24xf32> to vector<96xf32>
    %230 = vector.shape_cast %229 : vector<96xf32> to vector<96x1xf32>
    %231 = tpu.reciprocal %230 {approx = true} : vector<96x1xf32> -> vector<96x1xf32>
    %232 = vector.broadcast %231 : vector<96x1xf32> to vector<96x24xf32>
    %233 = arith.mulf %228, %232 : vector<96x24xf32>
    %234 = arith.truncf %233 : vector<96x24xf32> to vector<96x24xbf16>
    %235 = vector.extract_strided_slice %234 {offsets = [0, 0], sizes = [24, 24], strides = [1, 1]} : vector<96x24xbf16> to vector<24x24xbf16>
    %236 = vector.extract_strided_slice %206 {offsets = [0, 128], sizes = [24, 32], strides = [1, 1]} : vector<48x192xbf16> to vector<24x32xbf16>
    %cst_112 = arith.constant dense<0.000000e+00> : vector<24x32xf32>
    %237 = tpu.matmul %235, %236, %cst_112 {dimension_numbers = #tpu.dot_dimension_numbers<[1], [0], [0], [1], [0, 0, 1, 1], [], []>} : vector<24x24xbf16>, vector<24x32xbf16>, vector<24x32xf32> -> vector<24x32xf32>
    %238 = vector.extract_strided_slice %234 {offsets = [24, 0], sizes = [24, 24], strides = [1, 1]} : vector<96x24xbf16> to vector<24x24xbf16>
    %239 = vector.extract_strided_slice %206 {offsets = [24, 128], sizes = [24, 32], strides = [1, 1]} : vector<48x192xbf16> to vector<24x32xbf16>
    %cst_113 = arith.constant dense<0.000000e+00> : vector<24x32xf32>
    %240 = tpu.matmul %238, %239, %cst_113 {dimension_numbers = #tpu.dot_dimension_numbers<[1], [0], [0], [1], [0, 0, 1, 1], [], []>} : vector<24x24xbf16>, vector<24x32xbf16>, vector<24x32xf32> -> vector<24x32xf32>
    %241 = tpu.concatenate %237, %240 in 0 : vector<24x32xf32>, vector<24x32xf32> -> vector<48x32xf32>
    %242 = vector.extract_strided_slice %234 {offsets = [48, 0], sizes = [24, 24], strides = [1, 1]} : vector<96x24xbf16> to vector<24x24xbf16>
    %243 = vector.extract_strided_slice %206 {offsets = [0, 160], sizes = [24, 32], strides = [1, 1]} : vector<48x192xbf16> to vector<24x32xbf16>
    %cst_114 = arith.constant dense<0.000000e+00> : vector<24x32xf32>
    %244 = tpu.matmul %242, %243, %cst_114 {dimension_numbers = #tpu.dot_dimension_numbers<[1], [0], [0], [1], [0, 0, 1, 1], [], []>} : vector<24x24xbf16>, vector<24x32xbf16>, vector<24x32xf32> -> vector<24x32xf32>
    %245 = vector.extract_strided_slice %234 {offsets = [72, 0], sizes = [24, 24], strides = [1, 1]} : vector<96x24xbf16> to vector<24x24xbf16>
    %246 = vector.extract_strided_slice %206 {offsets = [24, 160], sizes = [24, 32], strides = [1, 1]} : vector<48x192xbf16> to vector<24x32xbf16>
    %cst_115 = arith.constant dense<0.000000e+00> : vector<24x32xf32>
    %247 = tpu.matmul %245, %246, %cst_115 {dimension_numbers = #tpu.dot_dimension_numbers<[1], [0], [0], [1], [0, 0, 1, 1], [], []>} : vector<24x24xbf16>, vector<24x32xbf16>, vector<24x32xf32> -> vector<24x32xf32>
    %248 = tpu.concatenate %244, %247 in 0 : vector<24x32xf32>, vector<24x32xf32> -> vector<48x32xf32>
    %249 = tpu.concatenate %241, %248 in 1 : vector<48x32xf32>, vector<48x32xf32> -> vector<48x64xf32>
    %250 = arith.truncf %249 : vector<48x64xf32> to vector<48x64xbf16>
    %c1_116 = arith.constant 1 : index
    %c0_117 = arith.constant 0 : index
    %c0_118 = arith.constant 0 : index
    %251 = vector.load %arg9[%c1_116, %c0_117, %c0_118] : memref<2x64x64xbf16, #tpu.memory_space<vmem>>, vector<1x64x64xbf16>
    %252 = vector.shape_cast %251 : vector<1x64x64xbf16> to vector<64x64xbf16>
    %cst_119 = arith.constant dense<0.000000e+00> : vector<48x64xf32>
    %253 = tpu.matmul %250, %252, %cst_119 {dimension_numbers = #tpu.dot_dimension_numbers<[1], [0], [0], [1], [0, 0, 1, 1], [], []>} : vector<48x64xbf16>, vector<64x64xbf16>, vector<48x64xf32> -> vector<48x64xf32>
    %254 = arith.addf %171, %253 : vector<48x64xf32>
    %c1_120 = arith.constant 1 : index
    %c0_121 = arith.constant 0 : index
    %c0_122 = arith.constant 0 : index
    %255 = vector.load %arg10[%c1_120, %c0_121, %c0_122] : memref<2x1x64xf32, #tpu.memory_space<vmem>>, vector<1x1x64xf32>
    %256 = vector.shape_cast %255 : vector<1x1x64xf32> to vector<1x64xf32>
    %257 = vector.broadcast %256 : vector<1x64xf32> to vector<48x64xf32>
    %258 = arith.addf %254, %257 : vector<48x64xf32>
    %c1_123 = arith.constant 1 : index
    %c0_124 = arith.constant 0 : index
    %c0_125 = arith.constant 0 : index
    %259 = vector.load %arg11[%c1_123, %c0_124, %c0_125] : memref<2x1x64xf32, #tpu.memory_space<vmem>>, vector<1x1x64xf32>
    %260 = vector.shape_cast %259 : vector<1x1x64xf32> to vector<1x64xf32>
    %c1_126 = arith.constant 1 : index
    %c0_127 = arith.constant 0 : index
    %c0_128 = arith.constant 0 : index
    %261 = vector.load %arg12[%c1_126, %c0_127, %c0_128] : memref<2x1x64xf32, #tpu.memory_space<vmem>>, vector<1x1x64xf32>
    %262 = vector.shape_cast %261 : vector<1x1x64xf32> to vector<1x64xf32>
    %cst_129 = arith.constant dense<0.000000e+00> : vector<48xf32>
    %263 = vector.multi_reduction <add>, %258, %cst_129 [1] : vector<48x64xf32> to vector<48xf32>
    %264 = vector.shape_cast %263 : vector<48xf32> to vector<48x1xf32>
    %cst_130 = arith.constant 6.400000e+01 : f32
    %265 = vector.broadcast %cst_130 : f32 to vector<48x1xf32>
    %266 = arith.divf %264, %265 : vector<48x1xf32>
    %267 = vector.broadcast %266 : vector<48x1xf32> to vector<48x64xf32>
    %268 = arith.subf %258, %267 : vector<48x64xf32>
    %269 = arith.mulf %268, %268 : vector<48x64xf32>
    %cst_131 = arith.constant dense<0.000000e+00> : vector<48xf32>
    %270 = vector.multi_reduction <add>, %269, %cst_131 [1] : vector<48x64xf32> to vector<48xf32>
    %271 = vector.shape_cast %270 : vector<48xf32> to vector<48x1xf32>
    %cst_132 = arith.constant 6.400000e+01 : f32
    %272 = vector.broadcast %cst_132 : f32 to vector<48x1xf32>
    %273 = arith.divf %271, %272 : vector<48x1xf32>
    %274 = vector.broadcast %266 : vector<48x1xf32> to vector<48x64xf32>
    %275 = arith.subf %258, %274 : vector<48x64xf32>
    %cst_133 = arith.constant 9.99999997E-7 : f32
    %276 = vector.broadcast %cst_133 : f32 to vector<48x1xf32>
    %277 = arith.addf %273, %276 : vector<48x1xf32>
    %278 = math.rsqrt %277 : vector<48x1xf32>
    %279 = vector.broadcast %278 : vector<48x1xf32> to vector<48x64xf32>
    %280 = arith.mulf %275, %279 : vector<48x64xf32>
    %281 = vector.broadcast %260 : vector<1x64xf32> to vector<48x64xf32>
    %282 = arith.mulf %280, %281 : vector<48x64xf32>
    %283 = vector.broadcast %262 : vector<1x64xf32> to vector<48x64xf32>
    %284 = arith.addf %282, %283 : vector<48x64xf32>
    %285 = arith.truncf %284 : vector<48x64xf32> to vector<48x64xbf16>
    %c1_134 = arith.constant 1 : index
    %c0_135 = arith.constant 0 : index
    %c0_136 = arith.constant 0 : index
    %286 = vector.load %arg13[%c1_134, %c0_135, %c0_136] : memref<2x64x256xbf16, #tpu.memory_space<vmem>>, vector<1x64x256xbf16>
    %287 = vector.shape_cast %286 : vector<1x64x256xbf16> to vector<64x256xbf16>
    %cst_137 = arith.constant dense<0.000000e+00> : vector<48x256xf32>
    %288 = tpu.matmul %285, %287, %cst_137 {dimension_numbers = #tpu.dot_dimension_numbers<[1], [0], [0], [1], [0, 0, 1, 1], [], []>} : vector<48x64xbf16>, vector<64x256xbf16>, vector<48x256xf32> -> vector<48x256xf32>
    %c1_138 = arith.constant 1 : index
    %c0_139 = arith.constant 0 : index
    %c0_140 = arith.constant 0 : index
    %289 = vector.load %arg14[%c1_138, %c0_139, %c0_140] : memref<2x1x256xf32, #tpu.memory_space<vmem>>, vector<1x1x256xf32>
    %290 = vector.shape_cast %289 : vector<1x1x256xf32> to vector<1x256xf32>
    %291 = vector.broadcast %290 : vector<1x256xf32> to vector<48x256xf32>
    %292 = arith.addf %288, %291 : vector<48x256xf32>
    %cst_141 = arith.constant 5.000000e-01 : f32
    %293 = vector.broadcast %cst_141 : f32 to vector<48x256xf32>
    %294 = arith.mulf %293, %292 : vector<48x256xf32>
    %cst_142 = arith.constant 2.000000e+00 : f32
    %295 = math.sqrt %cst_142 : f32
    %cst_143 = arith.constant 1.000000e+00 : f32
    %296 = arith.divf %cst_143, %295 : f32
    %297 = vector.broadcast %296 : f32 to vector<48x256xf32>
    %298 = arith.mulf %292, %297 : vector<48x256xf32>
    %299 = math.erf %298 : vector<48x256xf32>
    %cst_144 = arith.constant 1.000000e+00 : f32
    %300 = vector.broadcast %cst_144 : f32 to vector<48x256xf32>
    %301 = arith.addf %300, %299 : vector<48x256xf32>
    %302 = arith.mulf %294, %301 : vector<48x256xf32>
    %303 = arith.truncf %302 : vector<48x256xf32> to vector<48x256xbf16>
    %c1_145 = arith.constant 1 : index
    %c0_146 = arith.constant 0 : index
    %c0_147 = arith.constant 0 : index
    %304 = vector.load %arg15[%c1_145, %c0_146, %c0_147] : memref<2x256x64xbf16, #tpu.memory_space<vmem>>, vector<1x256x64xbf16>
    %305 = vector.shape_cast %304 : vector<1x256x64xbf16> to vector<256x64xbf16>
    %cst_148 = arith.constant dense<0.000000e+00> : vector<48x64xf32>
    %306 = tpu.matmul %303, %305, %cst_148 {dimension_numbers = #tpu.dot_dimension_numbers<[1], [0], [0], [1], [0, 0, 1, 1], [], []>} : vector<48x256xbf16>, vector<256x64xbf16>, vector<48x64xf32> -> vector<48x64xf32>
    %c1_149 = arith.constant 1 : index
    %c0_150 = arith.constant 0 : index
    %c0_151 = arith.constant 0 : index
    %307 = vector.load %arg16[%c1_149, %c0_150, %c0_151] : memref<2x1x64xf32, #tpu.memory_space<vmem>>, vector<1x1x64xf32>
    %308 = vector.shape_cast %307 : vector<1x1x64xf32> to vector<1x64xf32>
    %309 = vector.broadcast %308 : vector<1x64xf32> to vector<48x64xf32>
    %310 = arith.addf %306, %309 : vector<48x64xf32>
    %311 = arith.addf %258, %310 : vector<48x64xf32>
    %c0_152 = arith.constant 0 : index
    %c0_153 = arith.constant 0 : index
    %312 = vector.load %arg17[%c0_152, %c0_153] : memref<1x64xf32, #tpu.memory_space<vmem>>, vector<1x64xf32>
    %c0_154 = arith.constant 0 : index
    %c0_155 = arith.constant 0 : index
    %313 = vector.load %arg18[%c0_154, %c0_155] : memref<1x64xf32, #tpu.memory_space<vmem>>, vector<1x64xf32>
    %cst_156 = arith.constant dense<0.000000e+00> : vector<48xf32>
    %314 = vector.multi_reduction <add>, %311, %cst_156 [1] : vector<48x64xf32> to vector<48xf32>
    %315 = vector.shape_cast %314 : vector<48xf32> to vector<48x1xf32>
    %cst_157 = arith.constant 6.400000e+01 : f32
    %316 = vector.broadcast %cst_157 : f32 to vector<48x1xf32>
    %317 = arith.divf %315, %316 : vector<48x1xf32>
    %318 = vector.broadcast %317 : vector<48x1xf32> to vector<48x64xf32>
    %319 = arith.subf %311, %318 : vector<48x64xf32>
    %320 = arith.mulf %319, %319 : vector<48x64xf32>
    %cst_158 = arith.constant dense<0.000000e+00> : vector<48xf32>
    %321 = vector.multi_reduction <add>, %320, %cst_158 [1] : vector<48x64xf32> to vector<48xf32>
    %322 = vector.shape_cast %321 : vector<48xf32> to vector<48x1xf32>
    %cst_159 = arith.constant 6.400000e+01 : f32
    %323 = vector.broadcast %cst_159 : f32 to vector<48x1xf32>
    %324 = arith.divf %322, %323 : vector<48x1xf32>
    %325 = vector.broadcast %317 : vector<48x1xf32> to vector<48x64xf32>
    %326 = arith.subf %311, %325 : vector<48x64xf32>
    %cst_160 = arith.constant 9.99999997E-7 : f32
    %327 = vector.broadcast %cst_160 : f32 to vector<48x1xf32>
    %328 = arith.addf %324, %327 : vector<48x1xf32>
    %329 = math.rsqrt %328 : vector<48x1xf32>
    %330 = vector.broadcast %329 : vector<48x1xf32> to vector<48x64xf32>
    %331 = arith.mulf %326, %330 : vector<48x64xf32>
    %332 = vector.broadcast %312 : vector<1x64xf32> to vector<48x64xf32>
    %333 = arith.mulf %331, %332 : vector<48x64xf32>
    %334 = vector.broadcast %313 : vector<1x64xf32> to vector<48x64xf32>
    %335 = arith.addf %333, %334 : vector<48x64xf32>
    %336 = arith.truncf %335 : vector<48x64xf32> to vector<48x64xbf16>
    %c0_161 = arith.constant 0 : index
    %c0_162 = arith.constant 0 : index
    %337 = vector.load %arg19[%c0_161, %c0_162] : memref<64x128xbf16, #tpu.memory_space<vmem>>, vector<64x128xbf16>
    %cst_163 = arith.constant dense<0.000000e+00> : vector<48x128xf32>
    %338 = tpu.matmul %336, %337, %cst_163 {dimension_numbers = #tpu.dot_dimension_numbers<[1], [0], [0], [1], [0, 0, 1, 1], [], []>} : vector<48x64xbf16>, vector<64x128xbf16>, vector<48x128xf32> -> vector<48x128xf32>
    %c0_164 = arith.constant 0 : index
    %c0_165 = arith.constant 0 : index
    %339 = vector.load %arg20[%c0_164, %c0_165] : memref<1x128xf32, #tpu.memory_space<vmem>>, vector<1x128xf32>
    %340 = vector.broadcast %339 : vector<1x128xf32> to vector<48x128xf32>
    %341 = arith.addf %338, %340 : vector<48x128xf32>
    %c0_166 = arith.constant 0 : index
    %c0_167 = arith.constant 0 : index
    %342 = vector.load %arg21[%c0_166, %c0_167] : memref<48x128xf32, #tpu.memory_space<vmem>>, vector<48x128xf32>
    tpu.vector_store %arg21[%c0_166, %c0_167], %341 {strides = array<i32>} : memref<48x128xf32, #tpu.memory_space<vmem>>, vector<48x128xf32>,
    return
  }
}

</mosaic_0001>

<bundles_post_ra>
// kernel: vit_forward.1
= control target key start
LH: loop header
LB: loop body
LE: loop exit
PB: predicated region body
PF: predicated region fallthrough
CT: control target
= control target key end

     0   :  { %vm200_vm0 = vcmask 523264   ;;  %v4644_v0 = vmov 0   ;;  %v4645_v2 = vmov 0.0   ;;  %vm263_vm1 = vcmask 516096   ;;  %s4646_s25 = smov 64   ;;  %s4647_s27 = smov 32   ;;  %s5949_s1 = inlined_call_operand.vmem [shape: bf16[192,64], index: 1, kind: input, shape index: {}]   ;;  %s5950_s0 = inlined_call_operand.vmem [shape: f32[32,192], index: 0, kind: input, shape index: {}]   ;;  %s5951_s3 = inlined_call_operand.vmem [shape: f32[1,64], index: 3, kind: input, shape index: {}]   ;;  %s5952_s4 = inlined_call_operand.vmem [shape: f32[48,64], index: 4, kind: input, shape index: {}]   ;;  %s5953_s2 = inlined_call_operand.vmem [shape: f32[1,64], index: 2, kind: input, shape index: {}]   ;;  %s5954_s7 = inlined_call_operand.vmem [shape: bf16[2,64,192], index: 7, kind: input, shape index: {}]   ;;  %s5955_s5 = inlined_call_operand.vmem [shape: f32[2,1,64], index: 5, kind: input, shape index: {}]   ;;  %s5956_s6 = inlined_call_operand.vmem [shape: f32[2,1,64], index: 6, kind: input, shape index: {}]   ;;  %s5957_s8 = inlined_call_operand.vmem [shape: f32[2,1,192], index: 8, kind: input, shape index: {}]   ;;  %s5958_s9 = inlined_call_operand.vmem [shape: bf16[2,64,64], index: 9, kind: input, shape index: {}]   ;;  %s5959_s10 = inlined_call_operand.vmem [shape: f32[2,1,64], index: 10, kind: input, shape index: {}]   ;;  %s5960_s13 = inlined_call_operand.vmem [shape: bf16[2,64,256], index: 13, kind: input, shape index: {}]   ;;  %s5961_s11 = inlined_call_operand.vmem [shape: f32[2,1,64], index: 11, kind: input, shape index: {}]   ;;  %s5962_s12 = inlined_call_operand.vmem [shape: f32[2,1,64], index: 12, kind: input, shape index: {}]   ;;  %s5963_s15 = inlined_call_operand.vmem [shape: bf16[2,256,64], index: 15, kind: input, shape index: {}]   ;;  %s5964_s14 = inlined_call_operand.vmem [shape: f32[2,1,256], index: 14, kind: input, shape index: {}]   ;;  %s5965_s16 = inlined_call_operand.vmem [shape: f32[2,1,64], index: 16, kind: input, shape index: {}]   ;;  %s5966_s19 = inlined_call_operand.vmem [shape: bf16[64,128], index: 19, kind: input, shape index: {}]   ;;  %s5967_s17 = inlined_call_operand.vmem [shape: f32[1,64], index: 17, kind: input, shape index: {}]   ;;  %s5968_s18 = inlined_call_operand.vmem [shape: f32[1,64], index: 18, kind: input, shape index: {}]   ;;  %s5969_s20 = inlined_call_operand.vmem [shape: f32[1,128], index: 20, kind: input, shape index: {}]   ;;  %s5970_s21 = inlined_call_operand.vmem [shape: f32[48,128], index: 21, kind: output, shape index: {}]  }
   0x1   :  { %5975 = sst [smem:[#allocation3_spill]] %s5949_s1  ;;  %207 = vmatprep.subr.bf16.mxu0 %v4644_v0  ;;  %256 = vst.msk [vmem:[#allocation2] sm:$0xff] %vm200_vm0, %v4645_v2  ;;  %257 = vst.msk [vmem:[#allocation2 + $0x8] sm:$0xff] %vm200_vm0, %v4645_v2  ;;  %503 = vmatprep.mubr.bf16.mxu1 %v4644_v0  ;;  %vm546_vm2 = vcmask 261120   ;;  %vm608_vm3 = vcmask 1043456   ;;  %vm836_vm7 = vcmask 195584  }
   0x2   :  { %5976 = sst [smem:[#allocation4_spill]] %s5950_s0  ;;  %258 = vst.msk [vmem:[#allocation2 + $0x10] sm:$0xff] %vm200_vm0, %v4645_v2  ;;  %259 = vst.msk [vmem:[#allocation2 + $0x18] sm:$0xff] %vm200_vm0, %v4645_v2  ;;  %vm4650_vm8 = vmmov 0  }
   0x3   :  { %5977 = sst [smem:[#allocation5_spill]] %s5951_s3  ;;  %260 = vst.msk [vmem:[#allocation2 + $0x20] sm:$0xff] %vm200_vm0, %v4645_v2  ;;  %261 = vst.msk [vmem:[#allocation2 + $0x28] sm:$0xff] %vm200_vm0, %v4645_v2 }
   0x4   :  { %5978 = sst [smem:[#allocation6_spill]] %s5952_s4 }
   0x5   :  { %5979 = sst [smem:[#allocation7_spill]] %s5953_s2 }
   0x6   :  { %5980 = sst [smem:[#allocation8_spill]] %s5954_s7 }
   0x7   :  { %s5981_s26 = sld [smem:[#allocation3_spill]] }
   0x8   :  { %s5982_s22 = sld [smem:[#allocation4_spill]] }
   0x9   :  { %s5983_s4 = sld [smem:[#allocation5_spill]] }
   0xa   :  { %s5984_s30 = sld [smem:[#allocation6_spill]] }
   0xb   :  { %s5985_s23 = sld [smem:[#allocation7_spill]] }
   0xd   :  { %v4336_v1 = vld [vmem:[%s5981_s26 + $0x38] sm:$0xff]   ;;  %v4337_v3 = vld [vmem:[%s5981_s26 + $0x30] sm:$0xff]   ;;  %v4338_v4 = vld [vmem:[%s5981_s26 + $0x28] sm:$0xff]  }
   0xe   :  { %208 = vmatpush1.bf16.msra.mxu0 %v4336_v1  ;;  %v4339_v5 = vld [vmem:[%s5981_s26 + $0x20] sm:$0xff]   ;;  %v70_v6 = vld [vmem:[%s5982_s22 + $0x8] sm:$0xff]  ;;  %v72_v7 = vld [vmem:[%s5982_s22 + $0x18] sm:$0xff] }
   0xf   :  { %209 = vmatprep.subr.bf16.mxu0 %v4644_v0  ;;  %v3704_v8 = vadd.f32 -0.5, %v70_v6  ;;  %v3706_v9 = vadd.f32 -0.5, %v72_v7  ;;  %v4340_v10 = vld [vmem:[%s5981_s26 + $0x18] sm:$0xff]   ;;  %v262_v13 = vld [vmem:[%s5983_s4] sm:$0x1]  ;;  %v4341_v15 = vld [vmem:[%s5981_s26 + $0x10] sm:$0xff]  }
  0x10   :  { %264 = vst.msk [vmem:[#allocation2] sm:$0x1] %vm263_vm1, %v262_v13  ;;  %267 = vst.msk [vmem:[#allocation2 + $0x18] sm:$0x1] %vm263_vm1, %v262_v13  ;;  %v276_v16 = vld [vmem:[%s5984_s30] sm:$0xff]  ;;  %v4342_v17 = vld [vmem:[%s5981_s26 + $0x8] sm:$0xff]  }
  0x11   :  { %v86_v11 = vmul.f32 2.0, %v3704_v8  ;;  %v88_v12 = vmul.f32 2.0, %v3706_v9  ;;  %v4343_v20 = vld [vmem:[%s5981_s26] sm:$0xff]   ;;  %v4344_v22 = vld [vmem:[%s5981_s26 + $0x58] sm:$0xff]   ;;  %v4345_v23 = vld [vmem:[%s5981_s26 + $0x50] sm:$0xff]   ;;  %s4648_s4 = smov 96  }
  0x12   :  { %210 = vmatpush1.bf16.msra.mxu0 %v4337_v3  ;;  %v69_v24 = vld [vmem:[%s5982_s22] sm:$0xff]  ;;  %v71_v25 = vld [vmem:[%s5982_s22 + $0x10] sm:$0xff]  ;;  %v74_v26 = vld [vmem:[%s5982_s22 + $0x28] sm:$0xff] }
  0x13   :  { %211 = vmatprep.subr.bf16.mxu0 %v4644_v0  ;;  %v94_v14 = vpack.c.bf16 %v88_v12, %v86_v11  ;;  %v76_v27 = vld [vmem:[%s5982_s22 + $0x38] sm:$0xff]  ;;  %v3703_v28 = vadd.f32 -0.5, %v69_v24  ;;  %v3705_v29 = vadd.f32 -0.5, %v71_v25  ;;  %v4346_v30 = vld [vmem:[%s5981_s26 + $0x48] sm:$0xff]   ;;  %v3708_v31 = vadd.f32 -0.5, %v74_v26  ;;  %v4347_v35 = vld [vmem:[%s5981_s26 + $0x40] sm:$0xff]  }
  0x14   :  { %v3710_v32 = vadd.f32 -0.5, %v76_v27  ;;  %v73_v38 = vld [vmem:[%s5982_s22 + $0x20] sm:$0xff]  ;;  %v75_v39 = vld [vmem:[%s5982_s22 + $0x30] sm:$0xff]  ;;  %v277_v55 = vld [vmem:[%s5984_s30 + $0x8] sm:$0xff]  ;;  %s5986_s26 = sld [smem:[#allocation8_spill]] }
  0x15   :  { %3724 = vmatprep.mubr.msk.bf16.mxu0 %vm200_vm0, %v94_v14  ;;  %v85_v33 = vmul.f32 2.0, %v3703_v28  ;;  %v87_v34 = vmul.f32 2.0, %v3705_v29  ;;  %v90_v36 = vmul.f32 2.0, %v3708_v31  ;;  %v3707_v41 = vadd.f32 -0.5, %v73_v38  ;;  %v3711_v47 = vld [vmem:[%s5985_s23] ss:$0 sm:$0xff] }
  0x16   :  { %212 = vmatpush1.bf16.msra.mxu0 %v4338_v4  ;;  %v92_v37 = vmul.f32 2.0, %v3710_v32  ;;  %v3709_v42 = vadd.f32 -0.5, %v75_v39  ;;  %v278_v63 = vld [vmem:[%s5984_s30 + $0x10] sm:$0xff]  ;;  %v279_v3 = vld [vmem:[%s5984_s30 + $0x18] sm:$0xff]  ;;  %v280_v11 = vld [vmem:[%s5984_s30 + $0x20] sm:$0xff] }
  0x17   :  { %213 = vmatprep.subr.bf16.mxu0 %v4644_v0  ;;  %v270_v18 = vld [vmem:[#allocation2] sm:$0xff]  ;;  %v93_v40 = vpack.c.bf16 %v87_v34, %v85_v33  ;;  %v89_v44 = vmul.f32 2.0, %v3707_v41  ;;  %v273_v1 = vld [vmem:[#allocation2 + $0x18] sm:$0xff] }
  0x18   :  { %v4815_v19 = vadd.f32 %v276_v16, %v270_v18  ;;  %v96_v43 = vpack.c.bf16 %v92_v37, %v90_v36  ;;  %v91_v45 = vmul.f32 2.0, %v3709_v42 }
  0x1a   :  { %214 = vmatpush1.bf16.msra.mxu0 %v4339_v5  ;;  %v296_v21 = vsel %vm200_vm0, %v4815_v19, 0.0  ;;  %v95_v46 = vpack.c.bf16 %v91_v45, %v89_v44 }
  0x1b   :  { %215 = vmatprep.subr.bf16.mxu0 %v4644_v0  ;;  %297 = vadd.xlane.f32.xlu0 %v296_v21 }
  0x1e   :  { %216 = vmatpush1.bf16.msra.mxu0 %v4340_v10  ;;  %v4883_v10 = vadd.f32 %v279_v3, %v273_v1 }
  0x1f   :  { %217 = vmatprep.subr.bf16.mxu0 %v4644_v0 }
  0x20   :  { %v305_v14 = vsel %vm200_vm0, %v4883_v10, 0.0 }
  0x22   :  { %218 = vmatpush1.bf16.msra.mxu0 %v4341_v15 }
  0x23   :  { %219 = vmatprep.subr.bf16.mxu0 %v4644_v0 }
  0x26   :  { %220 = vmatpush1.bf16.msra.mxu0 %v4342_v17  ;;  %v281_v17 = vld [vmem:[%s5984_s30 + $0x28] sm:$0xff] }
  0x27   :  { %221 = vmatprep.subr.bf16.mxu0 %v4644_v0 }
  0x2a   :  { %222 = vmatpush1.bf16.msra.mxu0 %v4343_v20 }
  0x2b   :  { %231 = vmatprep.subr.bf16.mxu0 %v4644_v0 }
  0x2e   :  { %232 = vmatpush2.bf16.msra.mxu0 %v4344_v22 }
  0x2f   :  { %233 = vmatprep.subr.bf16.mxu0 %v4644_v0 }
  0x32   :  { %234 = vmatpush2.bf16.msra.mxu0 %v4345_v23 }
  0x33   :  { %235 = vmatprep.subr.bf16.mxu0 %v4644_v0 }
  0x36   :  { %236 = vmatpush2.bf16.msra.mxu0 %v4346_v30 }
  0x37   :  { %237 = vmatprep.subr.bf16.mxu0 %v4644_v0 }
  0x3a   :  { %238 = vmatpush2.bf16.msra.mxu0 %v4347_v35 }
  0x3d   :  { %240 = vmatmul.mubr.bf16.vlgmr.msra.gmra.mxu0 %v93_v40 }
  0x3e   :  { %3725 = vmatprep.mubr.msk.bf16.mxu0 %vm200_vm0, %v96_v43 }
  0x45   :  { %248 = vmatmul.mubr.bf16.gmra.mxu0 %v95_v46 }
  0xa4   :  { %v298_v56 = vpop.xlane.xlu0 %297 }
  0xa5   :  { %v315_v61 = vmul.f32 0.015625, %v298_v56  ;;  %v4359_v56 = vld [vmem:[%s5986_s26] ss:$8 sps:$4 sm:$0xff]  }
  0xa7   :  { %v4879_v8 = vsub.f32 %v4815_v19, %v315_v61 }
  0xa9   :  { %v327_v16 = vmul.f32 %v4879_v8, %v4879_v8 }
  0xab   :  { %v333_v22 = vsel %vm200_vm0, %v327_v16, 0.0 }
  0xfd   :  { %v241_v48 = vpop.f32.mrf.mxu0 }
  0xfe   :  { %v242_v49 = vadd.f32 %v3711_v47, %v241_v48 }
  0xff   :  { %v243_v50 = vpop.f32.mrf.mxu0 }
 0x100   :  { %265 = vst.msk [vmem:[#allocation2 + $0x8] sm:$0xff] %vm200_vm0, %v242_v49  ;;  %v4348_v49 = vld [vmem:[%s5986_s26 + $0x34] ss:$8 sps:$4 sm:$0xff]   ;;  %v4350_v50 = vld [vmem:[%s5986_s26 + $0x30] ss:$8 sps:$4 sm:$0xff]  }
 0x101   :  { %v244_v51 = vpop.f32.mrf.mxu0  ;;  %479 = vmatprep.subr.bf16.mxu1 %v4348_v49 }
 0x102   :  { %v245_v52 = vadd.f32 %v3711_v47, %v244_v51  ;;  %480 = vmatpush1.bf16.msra.mxu1 %v4350_v50  ;;  %v4351_v51 = vld [vmem:[%s5986_s26 + $0x24] ss:$8 sps:$4 sm:$0xff]   ;;  %v288_v50 = vlaneseq }
 0x103   :  { %v246_v53 = vpop.f32.mrf.mxu0  ;;  %481 = vmatprep.subr.bf16.mxu1 %v4351_v51 }
 0x104   :  { %266 = vst.msk [vmem:[#allocation2 + $0x10] sm:$0xff] %vm200_vm0, %v245_v52  ;;  %v4353_v52 = vld [vmem:[%s5986_s26 + $0x20] ss:$8 sps:$4 sm:$0xff]   ;;  %v4354_v53 = vld [vmem:[%s5986_s26 + $0x14] ss:$8 sps:$4 sm:$0xff]   ;;  %v413_v51 = vshrl.u32 %v288_v50, 7 }
 0x105   :  { %v249_v54 = vpop.f32.mrf.mxu0 }
 0x106   :  { %v250_v57 = vadd.f32 %v3711_v47, %v249_v54  ;;  %482 = vmatpush1.bf16.msra.mxu1 %v4353_v52  ;;  %v4356_v54 = vld [vmem:[%s5986_s26 + $0x10] ss:$8 sps:$4 sm:$0xff]   ;;  %v4978_v52 = vsub.s32 0, %v413_v51 }
 0x107   :  { %v251_v58 = vpop.f32.mrf.mxu0  ;;  %v271_v59 = vld [vmem:[#allocation2 + $0x8] sm:$0xff]  ;;  %483 = vmatprep.subr.bf16.mxu1 %v4354_v53 }
 0x108   :  { %268 = vst.msk [vmem:[#allocation2 + $0x20] sm:$0xff] %vm200_vm0, %v250_v57  ;;  %v4867_v60 = vadd.f32 %v277_v55, %v271_v59  ;;  %v4357_v55 = vld [vmem:[%s5986_s26 + $0x4] ss:$8 sps:$4 sm:$0xff]  }
 0x109   :  { %v252_v62 = vpop.f32.mrf.mxu0 }
 0x10a   :  { %v253_v4 = vadd.f32 %v3711_v47, %v252_v62  ;;  %v299_v5 = vsel %vm200_vm0, %v4867_v60, 0.0  ;;  %484 = vmatpush1.bf16.msra.mxu1 %v4356_v54 }
 0x10b   :  { %300 = vadd.xlane.f32.xlu0 %v299_v5  ;;  %v254_v6 = vpop.f32.mrf.mxu0  ;;  %v272_v7 = vld [vmem:[#allocation2 + $0x10] sm:$0xff]  ;;  %485 = vmatprep.subr.bf16.mxu1 %v4357_v55 }
 0x10c   :  { %269 = vst.msk [vmem:[#allocation2 + $0x28] sm:$0xff] %vm200_vm0, %v253_v4  ;;  %v4881_v9 = vadd.f32 %v278_v63, %v272_v7 }
 0x10e   :  { %v302_v12 = vsel %vm200_vm0, %v4881_v9, 0.0  ;;  %486 = vmatpush1.bf16.msra.mxu1 %v4359_v56 }
 0x10f   :  { %303 = vadd.xlane.f32.xlu1 %v302_v12  ;;  %v274_v13 = vld [vmem:[#allocation2 + $0x20] sm:$0xff] }
 0x110   :  { %v4892_v15 = vadd.f32 %v280_v11, %v274_v13 }
 0x112   :  { %v308_v18 = vsel %vm200_vm0, %v4892_v15, 0.0 }
 0x113   :  { %306 = vadd.xlane.f32.xlu1 %v305_v14  ;;  %309 = vadd.xlane.f32.xlu0 %v308_v18  ;;  %v275_v20 = vld [vmem:[#allocation2 + $0x28] sm:$0xff] }
 0x114   :  { %v4901_v21 = vadd.f32 %v281_v17, %v275_v20 }
 0x116   :  { %v311_v23 = vsel %vm200_vm0, %v4901_v21, 0.0 }
 0x117   :  { %312 = vadd.xlane.f32.xlu1 %v311_v23  ;;  %334 = vadd.xlane.f32.xlu0 %v333_v22  ;;  %v3726_v22 = vld [vmem:[%s5955_s5] ss:$0 sm:$0xff] }
 0x194   :  { %v301_v24 = vpop.xlane.xlu0 %300 }
 0x195   :  { %v316_v25 = vmul.f32 0.015625, %v301_v24 }
 0x197   :  { %v4907_v26 = vsub.f32 %v4867_v60, %v316_v25 }
 0x198   :  { %v304_v27 = vpop.xlane.xlu1 %303 }
 0x199   :  { %v317_v28 = vmul.f32 0.015625, %v304_v27  ;;  %v328_v29 = vmul.f32 %v4907_v26, %v4907_v26  ;;  %v3727_v27 = vld [vmem:[%s5956_s6] ss:$0 sm:$0xff] }
 0x19b   :  { %v4912_v30 = vsub.f32 %v4881_v9, %v317_v28  ;;  %v336_v31 = vsel %vm200_vm0, %v328_v29, 0.0 }
 0x19c   :  { %v307_v32 = vpop.xlane.xlu1 %306  ;;  %337 = vadd.xlane.f32.xlu1 %v336_v31  ;;  %v310_v33 = vpop.xlane.xlu0 %309 }
 0x19d   :  { %v318_v34 = vmul.f32 0.015625, %v307_v32  ;;  %v319_v35 = vmul.f32 0.015625, %v310_v33  ;;  %v329_v36 = vmul.f32 %v4912_v30, %v4912_v30 }
 0x19f   :  { %v4918_v37 = vsub.f32 %v4883_v10, %v318_v34  ;;  %v4921_v38 = vsub.f32 %v4892_v15, %v319_v35  ;;  %v339_v39 = vsel %vm200_vm0, %v329_v36, 0.0 }
 0x1a0   :  { %v313_v40 = vpop.xlane.xlu1 %312  ;;  %340 = vadd.xlane.f32.xlu0 %v339_v39  ;;  %v335_v57 = vpop.xlane.xlu0 %334 }
 0x1a1   :  { %v320_v41 = vmul.f32 0.015625, %v313_v40  ;;  %v330_v42 = vmul.f32 %v4918_v37, %v4918_v37  ;;  %v331_v43 = vmul.f32 %v4921_v38, %v4921_v38  ;;  %v351_v58 = vmul.f32 0.015625, %v335_v57 }
 0x1a3   :  { %v4929_v44 = vsub.f32 %v4901_v21, %v320_v41  ;;  %v342_v45 = vsel %vm200_vm0, %v330_v42, 0.0  ;;  %v345_v46 = vsel %vm200_vm0, %v331_v43, 0.0  ;;  %v357_v59 = vadd.f32 1e-06, %v351_v58 }
 0x1a4   :  { %343 = vadd.xlane.f32.xlu1 %v342_v45  ;;  %346 = vadd.xlane.f32.xlu0 %v345_v46 }
 0x1a5   :  { %v332_v47 = vmul.f32 %v4929_v44, %v4929_v44  ;;  %4440 = vrsqrt.f32 %v357_v59 }
 0x1a7   :  { %v348_v48 = vsel %vm200_vm0, %v332_v47, 0.0 }
 0x1a8   :  { %349 = vadd.xlane.f32.xlu1 %v348_v48 }
 0x1b2   :  { %v4441_v14 = vpop.eup %4440 }
 0x1b3   :  { %v369_v20 = vmul.f32 %v4441_v14, %v4879_v8 }
 0x1b5   :  { %v381_v25 = vmul.f32 %v3726_v22, %v369_v20 }
 0x1b7   :  { %v393_v31 = vadd.f32 %v3727_v27, %v381_v25 }
 0x225   :  { %v338_v61 = vpop.xlane.xlu1 %337 }
 0x226   :  { %v352_v62 = vmul.f32 0.015625, %v338_v61 }
 0x228   :  { %v358_v63 = vadd.f32 1e-06, %v352_v62 }
 0x229   :  { %v341_v1 = vpop.xlane.xlu0 %340 }
 0x22a   :  { %4442 = vrsqrt.f32 %v358_v63  ;;  %v353_v3 = vmul.f32 0.015625, %v341_v1 }
 0x22c   :  { %v359_v4 = vadd.f32 1e-06, %v353_v3 }
 0x22d   :  { %v344_v5 = vpop.xlane.xlu1 %343  ;;  %v347_v6 = vpop.xlane.xlu0 %346 }
 0x22e   :  { %4444 = vrsqrt.f32 %v359_v4  ;;  %v354_v7 = vmul.f32 0.015625, %v344_v5  ;;  %v355_v11 = vmul.f32 0.015625, %v347_v6 }
 0x230   :  { %v360_v12 = vadd.f32 1e-06, %v354_v7  ;;  %v361_v13 = vadd.f32 1e-06, %v355_v11 }
 0x231   :  { %v350_v16 = vpop.xlane.xlu1 %349 }
 0x232   :  { %4446 = vrsqrt.f32 %v360_v12  ;;  %v356_v17 = vmul.f32 0.015625, %v350_v16 }
 0x233   :  { %4448 = vrsqrt.f32 %v361_v13 }
 0x234   :  { %v362_v18 = vadd.f32 1e-06, %v356_v17 }
 0x236   :  { %4450 = vrsqrt.f32 %v362_v18 }
 0x237   :  { %v4443_v23 = vpop.eup %4442 }
 0x238   :  { %v370_v24 = vmul.f32 %v4443_v23, %v4907_v26 }
 0x23a   :  { %v382_v28 = vmul.f32 %v3726_v22, %v370_v24 }
 0x23b   :  { %v4445_v29 = vpop.eup %4444 }
 0x23c   :  { %v394_v32 = vadd.f32 %v3727_v27, %v382_v28  ;;  %v371_v33 = vmul.f32 %v4445_v29, %v4912_v30 }
 0x23e   :  { %v399_v8 = vpack.c.bf16 %v394_v32, %v393_v31  ;;  %v383_v36 = vmul.f32 %v3726_v22, %v371_v33 }
 0x23f   :  { %v4447_v34 = vpop.eup %4446 }
 0x240   :  { %3736 = vmatmul.mubr.msk.bf16.vlgmr.msra.gmra.mxu1 %vm200_vm0, %v399_v8  ;;  %v372_v35 = vmul.f32 %v4447_v34, %v4918_v37  ;;  %v4449_v39 = vpop.eup %4448  ;;  %v395_v41 = vadd.f32 %v3727_v27, %v383_v36 }
 0x241   :  { %513 = vmatprep.mubr.bf16.mxu1 %v4644_v0  ;;  %v373_v43 = vmul.f32 %v4449_v39, %v4921_v38  ;;  %v410_v38 = vld [vmem:[%s5957_s8] sm:$0x3] }
 0x242   :  { %v384_v26 = vmul.f32 %v3726_v22, %v372_v35  ;;  %v415_v54 = vrot.slane %v410_v38, %v4978_v52 }
 0x243   :  { %v4451_v40 = vpop.eup %4450  ;;  %v385_v47 = vmul.f32 %v3726_v22, %v373_v43 }
 0x244   :  { %v396_v42 = vadd.f32 %v3727_v27, %v384_v26  ;;  %v374_v45 = vmul.f32 %v4451_v40, %v4929_v44  ;;  %v4983_v44 = vsub.s32 1, %v413_v51 }
 0x245   :  { %v397_v48 = vadd.f32 %v3727_v27, %v385_v47 }
 0x246   :  { %v400_v46 = vpack.c.bf16 %v396_v42, %v395_v41  ;;  %v386_v30 = vmul.f32 %v3726_v22, %v374_v45  ;;  %v4987_v56 = vrot.slane %v410_v38, %v4983_v44 }
 0x248   :  { %3737 = vmatmul.mubr.msk.bf16.gmra.mxu1 %vm200_vm0, %v400_v46  ;;  %v398_v37 = vadd.f32 %v3727_v27, %v386_v30 }
 0x249   :  { %523 = vmatprep.mubr.bf16.mxu1 %v4644_v0 }
 0x24a   :  { %v401_v49 = vpack.c.bf16 %v398_v37, %v397_v48 }
 0x250   :  { %3738 = vmatmul.mubr.msk.bf16.gmra.mxu1 %vm200_vm0, %v401_v49 }
 0x300   :  { %v505_v53 = vpop.f32.mrf.mxu1 }
 0x301   :  { %v506_v58 = vadd.f32 %v505_v53, %v415_v54 }
 0x302   :  { %v507_v55 = vpop.f32.mrf.mxu1 }
 0x303   :  { %v508_v62 = vadd.f32 %v507_v55, %v4987_v56 }
 0x304   :  { %v509_v57 = vpop.f32.mrf.mxu1 }
 0x305   :  { %v510_v59 = vadd.f32 %v509_v57, %v415_v54  ;;  %v289_v57 = vand.u32 127, %v288_v50 }
 0x306   :  { %v511_v61 = vpop.f32.mrf.mxu1 }
 0x307   :  { %v534_v63 = vpack.c.bf16 %v510_v59, %v506_v58  ;;  %v512_v1 = vadd.f32 %v511_v61, %v4987_v56  ;;  %vm290_vm4 = vcmp.eq.s32.totalorder %v289_v57, 0  ;;  %vm291_vm5 = vcmp.ge.s32.totalorder %v289_v57, 8 }
 0x308   :  { %v515_v3 = vpop.f32.mrf.mxu1  ;;  %vm292_vm6 = vmor %vm290_vm4, %vm291_vm5  ;;  %v4649_v58 = vmov -1e+30  }
 0x309   :  { %v4991_v4 = vpack.c.bf16 %v512_v1, %v508_v62  ;;  %542 = vrot.lane.b32.xlu1 %v534_v63, %s4646_s25  ;;  %4091 = vmatprep.mubr.msk.bf16.mxu1 %vm546_vm2, %v534_v63  ;;  %v516_v7 = vadd.f32 %v515_v3, %v415_v54  ;;  %v5047_v59 = vsel %vm292_vm6, 0.0, %v4649_v58 }
 0x30a   :  { %v517_v5 = vpop.f32.mrf.mxu1 }
 0x30b   :  { %v518_v13 = vadd.f32 %v517_v5, %v4987_v56 }
 0x30c   :  { %v519_v6 = vpop.f32.mrf.mxu1 }
 0x30d   :  { %v520_v11 = vadd.f32 %v519_v6, %v415_v54 }
 0x30e   :  { %v521_v12 = vpop.f32.mrf.mxu1 }
 0x30f   :  { %v536_v14 = vpack.c.bf16 %v520_v11, %v516_v7  ;;  %v522_v16 = vadd.f32 %v521_v12, %v4987_v56 }
 0x310   :  { %v525_v17 = vpop.f32.mrf.mxu1 }
 0x311   :  { %v4997_v18 = vpack.c.bf16 %v522_v16, %v518_v13  ;;  %544 = vrot.lane.b32.xlu0 %v536_v14, %s4646_s25  ;;  %v526_v23 = vadd.f32 %v525_v17, %v415_v54  ;;  %v609_v28 = vrot.slane %v536_v14, 4 }
 0x312   :  { %v527_v20 = vpop.f32.mrf.mxu1 }
 0x313   :  { %v528_v47 = vadd.f32 %v527_v20, %v4987_v56  ;;  %v983_v51 = vsel %vm608_vm3, %v4997_v18, 0 }
 0x314   :  { %v529_v22 = vpop.f32.mrf.mxu1 }
 0x315   :  { %v530_v24 = vadd.f32 %v529_v22, %v415_v54  ;;  %682 = vrot.lane.b32.xlu0 %v536_v14, %s4647_s27 }
 0x316   :  { %v531_v45 = vpop.f32.mrf.mxu1 }
 0x317   :  { %v538_v25 = vpack.c.bf16 %v530_v24, %v526_v23  ;;  %v532_v30 = vadd.f32 %v531_v45, %v4987_v56 }
 0x319   :  { %v610_v27 = vrot.slane %v538_v25, 4  ;;  %680 = vrot.lane.b32.xlu0 %v534_v63, %s4647_s27  ;;  %v539_v49 = vpack.c.bf16 %v532_v30, %v528_v47 }
 0x31b   :  { %614 = vrot.lane.b32.xlu1 %v610_v27, %s4646_s25  ;;  %v611_v29 = vsel %vm608_vm3, %v609_v28, %v610_v27  ;;  %v5035_v38 = vrot.slane %v539_v49, 4 }
 0x31d   :  { %676 = vrot.lane.b32.xlu0 %v534_v63, %s4648_s4 }
 0x31f   :  { %612 = vrot.lane.b32.xlu1 %v611_v29, %s4646_s25 }
 0x321   :  { %744 = vrot.lane.b32.xlu0 %v611_v29, %s4648_s4 }
 0x323   :  { %750 = vrot.lane.b32.xlu1 %v610_v27, %s4647_s27 }
 0x327   :  { %748 = vrot.lane.b32.xlu1 %v611_v29, %s4647_s27 }
 0x32b   :  { %678 = vrot.lane.b32.xlu1 %v536_v14, %s4648_s4 }
 0x32f   :  { %746 = vrot.lane.b32.xlu1 %v610_v27, %s4648_s4 }
 0x37b   :  { %v543_v33 = vpop.permute.xlu1 %542 }
 0x37c   :  { %v554_v36 = vsel %vm546_vm2, %v543_v33, 0 }
 0x383   :  { %v545_v31 = vpop.permute.xlu0 %544 }
 0x384   :  { %4275 = vmatprep.subr.msk.bf16.mxu1 %vm546_vm2, %v545_v31  ;;  %v557_v32 = vsel %vm546_vm2, %v545_v31, 0 }
 0x385   :  { %4088 = vmatpush3.bf16.xpose.msra.mxu1 %v557_v32 }
 0x386   :  { %4276 = vmatprep.subr.msk.bf16.mxu1 %vm546_vm2, %v543_v33 }
 0x387   :  { %v683_v8 = vpop.permute.xlu0 %682 }
 0x388   :  { %4279 = vmatprep.subr.msk.bf16.mxu0 %vm546_vm2, %v683_v8  ;;  %v694_v34 = vsel %vm546_vm2, %v683_v8, 0 }
 0x389   :  { %4104 = vmatpush3.bf16.xpose.msra.mxu0 %v694_v34 }
 0x38b   :  { %v681_v35 = vpop.permute.xlu0 %680 }
 0x38c   :  { %4280 = vmatprep.subr.msk.bf16.mxu0 %vm546_vm2, %v681_v35  ;;  %v691_v40 = vsel %vm546_vm2, %v681_v35, 0 }
 0x38d   :  { %v615_v39 = vpop.permute.xlu1 %614  ;;  %4090 = vmatpush3.bf16.xpose.msra.mxu1 %v554_v36 }
 0x38e   :  { %4277 = vmatprep.subr.msk.bf16.mxu1 %vm546_vm2, %v615_v39  ;;  %v626_v42 = vsel %vm546_vm2, %v615_v39, 0 }
 0x38f   :  { %v677_v26 = vpop.permute.xlu0 %676 }
 0x390   :  { %4107 = vmatprep.mubr.msk.bf16.mxu0 %vm546_vm2, %v677_v26 }
 0x391   :  { %v613_v41 = vpop.permute.xlu1 %612  ;;  %4106 = vmatpush3.bf16.xpose.msra.mxu0 %v691_v40 }
 0x392   :  { %4283 = vmatprep.subr.msk.bf16.mxu0 %vm608_vm3, %v4997_v18  ;;  %v623_v37 = vsel %vm546_vm2, %v613_v41, 0 }
 0x393   :  { %v745_v53 = vpop.permute.xlu0 %744 }
 0x394   :  { %4092 = vmatmul.mubr.msk.bf16.vlgmr.msra.gmra.mxu1 %vm546_vm2, %v536_v14 }
 0x395   :  { %v751_v43 = vpop.permute.xlu1 %750  ;;  %4096 = vmatpush3.bf16.xpose.msra.mxu1 %v626_v42  ;;  %4099 = vmatprep.mubr.msk.bf16.mxu1 %vm546_vm2, %v611_v29 }
 0x396   :  { %4278 = vmatprep.subr.msk.bf16.mxu1 %vm546_vm2, %v613_v41  ;;  %v762_v54 = vsel %vm546_vm2, %v751_v43, 0 }
 0x399   :  { %v749_v46 = vpop.permute.xlu1 %748 }
 0x39a   :  { %v759_v55 = vsel %vm546_vm2, %v749_v46, 0 }
 0x39d   :  { %v679_v48 = vpop.permute.xlu1 %678  ;;  %4098 = vmatpush3.bf16.xpose.msra.mxu1 %v623_v37 }
 0x39e   :  { %4108 = vmatmul.mubr.msk.bf16.vlgmr.msra.gmra.mxu0 %vm546_vm2, %v679_v48  ;;  %4281 = vmatprep.subr.msk.bf16.mxu1 %vm546_vm2, %v751_v43 }
 0x39f   :  { %4120 = vmatpush3.bf16.msra.mxu0 %v983_v51 }
 0x3a0   :  { %4121 = vmatprep.subr.bf16.mxu0 %v4991_v4 }
 0x3a1   :  { %v747_v56 = vpop.permute.xlu1 %746 }
 0x3a3   :  { %4122 = vmatpush3.bf16.msra.mxu0 %v4991_v4 }
 0x3a4   :  { %4284 = vmatprep.subr.msk.bf16.mxu0 %vm608_vm3, %v5035_v38  ;;  %4100 = vmatmul.mubr.msk.bf16.vlgmr.msra.gmra.mxu1 %vm546_vm2, %v610_v27 }
 0x3a5   :  { %4112 = vmatpush3.bf16.xpose.msra.mxu1 %v762_v54  ;;  %4115 = vmatprep.mubr.msk.bf16.mxu1 %vm546_vm2, %v745_v53 }
 0x3a6   :  { %4282 = vmatprep.subr.msk.bf16.mxu1 %vm546_vm2, %v749_v46 }
 0x3ad   :  { %4114 = vmatpush3.bf16.xpose.msra.mxu1 %v759_v55 }
 0x3b4   :  { %4116 = vmatmul.mubr.msk.bf16.vlgmr.msra.gmra.mxu1 %vm546_vm2, %v747_v56 }
 0x454   :  { %v4093_v61 = vpop.f32.mrf.mxu1 }
 0x455   :  { %v814_v62 = vmul.f32 0.17677669, %v4093_v61 }
 0x456   :  { %v593_v63 = vpop.f32.mrf.mxu1 }
 0x457   :  { %v812_v1 = vmul.f32 0.17677669, %v593_v63  ;;  %v826_v3 = vadd.f32 %v814_v62, %v5047_v59 }
 0x458   :  { %v4094_v5 = vpop.f32.mrf.mxu1 }
 0x459   :  { %v843_v6 = vsel %vm836_vm7, %v826_v3, -inf  ;;  %v5052_v7 = vadd.f32 %v812_v1, %v5047_v59 }
 0x45a   :  { %844 = vmax.xlane.f32.xlu0 %v843_v6  ;;  %v596_v50 = vpop.f32.mrf.mxu1 }
 0x45b   :  { %v813_v11 = vmul.f32 0.17677669, %v596_v50  ;;  %v837_v12 = vsel %vm836_vm7, %v5052_v7, -inf }
 0x45d   :  { %v825_v13 = vadd.f32 %v813_v11, %v5047_v59 }
 0x45e   :  { %838 = vmax.xlane.f32.xlu0 %v837_v12  ;;  %v4109_v14 = vpop.f32.mrf.mxu0 }
 0x45f   :  { %v840_v16 = vsel %vm836_vm7, %v825_v13, -inf  ;;  %v820_v26 = vmul.f32 0.17677669, %v4109_v14 }
 0x460   :  { %841 = vmax.xlane.f32.xlu1 %v840_v16  ;;  %v730_v17 = vpop.f32.mrf.mxu0 }
 0x461   :  { %v818_v20 = vmul.f32 0.17677669, %v730_v17  ;;  %v832_v46 = vadd.f32 %v820_v26, %v5047_v59 }
 0x462   :  { %v4110_v22 = vpop.f32.mrf.mxu0 }
 0x463   :  { %v5059_v23 = vadd.f32 %v818_v20, %v5047_v59  ;;  %v861_v30 = vsel %vm836_vm7, %v832_v46, -inf }
 0x464   :  { %v4101_v24 = vpop.f32.mrf.mxu1  ;;  %v733_v25 = vpop.f32.mrf.mxu0 }
 0x465   :  { %v817_v27 = vmul.f32 0.17677669, %v4101_v24  ;;  %v819_v28 = vmul.f32 0.17677669, %v733_v25  ;;  %v855_v29 = vsel %vm836_vm7, %v5059_v23, -inf }
 0x466   :  { %v662_v31 = vpop.f32.mrf.mxu1  ;;  %856 = vmax.xlane.f32.xlu0 %v855_v29 }
 0x467   :  { %v815_v32 = vmul.f32 0.17677669, %v662_v31  ;;  %v831_v33 = vadd.f32 %v819_v28, %v5047_v59  ;;  %v829_v36 = vadd.f32 %v817_v27, %v5047_v59 }
 0x468   :  { %v4102_v8 = vpop.f32.mrf.mxu1 }
 0x469   :  { %v858_v34 = vsel %vm836_vm7, %v831_v33, -inf  ;;  %v827_v35 = vadd.f32 %v815_v32, %v5047_v59  ;;  %v852_v42 = vsel %vm836_vm7, %v829_v36, -inf }
 0x46a   :  { %v665_v39 = vpop.f32.mrf.mxu1  ;;  %859 = vmax.xlane.f32.xlu1 %v858_v34 }
 0x46b   :  { %v816_v40 = vmul.f32 0.17677669, %v665_v39  ;;  %v846_v41 = vsel %vm836_vm7, %v827_v35, -inf }
 0x46c   :  { %847 = vmax.xlane.f32.xlu0 %v846_v41 }
 0x46d   :  { %v5070_v43 = vadd.f32 %v816_v40, %v5047_v59 }
 0x46e   :  { %853 = vmax.xlane.f32.xlu1 %v852_v42 }
 0x46f   :  { %v849_v45 = vsel %vm836_vm7, %v5070_v43, -inf }
 0x470   :  { %850 = vmax.xlane.f32.xlu0 %v849_v45 }
 0x474   :  { %862 = vmax.xlane.f32.xlu0 %v861_v30  ;;  %v4117_v47 = vpop.f32.mrf.mxu1 }
 0x475   :  { %v823_v48 = vmul.f32 0.17677669, %v4117_v47 }
 0x476   :  { %v798_v37 = vpop.f32.mrf.mxu1 }
 0x477   :  { %v821_v49 = vmul.f32 0.17677669, %v798_v37  ;;  %v5082_v57 = vadd.f32 %v823_v48, %v5047_v59 }
 0x478   :  { %v4118_v51 = vpop.f32.mrf.mxu1 }
 0x479   :  { %v5077_v53 = vadd.f32 %v821_v49, %v5047_v59  ;;  %v870_v61 = vsel %vm836_vm7, %v5082_v57, -inf }
 0x47a   :  { %v801_v54 = vpop.f32.mrf.mxu1 }
 0x47b   :  { %v822_v55 = vmul.f32 0.17677669, %v801_v54  ;;  %v864_v56 = vsel %vm836_vm7, %v5077_v53, -inf }
 0x47c   :  { %865 = vmax.xlane.f32.xlu1 %v864_v56 }
 0x47d   :  { %v834_v58 = vadd.f32 %v822_v55, %v5047_v59 }
 0x47f   :  { %v867_v62 = vsel %vm836_vm7, %v834_v58, -inf }
 0x480   :  { %871 = vmax.xlane.f32.xlu1 %v870_v61  ;;  %868 = vmax.xlane.f32.xlu0 %v867_v62 }
 0x4e3   :  { %v845_v63 = vpop.xlane.xlu0 %844 }
 0x4e4   :  { %v875_v1 = vsub.f32 %v826_v3, %v845_v63 }
 0x4e6   :  { %v889_v5 = vmul.f32 1.442695, %v875_v1 }
 0x4e7   :  { %v839_v12 = vpop.xlane.xlu0 %838 }
 0x4e8   :  { %4452 = vpow2.f32 %v889_v5  ;;  %v873_v8 = vsub.f32 %v5052_v7, %v839_v12 }
 0x4e9   :  { %v842_v6 = vpop.xlane.xlu1 %841 }
 0x4ea   :  { %v874_v50 = vsub.f32 %v825_v13, %v842_v6  ;;  %v885_v39 = vmul.f32 1.442695, %v873_v8 }
 0x4ec   :  { %v887_v11 = vmul.f32 1.442695, %v874_v50 }
 0x4ee   :  { %4454 = vpow2.f32 %v887_v11 }
 0x4ef   :  { %v857_v14 = vpop.xlane.xlu0 %856 }
 0x4f0   :  { %v879_v26 = vsub.f32 %v5059_v23, %v857_v14 }
 0x4f3   :  { %v860_v16 = vpop.xlane.xlu1 %859 }
 0x4f4   :  { %v880_v17 = vsub.f32 %v831_v33, %v860_v16 }
 0x4f5   :  { %v5088_v20 = vpop.eup %4452  ;;  %v848_v22 = vpop.xlane.xlu0 %847 }
 0x4f6   :  { %v899_v24 = vmul.f32 1.442695, %v880_v17  ;;  %v876_v25 = vsub.f32 %v827_v35, %v848_v22  ;;  %v915_v27 = vsel %vm836_vm7, %v5088_v20, 0.0  ;;  %v1040_v22 = vrot.slane %v4997_v18, 4 }
 0x4f7   :  { %v854_v28 = vpop.xlane.xlu1 %853  ;;  %916 = vadd.xlane.f32.xlu0 %v915_v27 }
 0x4f8   :  { %4456 = vpow2.f32 %v899_v24  ;;  %v878_v3 = vsub.f32 %v829_v36, %v854_v28  ;;  %v891_v13 = vmul.f32 1.442695, %v876_v25  ;;  %v897_v36 = vmul.f32 1.442695, %v879_v26 }
 0x4f9   :  { %v851_v29 = vpop.xlane.xlu0 %850  ;;  %v1042_v24 = vsel %vm608_vm3, %v1040_v22, %v5035_v38 }
 0x4fa   :  { %v895_v31 = vmul.f32 1.442695, %v878_v3  ;;  %v877_v41 = vsub.f32 %v5070_v43, %v851_v29 }
 0x4fb   :  { %v5092_v32 = vpop.eup %4454 }
 0x4fc   :  { %4458 = vpow2.f32 %v895_v31  ;;  %v912_v33 = vsel %vm836_vm7, %v5092_v32, 0.0 }
 0x4fd   :  { %913 = vadd.xlane.f32.xlu1 %v912_v33  ;;  %v863_v34 = vpop.xlane.xlu0 %862  ;;  %4460 = vpow2.f32 %v891_v13 }
 0x4fe   :  { %v881_v35 = vsub.f32 %v832_v46, %v863_v34  ;;  %v893_v46 = vmul.f32 1.442695, %v877_v41 }
 0x500   :  { %v901_v40 = vmul.f32 1.442695, %v881_v35 }
 0x502   :  { %4462 = vpow2.f32 %v901_v40 }
 0x503   :  { %4464 = vpow2.f32 %v885_v39 }
 0x504   :  { %4466 = vpow2.f32 %v897_v36 }
 0x505   :  { %v5099_v42 = vpop.eup %4456  ;;  %v866_v7 = vpop.xlane.xlu1 %865  ;;  %4468 = vpow2.f32 %v893_v46 }
 0x506   :  { %v930_v45 = vsel %vm836_vm7, %v5099_v42, 0.0  ;;  %v882_v30 = vsub.f32 %v5077_v53, %v866_v7 }
 0x507   :  { %931 = vadd.xlane.f32.xlu1 %v930_v45 }
 0x508   :  { %v903_v54 = vmul.f32 1.442695, %v882_v30 }
 0x509   :  { %v5104_v47 = vpop.eup %4458  ;;  %v872_v23 = vpop.xlane.xlu1 %871 }
 0x50a   :  { %v869_v37 = vpop.xlane.xlu0 %868  ;;  %v884_v48 = vsub.f32 %v5082_v57, %v872_v23  ;;  %v924_v43 = vsel %vm836_vm7, %v5104_v47, 0.0  ;;  %v5109_v51 = vpop.eup %4460 }
 0x50b   :  { %v883_v49 = vsub.f32 %v834_v58, %v869_v37  ;;  %925 = vadd.xlane.f32.xlu1 %v924_v43  ;;  %v918_v56 = vsel %vm836_vm7, %v5109_v51, 0.0 }
 0x50c   :  { %v907_v55 = vmul.f32 1.442695, %v884_v48 }
 0x50d   :  { %v905_v53 = vmul.f32 1.442695, %v883_v49 }
 0x50e   :  { %4470 = vpow2.f32 %v907_v55 }
 0x50f   :  { %v5113_v61 = vpop.eup %4462  ;;  %4472 = vpow2.f32 %v903_v54  ;;  %919 = vadd.xlane.f32.xlu1 %v918_v56 }
 0x510   :  { %4474 = vpow2.f32 %v905_v53  ;;  %v933_v57 = vsel %vm836_vm7, %v5113_v61, 0.0  ;;  %v4465_v58 = vpop.eup %4464 }
 0x511   :  { %934 = vadd.xlane.f32.xlu0 %v933_v57  ;;  %v909_v62 = vsel %vm836_vm7, %v4465_v58, 0.0  ;;  %v5118_v63 = vpop.eup %4466 }
 0x512   :  { %v927_v1 = vsel %vm836_vm7, %v5118_v63, 0.0  ;;  %v5122_v5 = vpop.eup %4468 }
 0x513   :  { %v921_v12 = vsel %vm836_vm7, %v5122_v5, 0.0 }
 0x515   :  { %910 = vadd.xlane.f32.xlu0 %v909_v62 }
 0x519   :  { %928 = vadd.xlane.f32.xlu0 %v927_v1 }
 0x51b   :  { %v5124_v6 = vpop.eup %4470 }
 0x51c   :  { %v5126_v50 = vpop.eup %4472  ;;  %v942_v11 = vsel %vm836_vm7, %v5124_v6, 0.0 }
 0x51d   :  { %v5132_v14 = vpop.eup %4474  ;;  %943 = vadd.xlane.f32.xlu1 %v942_v11  ;;  %922 = vadd.xlane.f32.xlu0 %v921_v12  ;;  %v936_v16 = vsel %vm836_vm7, %v5126_v50, 0.0 }
 0x51e   :  { %v939_v17 = vsel %vm836_vm7, %v5132_v14, 0.0 }
 0x521   :  { %937 = vadd.xlane.f32.xlu1 %v936_v16  ;;  %940 = vadd.xlane.f32.xlu0 %v939_v17 }
 0x532   :  { %1102 = vrot.lane.b32.xlu1 %v4991_v4, %s4648_s4 }
 0x536   :  { %1171 = vrot.lane.b32.xlu1 %v5035_v38, %s4648_s4 }
 0x537   :  { %1104 = vrot.lane.b32.xlu0 %v4997_v18, %s4648_s4 }
 0x53a   :  { %1169 = vrot.lane.b32.xlu1 %v1042_v24, %s4648_s4 }
 0x580   :  { %v917_v3 = vpop.xlane.xlu0 %916 }
 0x586   :  { %v914_v25 = vpop.xlane.xlu1 %913 }
 0x590   :  { %v932_v27 = vpop.xlane.xlu1 %931 }
 0x594   :  { %v926_v28 = vpop.xlane.xlu1 %925 }
 0x598   :  { %v920_v29 = vpop.xlane.xlu1 %919 }
 0x599   :  { %4476 = vrcp.f32 %v920_v29  ;;  %v4362_v29 = vld [vmem:[%s5958_s9 + $0x8] sm:$0xff]  }
 0x59a   :  { %v935_v13 = vpop.xlane.xlu0 %934  ;;  %4478 = vrcp.f32 %v914_v25 }
 0x59b   :  { %4480 = vrcp.f32 %v917_v3  ;;  %v4361_v3 = vld [vmem:[%s5958_s9 + $0x10] sm:$0xff]  }
 0x59e   :  { %v911_v4 = vpop.xlane.xlu0 %910 }
 0x59f   :  { %4482 = vrcp.f32 %v911_v4 }
 0x5a0   :  { %4484 = vrcp.f32 %v932_v27 }
 0x5a2   :  { %v929_v31 = vpop.xlane.xlu0 %928 }
 0x5a3   :  { %4486 = vrcp.f32 %v929_v31 }
 0x5a4   :  { %4488 = vrcp.f32 %v926_v28 }
 0x5a6   :  { %v944_v18 = vpop.xlane.xlu1 %943  ;;  %v923_v8 = vpop.xlane.xlu0 %922 }
 0x5a7   :  { %4490 = vrcp.f32 %v923_v8  ;;  %v4477_v33 = vpop.eup %4476 }
 0x5a8   :  { %4492 = vrcp.f32 %v935_v13  ;;  %v4479_v34 = vpop.eup %4478  ;;  %v960_v36 = vmul.f32 %v4477_v33, %v5109_v51 }
 0x5a9   :  { %4494 = vrcp.f32 %v944_v18  ;;  %v4481_v26 = vpop.eup %4480  ;;  %v958_v7 = vmul.f32 %v4479_v34, %v5092_v32  ;;  %v4363_v18 = vld [vmem:[%s5958_s9] sm:$0xff]  }
 0x5aa   :  { %v938_v35 = vpop.xlane.xlu1 %937  ;;  %v941_v39 = vpop.xlane.xlu0 %940  ;;  %v959_v46 = vmul.f32 %v4481_v26, %v5088_v20  ;;  %v1051_v20 = vsel %vm608_vm3, %v5035_v38, 0 }
 0x5ab   :  { %4496 = vrcp.f32 %v938_v35 }
 0x5ac   :  { %v4483_v40 = vpop.eup %4482  ;;  %4498 = vrcp.f32 %v941_v39  ;;  %v970_v43 = vpack.c.bf16 %v960_v36, %v959_v46 }
 0x5ad   :  { %v957_v41 = vmul.f32 %v4483_v40, %v4465_v58  ;;  %v4485_v45 = vpop.eup %4484 }
 0x5ae   :  { %v1105_v30 = vpop.permute.xlu0 %1104  ;;  %v1103_v49 = vpop.permute.xlu1 %1102  ;;  %v964_v32 = vmul.f32 %v4485_v45, %v5099_v42  ;;  %v1035_v16 = vrot.slane %v970_v43, 4 }
 0x5af   :  { %v1114_v23 = vsel %vm608_vm3, %v1105_v30, 0  ;;  %4285 = vmatprep.subr.msk.bf16.mxu1 %vm608_vm3, %v1105_v30  ;;  %v969_v37 = vpack.c.bf16 %v958_v7, %v957_v41 }
 0x5b0   :  { %v4487_v48 = vpop.eup %4486  ;;  %4136 = vmatpush3.bf16.msra.mxu1 %v1114_v23 }
 0x5b1   :  { %4123 = vmatprep.mubr.msk.bf16.mxu0 %vm836_vm7, %v969_v37  ;;  %4137 = vmatprep.subr.bf16.mxu1 %v1103_v49  ;;  %v963_v51 = vmul.f32 %v4487_v48, %v5118_v63  ;;  %v4489_v54 = vpop.eup %4488 }
 0x5b2   :  { %4124 = vmatmul.mubr.msk.bf16.vlgmr.msra.gmra.mxu0 %vm836_vm7, %v970_v43  ;;  %v962_v42 = vmul.f32 %v4489_v54, %v5104_v47  ;;  %v1172_v62 = vpop.permute.xlu1 %1171 }
 0x5b3   :  { %4128 = vmatpush3.bf16.msra.mxu0 %v1051_v20  ;;  %v972_v55 = vpack.c.bf16 %v964_v32, %v963_v51  ;;  %v1181_v28 = vsel %vm608_vm3, %v1172_v62, 0 }
 0x5b4   :  { %4129 = vmatprep.subr.bf16.mxu0 %v1042_v24  ;;  %4138 = vmatpush3.bf16.msra.mxu1 %v1103_v49  ;;  %v4491_v53 = vpop.eup %4490 }
 0x5b5   :  { %4139 = vmatprep.mubr.msk.bf16.mxu1 %vm836_vm7, %v972_v55  ;;  %4151 = vmatprep.subr.bf16.mxu1 %v4645_v2  ;;  %v4493_v56 = vpop.eup %4492  ;;  %v961_v57 = vmul.f32 %v4491_v53, %v5122_v5 }
 0x5b6   :  { %v4495_v58 = vpop.eup %4494  ;;  %v965_v11 = vmul.f32 %v4493_v56, %v5113_v61 }
 0x5b7   :  { %4130 = vmatpush3.bf16.msra.mxu0 %v1042_v24  ;;  %v971_v38 = vpack.c.bf16 %v962_v42, %v961_v57  ;;  %v968_v5 = vmul.f32 %v4495_v58, %v5124_v6  ;;  %v4360_v6 = vld [vmem:[%s5958_s9 + $0x18] sm:$0xff]  }
 0x5b8   :  { %v4497_v63 = vpop.eup %4496  ;;  %4286 = vmatprep.subr.msk.bf16.mxu0 %vm608_vm3, %v1172_v62 }
 0x5b9   :  { %v4499_v1 = vpop.eup %4498  ;;  %v966_v12 = vmul.f32 %v4497_v63, %v5126_v50  ;;  %v1036_v17 = vrot.slane %v971_v38, 4  ;;  %v1170_v50 = vpop.permute.xlu1 %1169 }
 0x5ba   :  { %v967_v22 = vmul.f32 %v4499_v1, %v5132_v14 }
 0x5bb   :  { %v973_v25 = vpack.c.bf16 %v966_v12, %v965_v11  ;;  %v1037_v47 = vsel %vm608_vm3, %v1035_v16, %v1036_v17 }
 0x5bc   :  { %v974_v27 = vpack.c.bf16 %v968_v5, %v967_v22  ;;  %4131 = vmatprep.mubr.msk.bf16.mxu0 %vm836_vm7, %v1037_v47 }
 0x5bd   :  { %4140 = vmatmul.mubr.msk.bf16.vlgmr.msra.gmra.mxu1 %vm836_vm7, %v973_v25  ;;  %v1166_v24 = vrot.slane %v973_v25, 4  ;;  %4132 = vmatmul.mubr.msk.bf16.vlgmr.msra.gmra.mxu0 %vm836_vm7, %v1036_v17  ;;  %v3762_v17 = vld [vmem:[%s5959_s10] ss:$0 sm:$0xff] }
 0x5be   :  { %v1167_v61 = vrot.slane %v974_v27, 4  ;;  %4144 = vmatpush3.bf16.msra.mxu0 %v1181_v28  ;;  %4152 = vmatpush3.bf16.msra.mxu1 %v4360_v6 }
 0x5bf   :  { %4145 = vmatprep.subr.bf16.mxu0 %v1170_v50  ;;  %4153 = vmatprep.subr.bf16.mxu1 %v4645_v2 }
 0x5c0   :  { %v1168_v14 = vsel %vm608_vm3, %v1166_v24, %v1167_v61  ;;  %4159 = vmatprep.mubr.msk.bf16.mxu1 %vm4650_vm8, %v4645_v2 }
 0x5c1   :  { %4147 = vmatprep.mubr.msk.bf16.mxu0 %vm836_vm7, %v1168_v14 }
 0x5c2   :  { %4146 = vmatpush3.bf16.msra.mxu0 %v1170_v50  ;;  %4154 = vmatpush3.bf16.msra.mxu1 %v4361_v3 }
 0x5c3   :  { %4155 = vmatprep.subr.bf16.mxu1 %v4645_v2 }
 0x5c5   :  { %4148 = vmatmul.mubr.msk.bf16.vlgmr.msra.gmra.mxu0 %vm836_vm7, %v1167_v61 }
 0x5c6   :  { %1589 = vmatprep.mubr.bf16.mxu0 %v4644_v0  ;;  %4156 = vmatpush3.bf16.msra.mxu1 %v4362_v29 }
 0x5c7   :  { %4157 = vmatprep.subr.bf16.mxu1 %v4645_v2 }
 0x5ca   :  { %4158 = vmatpush3.bf16.msra.mxu1 %v4363_v18 }
 0x672   :  { %v4125_v13 = vpop.f32.mrf.mxu0 }
 0x674   :  { %v1019_v4 = vpop.f32.mrf.mxu0 }
 0x676   :  { %v4126_v31 = vpop.f32.mrf.mxu0 }
 0x678   :  { %v1022_v8 = vpop.f32.mrf.mxu0 }
 0x67d   :  { %v4141_v33 = vpop.f32.mrf.mxu1  ;;  %v4133_v34 = vpop.f32.mrf.mxu0 }
 0x67f   :  { %v1150_v35 = vpop.f32.mrf.mxu1  ;;  %v1087_v39 = vpop.f32.mrf.mxu0 }
 0x681   :  { %v4142_v26 = vpop.f32.mrf.mxu1  ;;  %v4134_v40 = vpop.f32.mrf.mxu0 }
 0x683   :  { %v1153_v36 = vpop.f32.mrf.mxu1  ;;  %v1090_v41 = vpop.f32.mrf.mxu0 }
 0x684   :  { %v4306_v7 = vpack.i.bf16 %v1153_v36, %v1150_v35 }
 0x685   :  { %v4149_v45 = vpop.f32.mrf.mxu0 }
 0x686   :  { %4307 = vrot.lane.b32.xlu0 %v4306_v7, %s4647_s27 }
 0x687   :  { %v1217_v30 = vpop.f32.mrf.mxu0 }
 0x688   :  { %v4311_v46 = vpack.i.bf16 %v1217_v30, %v4141_v33 }
 0x689   :  { %v4150_v23 = vpop.f32.mrf.mxu0 }
 0x68a   :  { %4312 = vrot.lane.b32.xlu1 %v4311_v46, %s4647_s27 }
 0x68b   :  { %v1220_v37 = vpop.f32.mrf.mxu0 }
 0x68c   :  { %v4316_v48 = vpack.i.bf16 %v4149_v45, %v1220_v37 }
 0x68e   :  { %4317 = vrot.lane.b32.xlu0 %v4316_v48, %s4647_s27 }
 0x6f8   :  { %v4308_v49 = vpop.permute.xlu0 %4307 }
 0x6f9   :  { %v4310_v43 = vunpack.i.h.bf16 %v4308_v49  ;;  %v4309_v51 = vunpack.i.l.bf16 %v4308_v49 }
 0x6fb   :  { %v1256_v32 = vsel %vm546_vm2, %v1022_v8, %v4310_v43  ;;  %v1255_v20 = vsel %vm546_vm2, %v1019_v4, %v4309_v51 }
 0x6fc   :  { %v1261_v54 = vpack.c.bf16 %v1256_v32, %v1255_v20  ;;  %v4313_v55 = vpop.permute.xlu1 %4312 }
 0x6fd   :  { %v4315_v53 = vunpack.i.h.bf16 %v4313_v55  ;;  %v4314_v56 = vunpack.i.l.bf16 %v4313_v55 }
 0x6fe   :  { %4160 = vmatmul.mubr.msk.bf16.vlgmr.msra.gmra.mxu1 %vm200_vm0, %v1261_v54 }
 0x6ff   :  { %4163 = vmatprep.mubr.msk.bf16.mxu1 %vm4650_vm8, %v4645_v2  ;;  %v1258_v57 = vsel %vm546_vm2, %v1087_v39, %v4315_v53  ;;  %v1257_v42 = vsel %vm546_vm2, %v4125_v13, %v4314_v56 }
 0x700   :  { %v4318_v58 = vpop.permute.xlu0 %4317  ;;  %v1262_v62 = vpack.c.bf16 %v1258_v57, %v1257_v42 }
 0x701   :  { %v4320_v63 = vunpack.i.h.bf16 %v4318_v58  ;;  %v4319_v38 = vunpack.i.l.bf16 %v4318_v58 }
 0x703   :  { %v1260_v1 = vsel %vm546_vm2, %v4133_v34, %v4320_v63  ;;  %v1259_v11 = vsel %vm546_vm2, %v1090_v41, %v4319_v38 }
 0x704   :  { %v1263_v12 = vpack.c.bf16 %v1260_v1, %v1259_v11 }
 0x706   :  { %4164 = vmatmul.mubr.msk.bf16.gmra.mxu1 %vm200_vm0, %v1262_v62 }
 0x707   :  { %4167 = vmatprep.mubr.msk.bf16.mxu1 %vm4650_vm8, %v4645_v2 }
 0x70e   :  { %4168 = vmatmul.mubr.msk.bf16.gmra.mxu1 %vm200_vm0, %v1263_v12 }
 0x7be   :  { %v1339_v16 = vpop.f32.mrf.mxu1 }
 0x7bf   :  { %v1362_v22 = vadd.f32 %v1339_v16, %v4815_v19 }
 0x7c0   :  { %v4161_v5 = vpop.f32.mrf.mxu1 }
 0x7c1   :  { %v5214_v25 = vadd.f32 %v3762_v17, %v1362_v22  ;;  %v4366_v22 = vld [vmem:[%s5960_s13 + $0x34] ss:$8 sps:$4 sm:$0xff]   ;;  %v4364_v5 = vld [vmem:[%s5960_s13 + $0x30] ss:$8 sps:$4 sm:$0xff]  }
 0x7c2   :  { %v1342_v47 = vpop.f32.mrf.mxu1  ;;  %1565 = vmatprep.subr.bf16.mxu0 %v4366_v22 }
 0x7c3   :  { %v1363_v27 = vadd.f32 %v1342_v47, %v4867_v60  ;;  %v1383_v24 = vsel %vm200_vm0, %v5214_v25, 0.0  ;;  %1566 = vmatpush1.bf16.msra.mxu0 %v4364_v5  ;;  %v4369_v47 = vld [vmem:[%s5960_s13 + $0x24] ss:$8 sps:$4 sm:$0xff]  }
 0x7c4   :  { %1384 = vadd.xlane.f32.xlu1 %v1383_v24  ;;  %v4162_v28 = vpop.f32.mrf.mxu1  ;;  %1567 = vmatprep.subr.bf16.mxu0 %v4369_v47  ;;  %v4372_v24 = vld [vmem:[%s5960_s13 + $0x14] ss:$8 sps:$4 sm:$0xff]  }
 0x7c5   :  { %v5219_v61 = vadd.f32 %v3762_v17, %v1363_v27  ;;  %v4367_v27 = vld [vmem:[%s5960_s13 + $0x20] ss:$8 sps:$4 sm:$0xff]   ;;  %v4370_v28 = vld [vmem:[%s5960_s13 + $0x10] ss:$8 sps:$4 sm:$0xff]  }
 0x7c6   :  { %v1347_v50 = vpop.f32.mrf.mxu1 }
 0x7c7   :  { %v1364_v14 = vadd.f32 %v1347_v50, %v4881_v9  ;;  %v1386_v6 = vsel %vm200_vm0, %v5219_v61, 0.0  ;;  %1568 = vmatpush1.bf16.msra.mxu0 %v4367_v27  ;;  %v4375_v50 = vld [vmem:[%s5960_s13 + $0x4] ss:$8 sps:$4 sm:$0xff]  }
 0x7c8   :  { %1387 = vadd.xlane.f32.xlu0 %v1386_v6  ;;  %v4165_v19 = vpop.f32.mrf.mxu1  ;;  %1569 = vmatprep.subr.bf16.mxu0 %v4372_v24  ;;  %v4377_v24 = vld [vmem:[%s5963_s15 + $0x38] sm:$0xff]  }
 0x7c9   :  { %v5224_v3 = vadd.f32 %v3762_v17, %v1364_v14  ;;  %v4373_v14 = vld [vmem:[%s5960_s13] ss:$8 sps:$4 sm:$0xff]  }
 0x7ca   :  { %v1350_v29 = vpop.f32.mrf.mxu1 }
 0x7cb   :  { %v1365_v60 = vadd.f32 %v1350_v29, %v4883_v10  ;;  %v1389_v13 = vsel %vm200_vm0, %v5224_v3, 0.0  ;;  %1570 = vmatpush1.bf16.msra.mxu0 %v4370_v28  ;;  %v4379_v28 = vld [vmem:[%s5963_s15 + $0x30] sm:$0xff]  }
 0x7cc   :  { %1390 = vadd.xlane.f32.xlu0 %v1389_v13  ;;  %v4166_v4 = vpop.f32.mrf.mxu1  ;;  %1571 = vmatprep.subr.bf16.mxu0 %v4375_v50  ;;  %v4380_v50 = vld [vmem:[%s5963_s15 + $0x68] sm:$0xff]  }
 0x7cd   :  { %v5229_v31 = vadd.f32 %v3762_v17, %v1365_v60 }
 0x7ce   :  { %v1355_v18 = vpop.f32.mrf.mxu1 }
 0x7cf   :  { %v1366_v9 = vadd.f32 %v1355_v18, %v4892_v15  ;;  %v1392_v8 = vsel %vm200_vm0, %v5229_v31, 0.0  ;;  %1572 = vmatpush1.bf16.msra.mxu0 %v4373_v14  ;;  %v4381_v14 = vld [vmem:[%s5963_s15 + $0x28] sm:$0xff]  }
 0x7d0   :  { %1393 = vadd.xlane.f32.xlu0 %v1392_v8  ;;  %v4169_v33 = vpop.f32.mrf.mxu1 }
 0x7d1   :  { %v5234_v34 = vadd.f32 %v3762_v17, %v1366_v9 }
 0x7d2   :  { %v1358_v35 = vpop.f32.mrf.mxu1 }
 0x7d3   :  { %v1367_v10 = vadd.f32 %v1358_v35, %v4901_v21  ;;  %v1395_v39 = vsel %vm200_vm0, %v5234_v34, 0.0 }
 0x7d4   :  { %1396 = vadd.xlane.f32.xlu1 %v1395_v39  ;;  %v4170_v26 = vpop.f32.mrf.mxu1 }
 0x7d5   :  { %v5239_v40 = vadd.f32 %v3762_v17, %v1367_v10 }
 0x7d7   :  { %v1398_v15 = vsel %vm200_vm0, %v5239_v40, 0.0 }
 0x7d8   :  { %1399 = vadd.xlane.f32.xlu0 %v1398_v15 }
 0x84d   :  { %v1385_v36 = vpop.xlane.xlu1 %1384 }
 0x84e   :  { %v1401_v41 = vmul.f32 0.015625, %v1385_v36 }
 0x850   :  { %v5244_v7 = vsub.f32 %v5214_v25, %v1401_v41 }
 0x851   :  { %v1388_v45 = vpop.xlane.xlu0 %1387 }
 0x852   :  { %v1402_v30 = vmul.f32 0.015625, %v1388_v45  ;;  %v1413_v21 = vmul.f32 %v5244_v7, %v5244_v7 }
 0x854   :  { %v5249_v46 = vsub.f32 %v5219_v61, %v1402_v30  ;;  %v1419_v23 = vsel %vm200_vm0, %v1413_v21, 0.0  ;;  %v3763_v30 = vld [vmem:[%s5961_s11] ss:$0 sm:$0xff] }
 0x855   :  { %v1391_v37 = vpop.xlane.xlu0 %1390  ;;  %1420 = vadd.xlane.f32.xlu1 %v1419_v23 }
 0x856   :  { %v1403_v48 = vmul.f32 0.015625, %v1391_v37  ;;  %v1414_v49 = vmul.f32 %v5249_v46, %v5249_v46 }
 0x858   :  { %v5255_v43 = vsub.f32 %v5224_v3, %v1403_v48  ;;  %v1422_v51 = vsel %vm200_vm0, %v1414_v49, 0.0 }
 0x859   :  { %v1394_v32 = vpop.xlane.xlu0 %1393  ;;  %1423 = vadd.xlane.f32.xlu0 %v1422_v51  ;;  %v3764_v51 = vld [vmem:[%s5962_s12] ss:$0 sm:$0xff] }
 0x85a   :  { %v1404_v20 = vmul.f32 0.015625, %v1394_v32  ;;  %v1415_v54 = vmul.f32 %v5255_v43, %v5255_v43 }
 0x85c   :  { %v5261_v55 = vsub.f32 %v5229_v31, %v1404_v20  ;;  %v1425_v53 = vsel %vm200_vm0, %v1415_v54, 0.0 }
 0x85d   :  { %1426 = vadd.xlane.f32.xlu1 %v1425_v53  ;;  %v1397_v56 = vpop.xlane.xlu1 %1396 }
 0x85e   :  { %v1405_v57 = vmul.f32 0.015625, %v1397_v56  ;;  %v1416_v42 = vmul.f32 %v5261_v55, %v5261_v55 }
 0x860   :  { %v5267_v58 = vsub.f32 %v5234_v34, %v1405_v57  ;;  %v1428_v62 = vsel %vm200_vm0, %v1416_v42, 0.0 }
 0x861   :  { %1429 = vadd.xlane.f32.xlu0 %v1428_v62  ;;  %v1400_v63 = vpop.xlane.xlu0 %1399 }
 0x862   :  { %v1406_v38 = vmul.f32 0.015625, %v1400_v63  ;;  %v1417_v1 = vmul.f32 %v5267_v58, %v5267_v58 }
 0x864   :  { %v5273_v11 = vsub.f32 %v5239_v40, %v1406_v38  ;;  %v1431_v12 = vsel %vm200_vm0, %v1417_v1, 0.0 }
 0x865   :  { %1432 = vadd.xlane.f32.xlu1 %v1431_v12 }
 0x866   :  { %v1418_v16 = vmul.f32 %v5273_v11, %v5273_v11 }
 0x868   :  { %v1434_v17 = vsel %vm200_vm0, %v1418_v16, 0.0 }
 0x869   :  { %1435 = vadd.xlane.f32.xlu0 %v1434_v17 }
 0x8de   :  { %v1421_v6 = vpop.xlane.xlu1 %1420 }
 0x8df   :  { %v1437_v19 = vmul.f32 0.015625, %v1421_v6  ;;  %v4382_v6 = vld [vmem:[%s5963_s15 + $0x60] sm:$0xff]  }
 0x8e1   :  { %v1443_v29 = vadd.f32 1e-06, %v1437_v19  ;;  %v4383_v19 = vld [vmem:[%s5963_s15 + $0x20] sm:$0xff]  }
 0x8e2   :  { %v1424_v60 = vpop.xlane.xlu0 %1423 }
 0x8e3   :  { %4500 = vrsqrt.f32 %v1443_v29  ;;  %v1438_v13 = vmul.f32 0.015625, %v1424_v60  ;;  %v4384_v29 = vld [vmem:[%s5963_s15 + $0x58] sm:$0xff]  }
 0x8e4   :  { %v4385_v60 = vld [vmem:[%s5963_s15 + $0x18] sm:$0xff]  }
 0x8e5   :  { %v1444_v4 = vadd.f32 1e-06, %v1438_v13  ;;  %v4386_v13 = vld [vmem:[%s5963_s15 + $0x50] sm:$0xff]  }
 0x8e6   :  { %v1427_v18 = vpop.xlane.xlu1 %1426 }
 0x8e7   :  { %4502 = vrsqrt.f32 %v1444_v4  ;;  %v1439_v9 = vmul.f32 0.015625, %v1427_v18  ;;  %v4387_v4 = vld [vmem:[%s5963_s15 + $0x10] sm:$0xff]   ;;  %v4388_v18 = vld [vmem:[%s5963_s15 + $0x48] sm:$0xff]  }
 0x8e9   :  { %v1445_v8 = vadd.f32 1e-06, %v1439_v9  ;;  %v4389_v9 = vld [vmem:[%s5963_s15 + $0x8] sm:$0xff]  }
 0x8ea   :  { %v1430_v33 = vpop.xlane.xlu0 %1429 }
 0x8eb   :  { %4504 = vrsqrt.f32 %v1445_v8  ;;  %v1440_v35 = vmul.f32 0.015625, %v1430_v33  ;;  %v4390_v8 = vld [vmem:[%s5963_s15 + $0x40] sm:$0xff]  }
 0x8ec   :  { %v4391_v33 = vld [vmem:[%s5963_s15] sm:$0xff]  }
 0x8ed   :  { %v1446_v10 = vadd.f32 1e-06, %v1440_v35  ;;  %v1496_v35 = vld [vmem:[%s5964_s14] sm:$0x3] }
 0x8ee   :  { %v1433_v39 = vpop.xlane.xlu1 %1432 }
 0x8ef   :  { %4506 = vrsqrt.f32 %v1446_v10  ;;  %v1441_v26 = vmul.f32 0.015625, %v1433_v39  ;;  %v1501_v10 = vrot.slane %v1496_v35, %v4978_v52  ;;  %v1505_v39 = vrot.slane %v1496_v35, %v4983_v44 }
 0x8f0   :  { %v4501_v15 = vpop.eup %4500 }
 0x8f1   :  { %v1455_v36 = vmul.f32 %v4501_v15, %v5244_v7  ;;  %v1447_v41 = vadd.f32 1e-06, %v1441_v26 }
 0x8f2   :  { %v1436_v45 = vpop.xlane.xlu0 %1435 }
 0x8f3   :  { %4508 = vrsqrt.f32 %v1447_v41  ;;  %v1442_v21 = vmul.f32 0.015625, %v1436_v45  ;;  %v1467_v49 = vmul.f32 %v3763_v30, %v1455_v36 }
 0x8f4   :  { %v4503_v23 = vpop.eup %4502 }
 0x8f5   :  { %v1456_v37 = vmul.f32 %v4503_v23, %v5249_v46  ;;  %v1448_v48 = vadd.f32 1e-06, %v1442_v21  ;;  %v1479_v20 = vadd.f32 %v3764_v51, %v1467_v49 }
 0x8f7   :  { %4510 = vrsqrt.f32 %v1448_v48  ;;  %v1468_v32 = vmul.f32 %v3763_v30, %v1456_v37 }
 0x8f8   :  { %v4505_v7 = vpop.eup %4504 }
 0x8f9   :  { %v1480_v54 = vadd.f32 %v3764_v51, %v1468_v32  ;;  %v1457_v53 = vmul.f32 %v4505_v7, %v5255_v43 }
 0x8fb   :  { %v1485_v56 = vpack.c.bf16 %v1480_v54, %v1479_v20  ;;  %v1469_v46 = vmul.f32 %v3763_v30, %v1457_v53 }
 0x8fc   :  { %v4507_v57 = vpop.eup %4506 }
 0x8fd   :  { %3773 = vmatmul.mubr.msk.bf16.vlgmr.msra.gmra.mxu0 %vm200_vm0, %v1485_v56  ;;  %v1458_v42 = vmul.f32 %v4507_v57, %v5261_v55  ;;  %v1481_v38 = vadd.f32 %v3764_v51, %v1469_v46 }
 0x8fe   :  { %1599 = vmatprep.mubr.bf16.mxu0 %v4644_v0 }
 0x8ff   :  { %v1470_v62 = vmul.f32 %v3763_v30, %v1458_v42 }
 0x900   :  { %v4509_v63 = vpop.eup %4508 }
 0x901   :  { %v1482_v1 = vadd.f32 %v3764_v51, %v1470_v62  ;;  %v1459_v12 = vmul.f32 %v4509_v63, %v5267_v58  ;;  %v4376_v58 = vld [vmem:[%s5963_s15 + $0x78] sm:$0xff]  }
 0x902   :  { %3973 = vmatprep.subr.bf16.mxu1 %v4376_v58 }
 0x903   :  { %v1486_v16 = vpack.c.bf16 %v1482_v1, %v1481_v38  ;;  %v1471_v22 = vmul.f32 %v3763_v30, %v1459_v12  ;;  %3974 = vmatpush3.bf16.msra.mxu1 %v4377_v24 }
 0x904   :  { %v4511_v17 = vpop.eup %4510 }
 0x905   :  { %3774 = vmatmul.mubr.msk.bf16.gmra.mxu0 %vm200_vm0, %v1486_v16  ;;  %v1460_v43 = vmul.f32 %v4511_v17, %v5273_v11  ;;  %v1483_v55 = vadd.f32 %v3764_v51, %v1471_v22  ;;  %v4378_v11 = vld [vmem:[%s5963_s15 + $0x70] sm:$0xff]  }
 0x906   :  { %1609 = vmatprep.mubr.bf16.mxu0 %v4644_v0  ;;  %3975 = vmatprep.subr.bf16.mxu1 %v4378_v11 }
 0x907   :  { %v1472_v5 = vmul.f32 %v3763_v30, %v1460_v43  ;;  %3976 = vmatpush3.bf16.msra.mxu1 %v4379_v28 }
 0x908   :  { %3977 = vmatprep.subr.bf16.mxu1 %v4380_v50 }
 0x909   :  { %v1484_v47 = vadd.f32 %v3764_v51, %v1472_v5 }
 0x90b   :  { %v1487_v27 = vpack.c.bf16 %v1484_v47, %v1483_v55  ;;  %3978 = vmatpush3.bf16.msra.mxu1 %v4381_v14 }
 0x90c   :  { %3979 = vmatprep.subr.bf16.mxu1 %v4382_v6 }
 0x90d   :  { %3775 = vmatmul.mubr.msk.bf16.gmra.mxu0 %vm200_vm0, %v1487_v27 }
 0x90e   :  { %2096 = vmatprep.mubr.bf16.mxu0 %v4644_v0 }
 0x90f   :  { %3980 = vmatpush3.bf16.msra.mxu1 %v4383_v19 }
 0x910   :  { %3981 = vmatprep.subr.bf16.mxu1 %v4384_v29 }
 0x913   :  { %3982 = vmatpush3.bf16.msra.mxu1 %v4385_v60 }
 0x914   :  { %3983 = vmatprep.subr.bf16.mxu1 %v4386_v13 }
 0x917   :  { %3984 = vmatpush3.bf16.msra.mxu1 %v4387_v4 }
 0x918   :  { %3985 = vmatprep.subr.bf16.mxu1 %v4388_v18 }
 0x91b   :  { %3986 = vmatpush3.bf16.msra.mxu1 %v4389_v9 }
 0x91c   :  { %3987 = vmatprep.subr.bf16.mxu1 %v4390_v8 }
 0x91f   :  { %3988 = vmatpush3.bf16.msra.mxu1 %v4391_v33 }
 0x9bd   :  { %v1591_v26 = vpop.f32.mrf.mxu0 }
 0x9be   :  { %v1592_v15 = vadd.f32 %v1591_v26, %v1501_v10 }
 0x9bf   :  { %v1593_v36 = vpop.f32.mrf.mxu0 }
 0x9c0   :  { %v1594_v41 = vadd.f32 %v1593_v36, %v1505_v39  ;;  %v1632_v45 = vmul.f32 0.70710677, %v1592_v15  ;;  %v1620_v18 = vmul.f32 0.5, %v1592_v15 }
 0x9c1   :  { %v1595_v30 = vpop.f32.mrf.mxu0 }
 0x9c2   :  { %v1633_v21 = vmul.f32 0.70710677, %v1594_v41  ;;  %v1596_v23 = vadd.f32 %v1595_v30, %v1501_v10  ;;  %v1621_v60 = vmul.f32 0.5, %v1594_v41 }
 0x9c3   :  { %v1597_v37 = vpop.f32.mrf.mxu0 }
 0x9c4   :  { %4512 = verf.f32 %v1633_v21  ;;  %v1634_v48 = vmul.f32 0.70710677, %v1596_v23  ;;  %v1598_v49 = vadd.f32 %v1597_v37, %v1505_v39  ;;  %v1622_v19 = vmul.f32 0.5, %v1596_v23 }
 0x9c5   :  { %4514 = verf.f32 %v1632_v45  ;;  %v1601_v51 = vpop.f32.mrf.mxu0 }
 0x9c6   :  { %4516 = verf.f32 %v1634_v48  ;;  %v1635_v32 = vmul.f32 0.70710677, %v1598_v49  ;;  %v1602_v7 = vadd.f32 %v1601_v51, %v1501_v10  ;;  %v1623_v13 = vmul.f32 0.5, %v1598_v49 }
 0x9c7   :  { %v1603_v20 = vpop.f32.mrf.mxu0 }
 0x9c8   :  { %4518 = verf.f32 %v1635_v32  ;;  %v1604_v54 = vadd.f32 %v1603_v20, %v1505_v39  ;;  %v1636_v53 = vmul.f32 0.70710677, %v1602_v7  ;;  %v1624_v32 = vmul.f32 0.5, %v1602_v7 }
 0x9c9   :  { %v1605_v56 = vpop.f32.mrf.mxu0 }
 0x9ca   :  { %v1637_v57 = vmul.f32 0.70710677, %v1604_v54  ;;  %v1606_v42 = vadd.f32 %v1605_v56, %v1501_v10  ;;  %v1625_v49 = vmul.f32 0.5, %v1604_v54 }
 0x9cb   :  { %v1607_v46 = vpop.f32.mrf.mxu0 }
 0x9cc   :  { %4520 = verf.f32 %v1637_v57  ;;  %v1638_v62 = vmul.f32 0.70710677, %v1606_v42  ;;  %v1608_v63 = vadd.f32 %v1607_v46, %v1505_v39  ;;  %v1626_v48 = vmul.f32 0.5, %v1606_v42 }
 0x9cd   :  { %4522 = verf.f32 %v1636_v53  ;;  %v1611_v38 = vpop.f32.mrf.mxu0 }
 0x9ce   :  { %4524 = verf.f32 %v1638_v62  ;;  %v1639_v1 = vmul.f32 0.70710677, %v1608_v63  ;;  %v5374_v12 = vadd.f32 %v1611_v38, %v1501_v10  ;;  %v1627_v15 = vmul.f32 0.5, %v1608_v63 }
 0x9cf   :  { %v1613_v16 = vpop.f32.mrf.mxu0 }
 0x9d0   :  { %4526 = verf.f32 %v1639_v1  ;;  %v1640_v17 = vmul.f32 0.70710677, %v5374_v12  ;;  %v1614_v22 = vadd.f32 %v1613_v16, %v1505_v39  ;;  %v1628_v7 = vmul.f32 0.5, %v5374_v12 }
 0x9d1   :  { %v4513_v43 = vpop.eup %4512  ;;  %v1615_v5 = vpop.f32.mrf.mxu0 }
 0x9d2   :  { %v4515_v55 = vpop.eup %4514  ;;  %v1616_v47 = vadd.f32 %v1615_v5, %v1501_v10  ;;  %v1641_v58 = vmul.f32 0.70710677, %v1614_v22  ;;  %v1657_v11 = vadd.f32 1.0, %v4513_v43  ;;  %4528 = verf.f32 %v1640_v17 }
 0x9d3   :  { %v4517_v27 = vpop.eup %4516  ;;  %v1617_v24 = vpop.f32.mrf.mxu0  ;;  %v1656_v6 = vadd.f32 1.0, %v4515_v55  ;;  %v1629_v54 = vmul.f32 0.5, %v1614_v22 }
 0x9d4   :  { %v1658_v28 = vadd.f32 1.0, %v4517_v27  ;;  %v1642_v50 = vmul.f32 0.70710677, %v1616_v47  ;;  %4530 = verf.f32 %v1641_v58  ;;  %v1618_v29 = vadd.f32 %v1617_v24, %v1505_v39 }
 0x9d5   :  { %v4519_v14 = vpop.eup %4518  ;;  %v1669_v33 = vmul.f32 %v1657_v11, %v1621_v60  ;;  %v1668_v26 = vmul.f32 %v1656_v6, %v1620_v18  ;;  %v1630_v55 = vmul.f32 0.5, %v1616_v47 }
 0x9d6   :  { %v1659_v4 = vadd.f32 1.0, %v4519_v14  ;;  %4532 = verf.f32 %v1642_v50  ;;  %v1670_v9 = vmul.f32 %v1658_v28, %v1622_v19  ;;  %v1643_v8 = vmul.f32 0.70710677, %v1618_v29  ;;  %v3776_v19 = vld [vmem:[%s5965_s16] ss:$0 sm:$0xff] }
 0x9d7   :  { %v1631_v63 = vmul.f32 0.5, %v1618_v29 }
 0x9d8   :  { %v1671_v35 = vmul.f32 %v1659_v4, %v1623_v13  ;;  %4534 = verf.f32 %v1643_v8  ;;  %v1680_v21 = vpack.c.bf16 %v1670_v9, %v1668_v26 }
 0x9d9   :  { %v4521_v10 = vpop.eup %4520 }
 0x9da   :  { %v4523_v36 = vpop.eup %4522  ;;  %v1681_v45 = vpack.c.bf16 %v1671_v35, %v1669_v33  ;;  %v1661_v37 = vadd.f32 1.0, %v4521_v10 }
 0x9db   :  { %v4525_v30 = vpop.eup %4524  ;;  %v1660_v41 = vadd.f32 1.0, %v4523_v36 }
 0x9dc   :  { %v1662_v23 = vadd.f32 1.0, %v4525_v30  ;;  %1853 = vmatprep.mubr.bf16.mxu1 %v1681_v45  ;;  %v1673_v53 = vmul.f32 %v1661_v37, %v1625_v49 }
 0x9dd   :  { %v4527_v39 = vpop.eup %4526  ;;  %1854 = vmatmul.mubr.bf16.vlgmr.msra.gmra.mxu1 %v1680_v21  ;;  %v1672_v46 = vmul.f32 %v1660_v41, %v1624_v32 }
 0x9de   :  { %v1663_v51 = vadd.f32 1.0, %v4527_v39  ;;  %v1674_v20 = vmul.f32 %v1662_v23, %v1626_v48 }
 0x9df   :  { %v4529_v57 = vpop.eup %4528 }
 0x9e0   :  { %v1675_v56 = vmul.f32 %v1663_v51, %v1627_v15  ;;  %v1682_v16 = vpack.c.bf16 %v1674_v20, %v1672_v46  ;;  %v1664_v42 = vadd.f32 1.0, %v4529_v57 }
 0x9e1   :  { %v4531_v62 = vpop.eup %4530 }
 0x9e2   :  { %v1683_v38 = vpack.c.bf16 %v1675_v56, %v1673_v53  ;;  %v1665_v43 = vadd.f32 1.0, %v4531_v62  ;;  %v1676_v28 = vmul.f32 %v1664_v42, %v1628_v7 }
 0x9e3   :  { %v4533_v1 = vpop.eup %4532 }
 0x9e4   :  { %v1666_v17 = vadd.f32 1.0, %v4533_v1  ;;  %1861 = vmatprep.mubr.bf16.mxu1 %v1683_v38  ;;  %v1677_v24 = vmul.f32 %v1665_v43, %v1629_v54 }
 0x9e5   :  { %1862 = vmatmul.mubr.bf16.gmra.mxu1 %v1682_v16  ;;  %v4535_v5 = vpop.eup %4534 }
 0x9e6   :  { %v1667_v27 = vadd.f32 1.0, %v4535_v5  ;;  %v1678_v58 = vmul.f32 %v1666_v17, %v1630_v55 }
 0x9e8   :  { %v1679_v11 = vmul.f32 %v1667_v27, %v1631_v63  ;;  %v1684_v14 = vpack.c.bf16 %v1678_v58, %v1676_v28 }
 0x9ea   :  { %v1685_v50 = vpack.c.bf16 %v1679_v11, %v1677_v24 }
 0x9ec   :  { %1869 = vmatprep.mubr.bf16.mxu1 %v1685_v50 }
 0x9ed   :  { %1870 = vmatmul.mubr.bf16.gmra.mxu1 %v1684_v14 }
 0xa9d   :  { %v3989_v6 = vpop.f32.mrf.mxu1 }
 0xa9f   :  { %v3990_v60 = vpop.f32.mrf.mxu1 }
 0xaa0   :  { %v3991_v47 = vadd.f32 %v3990_v60, %v3989_v6 }
 0xaa1   :  { %v3992_v22 = vpop.f32.mrf.mxu1 }
 0xaa2   :  { %v1856_v29 = vadd.f32 %v3991_v47, %v3776_v19 }
 0xaa3   :  { %v3993_v13 = vpop.f32.mrf.mxu1 }
 0xaa4   :  { %v5382_v12 = vadd.f32 %v1856_v29, %v5214_v25  ;;  %v3994_v4 = vadd.f32 %v3993_v13, %v3992_v22 }
 0xaa5   :  { %v3995_v18 = vpop.f32.mrf.mxu1 }
 0xaa6   :  { %v1859_v9 = vadd.f32 %v3994_v4, %v3776_v19  ;;  %v1888_v8 = vsel %vm200_vm0, %v5382_v12, 0.0 }
 0xaa7   :  { %v3996_v33 = vpop.f32.mrf.mxu1  ;;  %1889 = vadd.xlane.f32.xlu1 %v1888_v8  ;;  %v4397_v8 = vld [vmem:[%s5986_s26 + $0x64] ss:$8 sps:$4 sm:$0xff]  }
 0xaa8   :  { %v5387_v35 = vadd.f32 %v1859_v9, %v5219_v61  ;;  %v3997_v10 = vadd.f32 %v3996_v33, %v3995_v18  ;;  %v4394_v18 = vld [vmem:[%s5986_s26 + $0x74] ss:$8 sps:$4 sm:$0xff]   ;;  %v4392_v9 = vld [vmem:[%s5986_s26 + $0x70] ss:$8 sps:$4 sm:$0xff]   ;;  %v4395_v33 = vld [vmem:[%s5986_s26 + $0x60] ss:$8 sps:$4 sm:$0xff]  }
 0xaa9   :  { %v3998_v26 = vpop.f32.mrf.mxu1  ;;  %2072 = vmatprep.subr.bf16.mxu0 %v4394_v18 }
 0xaaa   :  { %v1864_v36 = vadd.f32 %v3997_v10, %v3776_v19  ;;  %v1891_v45 = vsel %vm200_vm0, %v5387_v35, 0.0  ;;  %2073 = vmatpush1.bf16.msra.mxu0 %v4392_v9  ;;  %v4400_v10 = vld [vmem:[%s5986_s26 + $0x54] ss:$8 sps:$4 sm:$0xff]  }
 0xaab   :  { %v3999_v30 = vpop.f32.mrf.mxu1  ;;  %1892 = vadd.xlane.f32.xlu0 %v1891_v45  ;;  %2074 = vmatprep.subr.bf16.mxu0 %v4397_v8  ;;  %v4403_v45 = vld [vmem:[%s5986_s26 + $0x44] ss:$8 sps:$4 sm:$0xff]  }
 0xaac   :  { %v5392_v25 = vadd.f32 %v1864_v36, %v5224_v3  ;;  %v4000_v21 = vadd.f32 %v3999_v30, %v3998_v26  ;;  %v4398_v26 = vld [vmem:[%s5986_s26 + $0x50] ss:$8 sps:$4 sm:$0xff]   ;;  %v4401_v36 = vld [vmem:[%s5986_s26 + $0x40] ss:$8 sps:$4 sm:$0xff]  }
 0xaad   :  { %v4001_v23 = vpop.f32.mrf.mxu1 }
 0xaae   :  { %v1867_v37 = vadd.f32 %v4000_v21, %v3776_v19  ;;  %v1894_v39 = vsel %vm200_vm0, %v5392_v25, 0.0  ;;  %2075 = vmatpush1.bf16.msra.mxu0 %v4395_v33 }
 0xaaf   :  { %1895 = vadd.xlane.f32.xlu1 %v1894_v39  ;;  %v4002_v41 = vpop.f32.mrf.mxu1  ;;  %2076 = vmatprep.subr.bf16.mxu0 %v4400_v10  ;;  %v3805_v10 = vld [vmem:[%s5957_s8 + $0x2] sm:$0x3] }
 0xab0   :  { %v5397_v61 = vadd.f32 %v1867_v37, %v5229_v31  ;;  %v4003_v48 = vadd.f32 %v4002_v41, %v4001_v23 }
 0xab1   :  { %v4004_v49 = vpop.f32.mrf.mxu1 }
 0xab2   :  { %v1897_v15 = vsel %vm200_vm0, %v5397_v61, 0.0  ;;  %v1872_v51 = vadd.f32 %v4003_v48, %v3776_v19  ;;  %2077 = vmatpush1.bf16.msra.mxu0 %v4398_v26  ;;  %v2008_v26 = vrot.slane %v3805_v10, %v4978_v52 }
 0xab3   :  { %1898 = vadd.xlane.f32.xlu0 %v1897_v15  ;;  %v4005_v3 = vpop.f32.mrf.mxu1  ;;  %2078 = vmatprep.subr.bf16.mxu0 %v4403_v45  ;;  %v5493_v45 = vrot.slane %v3805_v10, %v4983_v44 }
 0xab4   :  { %v5402_v32 = vadd.f32 %v1872_v51, %v5234_v34  ;;  %v4006_v20 = vadd.f32 %v4005_v3, %v4004_v49 }
 0xab6   :  { %v1875_v53 = vadd.f32 %v4006_v20, %v3776_v19  ;;  %v1900_v56 = vsel %vm200_vm0, %v5402_v32, 0.0  ;;  %2079 = vmatpush1.bf16.msra.mxu0 %v4401_v36 }
 0xab7   :  { %1901 = vadd.xlane.f32.xlu1 %v1900_v56 }
 0xab8   :  { %v5407_v31 = vadd.f32 %v1875_v53, %v5239_v40 }
 0xaba   :  { %v1903_v57 = vsel %vm200_vm0, %v5407_v31, 0.0 }
 0xabb   :  { %1904 = vadd.xlane.f32.xlu0 %v1903_v57 }
 0xb30   :  { %v1890_v46 = vpop.xlane.xlu1 %1889 }
 0xb31   :  { %v1906_v62 = vmul.f32 0.015625, %v1890_v46 }
 0xb33   :  { %v5412_v38 = vsub.f32 %v5382_v12, %v1906_v62  ;;  %v3795_v62 = vld [vmem:[%s5955_s5 + $0x1] ss:$0 sm:$0xff] }
 0xb34   :  { %v1893_v34 = vpop.xlane.xlu0 %1892 }
 0xb35   :  { %v1907_v1 = vmul.f32 0.015625, %v1893_v34  ;;  %v1918_v16 = vmul.f32 %v5412_v38, %v5412_v38 }
 0xb37   :  { %v5417_v17 = vsub.f32 %v5387_v35, %v1907_v1  ;;  %v1924_v40 = vsel %vm200_vm0, %v1918_v16, 0.0 }
 0xb38   :  { %1925 = vadd.xlane.f32.xlu1 %v1924_v40  ;;  %v1896_v43 = vpop.xlane.xlu1 %1895 }
 0xb39   :  { %v1908_v5 = vmul.f32 0.015625, %v1896_v43  ;;  %v1919_v42 = vmul.f32 %v5417_v17, %v5417_v17 }
 0xb3b   :  { %v5423_v55 = vsub.f32 %v5392_v25, %v1908_v5  ;;  %v1927_v54 = vsel %vm200_vm0, %v1919_v42, 0.0  ;;  %v3796_v42 = vld [vmem:[%s5956_s6 + $0x1] ss:$0 sm:$0xff] }
 0xb3c   :  { %1928 = vadd.xlane.f32.xlu0 %v1927_v54  ;;  %v1899_v63 = vpop.xlane.xlu0 %1898 }
 0xb3d   :  { %v1909_v27 = vmul.f32 0.015625, %v1899_v63  ;;  %v1920_v7 = vmul.f32 %v5423_v55, %v5423_v55 }
 0xb3f   :  { %v5429_v58 = vsub.f32 %v5397_v61, %v1909_v27  ;;  %v1930_v24 = vsel %vm200_vm0, %v1920_v7, 0.0 }
 0xb40   :  { %1931 = vadd.xlane.f32.xlu1 %v1930_v24  ;;  %v1902_v11 = vpop.xlane.xlu1 %1901 }
 0xb41   :  { %v1921_v28 = vmul.f32 %v5429_v58, %v5429_v58  ;;  %v1910_v50 = vmul.f32 0.015625, %v1902_v11 }
 0xb43   :  { %v1933_v14 = vsel %vm200_vm0, %v1921_v28, 0.0  ;;  %v5436_v6 = vsub.f32 %v5402_v32, %v1910_v50 }
 0xb44   :  { %1934 = vadd.xlane.f32.xlu0 %v1933_v14  ;;  %v1905_v19 = vpop.xlane.xlu0 %1904 }
 0xb45   :  { %v1911_v60 = vmul.f32 0.015625, %v1905_v19  ;;  %v1922_v47 = vmul.f32 %v5436_v6, %v5436_v6 }
 0xb47   :  { %v5441_v22 = vsub.f32 %v5407_v31, %v1911_v60  ;;  %v1936_v29 = vsel %vm200_vm0, %v1922_v47, 0.0 }
 0xb48   :  { %1937 = vadd.xlane.f32.xlu1 %v1936_v29 }
 0xb49   :  { %v1923_v13 = vmul.f32 %v5441_v22, %v5441_v22 }
 0xb4b   :  { %v1939_v4 = vsel %vm200_vm0, %v1923_v13, 0.0 }
 0xb4c   :  { %1940 = vadd.xlane.f32.xlu0 %v1939_v4 }
 0xbc1   :  { %v1926_v30 = vpop.xlane.xlu1 %1925 }
 0xbc2   :  { %v1942_v21 = vmul.f32 0.015625, %v1926_v30 }
 0xbc4   :  { %v1948_v37 = vadd.f32 1e-06, %v1942_v21 }
 0xbc5   :  { %v1929_v23 = vpop.xlane.xlu0 %1928 }
 0xbc6   :  { %4536 = vrsqrt.f32 %v1948_v37  ;;  %v1943_v39 = vmul.f32 0.015625, %v1929_v23 }
 0xbc8   :  { %v1949_v41 = vadd.f32 1e-06, %v1943_v39 }
 0xbc9   :  { %v1932_v48 = vpop.xlane.xlu1 %1931 }
 0xbca   :  { %4538 = vrsqrt.f32 %v1949_v41  ;;  %v1944_v49 = vmul.f32 0.015625, %v1932_v48 }
 0xbcc   :  { %v1950_v15 = vadd.f32 1e-06, %v1944_v49 }
 0xbcd   :  { %v1935_v51 = vpop.xlane.xlu0 %1934 }
 0xbce   :  { %4540 = vrsqrt.f32 %v1950_v15  ;;  %v1945_v3 = vmul.f32 0.015625, %v1935_v51 }
 0xbd0   :  { %v1951_v20 = vadd.f32 1e-06, %v1945_v3 }
 0xbd1   :  { %v1938_v53 = vpop.xlane.xlu1 %1937 }
 0xbd2   :  { %4542 = vrsqrt.f32 %v1951_v20  ;;  %v1946_v57 = vmul.f32 0.015625, %v1938_v53 }
 0xbd3   :  { %v4537_v56 = vpop.eup %4536 }
 0xbd4   :  { %v1960_v46 = vmul.f32 %v4537_v56, %v5412_v38  ;;  %v1952_v34 = vadd.f32 1e-06, %v1946_v57 }
 0xbd5   :  { %v1941_v1 = vpop.xlane.xlu0 %1940 }
 0xbd6   :  { %4544 = vrsqrt.f32 %v1952_v34  ;;  %v1947_v40 = vmul.f32 0.015625, %v1941_v1  ;;  %v1972_v43 = vmul.f32 %v3795_v62, %v1960_v46 }
 0xbd7   :  { %v4539_v16 = vpop.eup %4538 }
 0xbd8   :  { %v1961_v5 = vmul.f32 %v4539_v16, %v5417_v17  ;;  %v1953_v54 = vadd.f32 1e-06, %v1947_v40  ;;  %v1984_v38 = vadd.f32 %v3796_v42, %v1972_v43 }
 0xbda   :  { %v1973_v63 = vmul.f32 %v3795_v62, %v1961_v5  ;;  %4546 = vrsqrt.f32 %v1953_v54 }
 0xbdb   :  { %v4541_v27 = vpop.eup %4540 }
 0xbdc   :  { %v1985_v7 = vadd.f32 %v3796_v42, %v1973_v63  ;;  %v1962_v24 = vmul.f32 %v4541_v27, %v5423_v55 }
 0xbde   :  { %v1990_v11 = vpack.c.bf16 %v1985_v7, %v1984_v38  ;;  %v1974_v14 = vmul.f32 %v3795_v62, %v1962_v24 }
 0xbdf   :  { %v4543_v28 = vpop.eup %4542 }
 0xbe0   :  { %3814 = vmatmul.mubr.msk.bf16.vlgmr.msra.gmra.mxu0 %vm200_vm0, %v1990_v11  ;;  %v1963_v50 = vmul.f32 %v4543_v28, %v5429_v58  ;;  %v1986_v60 = vadd.f32 %v3796_v42, %v1974_v14 }
 0xbe1   :  { %2106 = vmatprep.mubr.bf16.mxu0 %v4644_v0 }
 0xbe2   :  { %v1975_v17 = vmul.f32 %v3795_v62, %v1963_v50 }
 0xbe3   :  { %v4545_v19 = vpop.eup %4544 }
 0xbe4   :  { %v1987_v47 = vadd.f32 %v3796_v42, %v1975_v17  ;;  %v1964_v29 = vmul.f32 %v4545_v19, %v5436_v6 }
 0xbe6   :  { %v1991_v13 = vpack.c.bf16 %v1987_v47, %v1986_v60  ;;  %v1976_v18 = vmul.f32 %v3795_v62, %v1964_v29 }
 0xbe7   :  { %v4547_v4 = vpop.eup %4546 }
 0xbe8   :  { %3815 = vmatmul.mubr.msk.bf16.gmra.mxu0 %vm200_vm0, %v1991_v13  ;;  %v1965_v55 = vmul.f32 %v4547_v4, %v5441_v22  ;;  %v1988_v58 = vadd.f32 %v3796_v42, %v1976_v18 }
 0xbe9   :  { %2116 = vmatprep.mubr.bf16.mxu0 %v4644_v0 }
 0xbea   :  { %v1977_v9 = vmul.f32 %v3795_v62, %v1965_v55 }
 0xbec   :  { %v1989_v8 = vadd.f32 %v3796_v42, %v1977_v9 }
 0xbee   :  { %v1992_v33 = vpack.c.bf16 %v1989_v8, %v1988_v58 }
 0xbf0   :  { %3816 = vmatmul.mubr.msk.bf16.gmra.mxu0 %vm200_vm0, %v1992_v33 }
 0xca0   :  { %v2098_v6 = vpop.f32.mrf.mxu0 }
 0xca1   :  { %v2099_v22 = vadd.f32 %v2098_v6, %v2008_v26 }
 0xca2   :  { %v2100_v36 = vpop.f32.mrf.mxu0 }
 0xca3   :  { %v2101_v23 = vadd.f32 %v2100_v36, %v5493_v45 }
 0xca4   :  { %v2102_v30 = vpop.f32.mrf.mxu0 }
 0xca5   :  { %v2103_v21 = vadd.f32 %v2102_v30, %v2008_v26 }
 0xca6   :  { %v2104_v37 = vpop.f32.mrf.mxu0 }
 0xca7   :  { %v2127_v39 = vpack.c.bf16 %v2103_v21, %v2099_v22  ;;  %v2105_v41 = vadd.f32 %v2104_v37, %v5493_v45 }
 0xca8   :  { %v2108_v48 = vpop.f32.mrf.mxu0 }
 0xca9   :  { %v5497_v49 = vpack.c.bf16 %v2105_v41, %v2101_v23  ;;  %4175 = vmatprep.mubr.msk.bf16.mxu0 %vm546_vm2, %v2127_v39  ;;  %v2109_v3 = vadd.f32 %v2108_v48, %v2008_v26 }
 0xcaa   :  { %v2110_v15 = vpop.f32.mrf.mxu0 }
 0xcab   :  { %v2111_v56 = vadd.f32 %v2110_v15, %v5493_v45 }
 0xcac   :  { %v2112_v51 = vpop.f32.mrf.mxu0 }
 0xcad   :  { %v2113_v20 = vadd.f32 %v2112_v51, %v2008_v26 }
 0xcae   :  { %v2114_v53 = vpop.f32.mrf.mxu0 }
 0xcaf   :  { %v2129_v57 = vpack.c.bf16 %v2113_v20, %v2109_v3  ;;  %v2115_v46 = vadd.f32 %v2114_v53, %v5493_v45 }
 0xcb0   :  { %v2118_v34 = vpop.f32.mrf.mxu0 }
 0xcb1   :  { %v5502_v62 = vpack.c.bf16 %v2115_v46, %v2111_v56  ;;  %2137 = vrot.lane.b32.xlu1 %v2129_v57, %s4646_s25  ;;  %v2119_v40 = vadd.f32 %v2118_v34, %v2008_v26  ;;  %v2200_v54 = vrot.slane %v2129_v57, 4 }
 0xcb2   :  { %v2120_v1 = vpop.f32.mrf.mxu0 }
 0xcb3   :  { %v2121_v8 = vadd.f32 %v2120_v1, %v5493_v45  ;;  %v2572_v6 = vsel %vm608_vm3, %v5502_v62, 0  ;;  %v2629_v30 = vrot.slane %v5502_v62, 4 }
 0xcb4   :  { %v2122_v16 = vpop.f32.mrf.mxu0 }
 0xcb5   :  { %2135 = vrot.lane.b32.xlu1 %v2127_v39, %s4646_s25  ;;  %v2123_v43 = vadd.f32 %v2122_v16, %v2008_v26 }
 0xcb6   :  { %v2124_v13 = vpop.f32.mrf.mxu0 }
 0xcb7   :  { %v2131_v5 = vpack.c.bf16 %v2123_v43, %v2119_v40  ;;  %v2125_v18 = vadd.f32 %v2124_v13, %v5493_v45 }
 0xcb9   :  { %v2201_v42 = vrot.slane %v2131_v5, 4  ;;  %v2132_v33 = vpack.c.bf16 %v2125_v18, %v2121_v8 }
 0xcbb   :  { %2205 = vrot.lane.b32.xlu0 %v2201_v42, %s4646_s25  ;;  %v2202_v63 = vsel %vm608_vm3, %v2200_v54, %v2201_v42  ;;  %v5545_v26 = vrot.slane %v2132_v33, 4 }
 0xcbc   :  { %2203 = vrot.lane.b32.xlu1 %v2202_v63, %s4646_s25  ;;  %4183 = vmatprep.mubr.msk.bf16.mxu1 %vm546_vm2, %v2202_v63 }
 0xcbd   :  { %v2640_v22 = vsel %vm608_vm3, %v5545_v26, 0  ;;  %v5557_v21 = vsel %vm608_vm3, %v2629_v30, %v5545_v26 }
 0xcbf   :  { %2341 = vrot.lane.b32.xlu0 %v2201_v42, %s4647_s27 }
 0xcc0   :  { %2273 = vrot.lane.b32.xlu1 %v2129_v57, %s4647_s27 }
 0xcc3   :  { %2339 = vrot.lane.b32.xlu0 %v2202_v63, %s4647_s27 }
 0xcc4   :  { %2271 = vrot.lane.b32.xlu1 %v2127_v39, %s4647_s27 }
 0xcc7   :  { %2269 = vrot.lane.b32.xlu0 %v2129_v57, %s4648_s4 }
 0xcc8   :  { %2267 = vrot.lane.b32.xlu1 %v2127_v39, %s4648_s4 }
 0xccb   :  { %2337 = vrot.lane.b32.xlu0 %v2201_v42, %s4648_s4 }
 0xccc   :  { %2335 = vrot.lane.b32.xlu1 %v2202_v63, %s4648_s4 }
 0xd23   :  { %v2138_v27 = vpop.permute.xlu1 %2137 }
 0xd24   :  { %v2149_v38 = vsel %vm546_vm2, %v2138_v27, 0  ;;  %4287 = vmatprep.subr.msk.bf16.mxu0 %vm546_vm2, %v2138_v27 }
 0xd25   :  { %4172 = vmatpush3.bf16.xpose.msra.mxu0 %v2149_v38 }
 0xd27   :  { %v2136_v7 = vpop.permute.xlu1 %2135 }
 0xd28   :  { %4288 = vmatprep.subr.msk.bf16.mxu0 %vm546_vm2, %v2136_v7  ;;  %v2146_v24 = vsel %vm546_vm2, %v2136_v7, 0 }
 0xd2d   :  { %4174 = vmatpush3.bf16.xpose.msra.mxu0 %v2146_v24  ;;  %v2206_v11 = vpop.permute.xlu0 %2205 }
 0xd2e   :  { %v2217_v28 = vsel %vm546_vm2, %v2206_v11, 0  ;;  %4289 = vmatprep.subr.msk.bf16.mxu1 %vm546_vm2, %v2206_v11  ;;  %v2204_v50 = vpop.permute.xlu1 %2203 }
 0xd2f   :  { %4180 = vmatpush3.bf16.xpose.msra.mxu1 %v2217_v28  ;;  %v2214_v19 = vsel %vm546_vm2, %v2204_v50, 0 }
 0xd30   :  { %4290 = vmatprep.subr.msk.bf16.mxu1 %vm546_vm2, %v2204_v50 }
 0xd31   :  { %v2342_v60 = vpop.permute.xlu0 %2341 }
 0xd32   :  { %v2274_v14 = vpop.permute.xlu1 %2273  ;;  %v2353_v9 = vsel %vm546_vm2, %v2342_v60, 0 }
 0xd33   :  { %v2285_v17 = vsel %vm546_vm2, %v2274_v14, 0  ;;  %4291 = vmatprep.subr.msk.bf16.mxu0 %vm546_vm2, %v2274_v14 }
 0xd34   :  { %4176 = vmatmul.mubr.msk.bf16.vlgmr.msra.gmra.mxu0 %vm546_vm2, %v2129_v57 }
 0xd35   :  { %4188 = vmatpush3.bf16.xpose.msra.mxu0 %v2285_v17  ;;  %v2340_v55 = vpop.permute.xlu0 %2339 }
 0xd36   :  { %v2272_v47 = vpop.permute.xlu1 %2271  ;;  %v2350_v36 = vsel %vm546_vm2, %v2340_v55, 0 }
 0xd37   :  { %4182 = vmatpush3.bf16.xpose.msra.mxu1 %v2214_v19  ;;  %4292 = vmatprep.subr.msk.bf16.mxu0 %vm546_vm2, %v2272_v47  ;;  %v2282_v4 = vsel %vm546_vm2, %v2272_v47, 0 }
 0xd38   :  { %4293 = vmatprep.subr.msk.bf16.mxu1 %vm546_vm2, %v2342_v60 }
 0xd39   :  { %v2270_v10 = vpop.permute.xlu0 %2269 }
 0xd3a   :  { %v2268_v29 = vpop.permute.xlu1 %2267 }
 0xd3b   :  { %4191 = vmatprep.mubr.msk.bf16.mxu0 %vm546_vm2, %v2268_v29 }
 0xd3d   :  { %4190 = vmatpush3.bf16.xpose.msra.mxu0 %v2282_v4  ;;  %v2338_v45 = vpop.permute.xlu0 %2337 }
 0xd3e   :  { %4295 = vmatprep.subr.msk.bf16.mxu0 %vm608_vm3, %v5502_v62  ;;  %4184 = vmatmul.mubr.msk.bf16.vlgmr.msra.gmra.mxu1 %vm546_vm2, %v2201_v42  ;;  %v2336_v58 = vpop.permute.xlu1 %2335 }
 0xd3f   :  { %4196 = vmatpush3.bf16.xpose.msra.mxu1 %v2353_v9  ;;  %4199 = vmatprep.mubr.msk.bf16.mxu1 %vm546_vm2, %v2336_v58 }
 0xd40   :  { %4294 = vmatprep.subr.msk.bf16.mxu1 %vm546_vm2, %v2340_v55 }
 0xd44   :  { %4192 = vmatmul.mubr.msk.bf16.vlgmr.msra.gmra.mxu0 %vm546_vm2, %v2270_v10 }
 0xd45   :  { %4204 = vmatpush3.bf16.msra.mxu0 %v2572_v6 }
 0xd46   :  { %4205 = vmatprep.subr.bf16.mxu0 %v5497_v49 }
 0xd47   :  { %4198 = vmatpush3.bf16.xpose.msra.mxu1 %v2350_v36 }
 0xd48   :  { %4296 = vmatprep.subr.msk.bf16.mxu1 %vm608_vm3, %v5545_v26 }
 0xd49   :  { %4206 = vmatpush3.bf16.msra.mxu0 %v5497_v49 }
 0xd4e   :  { %4200 = vmatmul.mubr.msk.bf16.vlgmr.msra.gmra.mxu1 %vm546_vm2, %v2338_v45 }
 0xd4f   :  { %4212 = vmatpush3.bf16.msra.mxu1 %v2640_v22 }
 0xd50   :  { %4213 = vmatprep.subr.bf16.mxu1 %v5557_v21 }
 0xd53   :  { %4214 = vmatpush3.bf16.msra.mxu1 %v5557_v21 }
 0xdf4   :  { %v4177_v37 = vpop.f32.mrf.mxu0 }
 0xdf5   :  { %v2405_v23 = vmul.f32 0.17677669, %v4177_v37 }
 0xdf6   :  { %v2185_v39 = vpop.f32.mrf.mxu0 }
 0xdf7   :  { %v2403_v41 = vmul.f32 0.17677669, %v2185_v39  ;;  %v5562_v48 = vadd.f32 %v2405_v23, %v5047_v59 }
 0xdf8   :  { %v4178_v15 = vpop.f32.mrf.mxu0 }
 0xdf9   :  { %v2433_v51 = vsel %vm836_vm7, %v5562_v48, -inf  ;;  %v5567_v3 = vadd.f32 %v2403_v41, %v5047_v59 }
 0xdfa   :  { %2434 = vmax.xlane.f32.xlu0 %v2433_v51  ;;  %v2188_v20 = vpop.f32.mrf.mxu0 }
 0xdfb   :  { %v2404_v53 = vmul.f32 0.17677669, %v2188_v20  ;;  %v2427_v56 = vsel %vm836_vm7, %v5567_v3, -inf }
 0xdfc   :  { %2428 = vmax.xlane.f32.xlu1 %v2427_v56 }
 0xdfd   :  { %v2416_v57 = vadd.f32 %v2404_v53, %v5047_v59 }
 0xdfe   :  { %v4185_v46 = vpop.f32.mrf.mxu1 }
 0xdff   :  { %v2430_v34 = vsel %vm836_vm7, %v2416_v57, -inf  ;;  %v2408_v1 = vmul.f32 0.17677669, %v4185_v46 }
 0xe00   :  { %2431 = vmax.xlane.f32.xlu0 %v2430_v34  ;;  %v2253_v16 = vpop.f32.mrf.mxu1 }
 0xe01   :  { %v2406_v40 = vmul.f32 0.17677669, %v2253_v16  ;;  %v2420_v43 = vadd.f32 %v2408_v1, %v5047_v59 }
 0xe02   :  { %v4186_v5 = vpop.f32.mrf.mxu1 }
 0xe03   :  { %v2442_v42 = vsel %vm836_vm7, %v2420_v43, -inf  ;;  %v2418_v63 = vadd.f32 %v2406_v40, %v5047_v59 }
 0xe04   :  { %v4193_v54 = vpop.f32.mrf.mxu0  ;;  %2443 = vmax.xlane.f32.xlu0 %v2442_v42  ;;  %v2256_v27 = vpop.f32.mrf.mxu1 }
 0xe05   :  { %v2407_v38 = vmul.f32 0.17677669, %v2256_v27  ;;  %v2411_v7 = vmul.f32 0.17677669, %v4193_v54  ;;  %v2436_v11 = vsel %vm836_vm7, %v2418_v63, -inf }
 0xe06   :  { %v2321_v24 = vpop.f32.mrf.mxu0 }
 0xe07   :  { %v2419_v50 = vadd.f32 %v2407_v38, %v5047_v59  ;;  %v2409_v14 = vmul.f32 0.17677669, %v2321_v24  ;;  %v2423_v60 = vadd.f32 %v2411_v7, %v5047_v59 }
 0xe08   :  { %v4194_v28 = vpop.f32.mrf.mxu0  ;;  %2437 = vmax.xlane.f32.xlu0 %v2436_v11 }
 0xe09   :  { %v2439_v17 = vsel %vm836_vm7, %v2419_v50, -inf  ;;  %v5582_v13 = vadd.f32 %v2409_v14, %v5047_v59  ;;  %v2451_v4 = vsel %vm836_vm7, %v2423_v60, -inf }
 0xe0a   :  { %v2324_v19 = vpop.f32.mrf.mxu0  ;;  %2440 = vmax.xlane.f32.xlu1 %v2439_v17 }
 0xe0b   :  { %v2410_v47 = vmul.f32 0.17677669, %v2324_v19  ;;  %v2445_v33 = vsel %vm836_vm7, %v5582_v13, -inf }
 0xe0d   :  { %v2422_v29 = vadd.f32 %v2410_v47, %v5047_v59 }
 0xe0e   :  { %2452 = vmax.xlane.f32.xlu1 %v2451_v4  ;;  %v4201_v55 = vpop.f32.mrf.mxu1 }
 0xe0f   :  { %v2448_v18 = vsel %vm836_vm7, %v2422_v29, -inf  ;;  %v2414_v58 = vmul.f32 0.17677669, %v4201_v55 }
 0xe10   :  { %2449 = vmax.xlane.f32.xlu0 %v2448_v18  ;;  %v2389_v9 = vpop.f32.mrf.mxu1 }
 0xe11   :  { %v2412_v8 = vmul.f32 0.17677669, %v2389_v9  ;;  %v5592_v45 = vadd.f32 %v2414_v58, %v5047_v59 }
 0xe12   :  { %2446 = vmax.xlane.f32.xlu1 %v2445_v33  ;;  %v4202_v10 = vpop.f32.mrf.mxu1 }
 0xe13   :  { %v5589_v6 = vadd.f32 %v2412_v8, %v5047_v59  ;;  %v2460_v23 = vsel %vm836_vm7, %v5592_v45, -inf }
 0xe14   :  { %v2392_v36 = vpop.f32.mrf.mxu1 }
 0xe15   :  { %v2413_v30 = vmul.f32 0.17677669, %v2392_v36  ;;  %v2454_v22 = vsel %vm836_vm7, %v5589_v6, -inf }
 0xe16   :  { %2455 = vmax.xlane.f32.xlu0 %v2454_v22 }
 0xe17   :  { %v5597_v37 = vadd.f32 %v2413_v30, %v5047_v59 }
 0xe19   :  { %v2457_v39 = vsel %vm836_vm7, %v5597_v37, -inf }
 0xe1a   :  { %2461 = vmax.xlane.f32.xlu0 %v2460_v23  ;;  %2458 = vmax.xlane.f32.xlu1 %v2457_v39 }
 0xe2b   :  { %2693 = vrot.lane.b32.xlu1 %v5502_v62, %s4648_s4 }
 0xe83   :  { %v2435_v41 = vpop.xlane.xlu0 %2434 }
 0xe84   :  { %v2465_v15 = vsub.f32 %v5562_v48, %v2435_v41 }
 0xe85   :  { %v2429_v51 = vpop.xlane.xlu1 %2428 }
 0xe86   :  { %v2479_v20 = vmul.f32 1.442695, %v2465_v15  ;;  %v2463_v53 = vsub.f32 %v5567_v3, %v2429_v51 }
 0xe88   :  { %4548 = vpow2.f32 %v2479_v20  ;;  %v2475_v59 = vmul.f32 1.442695, %v2463_v53 }
 0xe89   :  { %v2432_v56 = vpop.xlane.xlu0 %2431 }
 0xe8a   :  { %4550 = vpow2.f32 %v2475_v59  ;;  %v2464_v46 = vsub.f32 %v2416_v57, %v2432_v56 }
 0xe8c   :  { %v2477_v34 = vmul.f32 1.442695, %v2464_v46 }
 0xe8d   :  { %v2444_v1 = vpop.xlane.xlu0 %2443 }
 0xe8e   :  { %4552 = vpow2.f32 %v2477_v34  ;;  %v2468_v16 = vsub.f32 %v2420_v43, %v2444_v1 }
 0xe90   :  { %v2485_v40 = vmul.f32 1.442695, %v2468_v16 }
 0xe91   :  { %v2438_v5 = vpop.xlane.xlu0 %2437 }
 0xe92   :  { %4554 = vpow2.f32 %v2485_v40  ;;  %v2466_v62 = vsub.f32 %v2418_v63, %v2438_v5 }
 0xe93   :  { %v2441_v42 = vpop.xlane.xlu1 %2440 }
 0xe94   :  { %v2481_v48 = vmul.f32 1.442695, %v2466_v62  ;;  %v2467_v27 = vsub.f32 %v2419_v50, %v2441_v42 }
 0xe95   :  { %v5607_v54 = vpop.eup %4548 }
 0xe96   :  { %v2505_v3 = vsel %vm836_vm7, %v5607_v54, 0.0  ;;  %4556 = vpow2.f32 %v2481_v48  ;;  %v2483_v57 = vmul.f32 1.442695, %v2467_v27 }
 0xe97   :  { %v5611_v38 = vpop.eup %4550  ;;  %2506 = vadd.xlane.f32.xlu1 %v2505_v3  ;;  %v2453_v7 = vpop.xlane.xlu1 %2452 }
 0xe98   :  { %4558 = vpow2.f32 %v2483_v57  ;;  %v2471_v43 = vsub.f32 %v2423_v60, %v2453_v7  ;;  %v2499_v63 = vsel %vm836_vm7, %v5611_v38, 0.0 }
 0xe99   :  { %v2450_v24 = vpop.xlane.xlu0 %2449 }
 0xe9a   :  { %v2470_v11 = vsub.f32 %v2422_v29, %v2450_v24  ;;  %v2491_v14 = vmul.f32 1.442695, %v2471_v43 }
 0xe9b   :  { %v5615_v28 = vpop.eup %4552  ;;  %2500 = vadd.xlane.f32.xlu1 %v2499_v63  ;;  %v2447_v17 = vpop.xlane.xlu1 %2446 }
 0xe9c   :  { %v2489_v50 = vmul.f32 1.442695, %v2470_v11  ;;  %v2502_v19 = vsel %vm836_vm7, %v5615_v28, 0.0  ;;  %4560 = vpow2.f32 %v2491_v14  ;;  %v2469_v47 = vsub.f32 %v5582_v13, %v2447_v17 }
 0xe9d   :  { %2503 = vadd.xlane.f32.xlu0 %v2502_v19 }
 0xe9e   :  { %4562 = vpow2.f32 %v2489_v50  ;;  %v2487_v60 = vmul.f32 1.442695, %v2469_v47 }
 0xe9f   :  { %v5620_v4 = vpop.eup %4554  ;;  %v2456_v29 = vpop.xlane.xlu0 %2455 }
 0xea0   :  { %4564 = vpow2.f32 %v2487_v60  ;;  %v2514_v55 = vsel %vm836_vm7, %v5620_v4, 0.0  ;;  %v2472_v18 = vsub.f32 %v5589_v6, %v2456_v29 }
 0xea1   :  { %2515 = vadd.xlane.f32.xlu0 %v2514_v55 }
 0xea2   :  { %v2493_v36 = vmul.f32 1.442695, %v2472_v18 }
 0xea3   :  { %v5625_v9 = vpop.eup %4556  ;;  %v2462_v58 = vpop.xlane.xlu0 %2461 }
 0xea4   :  { %v2459_v8 = vpop.xlane.xlu1 %2458  ;;  %v2474_v33 = vsub.f32 %v5592_v45, %v2462_v58  ;;  %v2508_v13 = vsel %vm836_vm7, %v5625_v9, 0.0 }
 0xea5   :  { %v5630_v10 = vpop.eup %4558  ;;  %2509 = vadd.xlane.f32.xlu0 %v2508_v13  ;;  %v2473_v46 = vsub.f32 %v5597_v37, %v2459_v8 }
 0xea6   :  { %v2497_v30 = vmul.f32 1.442695, %v2474_v33  ;;  %v2511_v22 = vsel %vm836_vm7, %v5630_v10, 0.0 }
 0xea7   :  { %2512 = vadd.xlane.f32.xlu1 %v2511_v22  ;;  %v2495_v34 = vmul.f32 1.442695, %v2473_v46 }
 0xea8   :  { %v5634_v23 = vpop.permute.xlu1 %2693  ;;  %4566 = vpow2.f32 %v2497_v30 }
 0xea9   :  { %4297 = vmatprep.subr.msk.bf16.mxu0 %vm608_vm3, %v5634_v23  ;;  %v5638_v6 = vpop.eup %4560  ;;  %4568 = vpow2.f32 %v2493_v36  ;;  %v2703_v29 = vsel %vm608_vm3, %v5634_v23, 0 }
 0xeaa   :  { %v2523_v39 = vsel %vm836_vm7, %v5638_v6, 0.0  ;;  %4570 = vpow2.f32 %v2495_v34 }
 0xeab   :  { %v5640_v45 = vpop.eup %4562  ;;  %2524 = vadd.xlane.f32.xlu1 %v2523_v39 }
 0xeac   :  { %v2520_v41 = vsel %vm836_vm7, %v5640_v45, 0.0 }
 0xead   :  { %2521 = vadd.xlane.f32.xlu0 %v2520_v41  ;;  %v5646_v15 = vpop.eup %4564 }
 0xeae   :  { %v2517_v51 = vsel %vm836_vm7, %v5646_v15, 0.0 }
 0xeaf   :  { %2518 = vadd.xlane.f32.xlu1 %v2517_v51 }
 0xeb5   :  { %v5650_v20 = vpop.eup %4566 }
 0xeb6   :  { %v2532_v53 = vsel %vm836_vm7, %v5650_v20, 0.0  ;;  %v5654_v59 = vpop.eup %4568 }
 0xeb7   :  { %2533 = vadd.xlane.f32.xlu0 %v2532_v53  ;;  %v2526_v56 = vsel %vm836_vm7, %v5654_v59, 0.0  ;;  %v5663_v1 = vpop.eup %4570 }
 0xeb8   :  { %v2529_v16 = vsel %vm836_vm7, %v5663_v1, 0.0 }
 0xebb   :  { %2527 = vadd.xlane.f32.xlu0 %v2526_v56 }
 0xec0   :  { %2760 = vrot.lane.b32.xlu1 %v5545_v26, %s4648_s4 }
 0xed1   :  { %2691 = vrot.lane.b32.xlu0 %v5497_v49, %s4648_s4 }
 0xee4   :  { %2530 = vadd.xlane.f32.xlu1 %v2529_v16 }
 0xef5   :  { %2758 = vrot.lane.b32.xlu1 %v5557_v21, %s4648_s4 }
 0xf20   :  { %v2507_v40 = vpop.xlane.xlu1 %2506 }
 0xf24   :  { %v2501_v5 = vpop.xlane.xlu1 %2500 }
 0xf25   :  { %4572 = vrcp.f32 %v2501_v5  ;;  %v4404_v5 = vld [vmem:[%s5958_s9 + $0x38] sm:$0xff]  }
 0xf26   :  { %v2504_v26 = vpop.xlane.xlu0 %2503 }
 0xf27   :  { %4574 = vrcp.f32 %v2504_v26 }
 0xf28   :  { %4576 = vrcp.f32 %v2507_v40 }
 0xf2a   :  { %v2516_v37 = vpop.xlane.xlu0 %2515 }
 0xf2b   :  { %4578 = vrcp.f32 %v2516_v37 }
 0xf2e   :  { %v2510_v62 = vpop.xlane.xlu0 %2509 }
 0xf2f   :  { %4580 = vrcp.f32 %v2510_v62 }
 0xf30   :  { %v2513_v49 = vpop.xlane.xlu1 %2512 }
 0xf31   :  { %4582 = vrcp.f32 %v2513_v49 }
 0xf32   :  { %v4573_v42 = vpop.eup %4572 }
 0xf33   :  { %v2547_v3 = vmul.f32 %v4573_v42, %v5611_v38 }
 0xf34   :  { %v4575_v48 = vpop.eup %4574  ;;  %v2525_v27 = vpop.xlane.xlu1 %2524 }
 0xf35   :  { %v2548_v57 = vmul.f32 %v4575_v48, %v5615_v28  ;;  %v4577_v24 = vpop.eup %4576 }
 0xf36   :  { %v2522_v21 = vpop.xlane.xlu0 %2521  ;;  %v2549_v50 = vmul.f32 %v4577_v24, %v5607_v54 }
 0xf37   :  { %v2559_v7 = vpack.c.bf16 %v2548_v57, %v2547_v3  ;;  %4584 = vrcp.f32 %v2522_v21 }
 0xf38   :  { %v2519_v43 = vpop.xlane.xlu1 %2518  ;;  %v4579_v11 = vpop.eup %4578 }
 0xf39   :  { %4207 = vmatprep.mubr.msk.bf16.mxu0 %vm836_vm7, %v2559_v7  ;;  %4586 = vrcp.f32 %v2519_v43  ;;  %v2552_v47 = vmul.f32 %v4579_v11, %v5620_v4 }
 0xf3a   :  { %4588 = vrcp.f32 %v2525_v27  ;;  %v4407_v27 = vld [vmem:[%s5958_s9 + $0x20] sm:$0xff]  }
 0xf3c   :  { %v4581_v63 = vpop.eup %4580  ;;  %v2761_v14 = vpop.permute.xlu1 %2760 }
 0xf3d   :  { %4298 = vmatprep.subr.msk.bf16.mxu1 %vm608_vm3, %v2761_v14  ;;  %v2550_v17 = vmul.f32 %v4581_v63, %v5625_v9  ;;  %v2770_v4 = vsel %vm608_vm3, %v2761_v14, 0 }
 0xf3e   :  { %v4583_v38 = vpop.eup %4582 }
 0xf3f   :  { %v2560_v19 = vpack.c.bf16 %v2550_v17, %v2549_v50  ;;  %v2551_v28 = vmul.f32 %v4583_v38, %v5630_v10 }
 0xf40   :  { %v2534_v60 = vpop.xlane.xlu0 %2533 }
 0xf41   :  { %4208 = vmatmul.mubr.msk.bf16.vlgmr.msra.gmra.mxu0 %vm836_vm7, %v2560_v19  ;;  %v2561_v55 = vpack.c.bf16 %v2552_v47, %v2551_v28  ;;  %v2624_v18 = vrot.slane %v2560_v19, 4 }
 0xf42   :  { %4220 = vmatpush3.bf16.msra.mxu0 %v2703_v29 }
 0xf43   :  { %v2625_v58 = vrot.slane %v2561_v55, 4 }
 0xf44   :  { %v4585_v54 = vpop.eup %4584  ;;  %v2528_v8 = vpop.xlane.xlu0 %2527 }
 0xf45   :  { %4590 = vrcp.f32 %v2528_v8  ;;  %v2626_v9 = vsel %vm608_vm3, %v2624_v18, %v2625_v58  ;;  %v2554_v10 = vmul.f32 %v4585_v54, %v5640_v45 }
 0xf46   :  { %v4587_v33 = vpop.eup %4586  ;;  %4215 = vmatprep.mubr.msk.bf16.mxu1 %vm836_vm7, %v2626_v9  ;;  %4592 = vrcp.f32 %v2534_v60 }
 0xf47   :  { %4216 = vmatmul.mubr.msk.bf16.vlgmr.msra.gmra.mxu1 %vm836_vm7, %v2625_v58  ;;  %v2553_v13 = vmul.f32 %v4587_v33, %v5646_v15  ;;  %v4589_v22 = vpop.eup %4588 }
 0xf48   :  { %4228 = vmatpush3.bf16.msra.mxu1 %v2770_v4  ;;  %v2692_v36 = vpop.permute.xlu0 %2691  ;;  %v2555_v39 = vmul.f32 %v4589_v22, %v5638_v6 }
 0xf49   :  { %4221 = vmatprep.subr.bf16.mxu0 %v2692_v36  ;;  %v2562_v30 = vpack.c.bf16 %v2554_v10, %v2553_v13 }
 0xf4a   :  { %4222 = vmatpush3.bf16.msra.mxu0 %v2692_v36 }
 0xf4b   :  { %4223 = vmatprep.mubr.msk.bf16.mxu0 %vm836_vm7, %v2562_v30  ;;  %4235 = vmatprep.subr.bf16.mxu0 %v4645_v2 }
 0xf52   :  { %v4591_v23 = vpop.eup %4590 }
 0xf53   :  { %v2556_v41 = vmul.f32 %v4591_v23, %v5654_v59  ;;  %v4593_v53 = vpop.eup %4592 }
 0xf54   :  { %v2558_v6 = vmul.f32 %v4593_v53, %v5650_v20  ;;  %v4405_v20 = vld [vmem:[%s5958_s9 + $0x30] sm:$0xff]  }
 0xf55   :  { %v2563_v51 = vpack.c.bf16 %v2556_v41, %v2555_v39  ;;  %v3849_v41 = vld [vmem:[%s5959_s10 + $0x1] ss:$0 sm:$0xff] }
 0xf57   :  { %4224 = vmatmul.mubr.msk.bf16.vlgmr.msra.gmra.mxu0 %vm836_vm7, %v2563_v51  ;;  %v2755_v59 = vrot.slane %v2563_v51, 4 }
 0xf58   :  { %4243 = vmatprep.mubr.msk.bf16.mxu0 %vm4650_vm8, %v4645_v2  ;;  %4236 = vmatpush3.bf16.msra.mxu0 %v4404_v5 }
 0xf59   :  { %4237 = vmatprep.subr.bf16.mxu0 %v4645_v2 }
 0xf5c   :  { %4238 = vmatpush3.bf16.msra.mxu0 %v4405_v20 }
 0xf5d   :  { %4239 = vmatprep.subr.bf16.mxu0 %v4645_v2 }
 0xf6d   :  { %v2531_v45 = vpop.xlane.xlu1 %2530 }
 0xf6e   :  { %4594 = vrcp.f32 %v2531_v45 }
 0xf71   :  { %v2759_v15 = vpop.permute.xlu1 %2758 }
 0xf72   :  { %4229 = vmatprep.subr.bf16.mxu1 %v2759_v15 }
 0xf73   :  { %4230 = vmatpush3.bf16.msra.mxu1 %v2759_v15 }
 0xf7b   :  { %v4595_v56 = vpop.eup %4594 }
 0xf7c   :  { %v2557_v46 = vmul.f32 %v4595_v56, %v5663_v1  ;;  %v4406_v1 = vld [vmem:[%s5958_s9 + $0x28] sm:$0xff]  }
 0xf7d   :  { %4240 = vmatpush3.bf16.msra.mxu0 %v4406_v1 }
 0xf7e   :  { %v2564_v34 = vpack.c.bf16 %v2558_v6, %v2557_v46  ;;  %4241 = vmatprep.subr.bf16.mxu0 %v4645_v2 }
 0xf80   :  { %v2756_v16 = vrot.slane %v2564_v34, 4 }
 0xf81   :  { %4242 = vmatpush3.bf16.msra.mxu0 %v4407_v27 }
 0xf82   :  { %v2757_v40 = vsel %vm608_vm3, %v2755_v59, %v2756_v16 }
 0xf83   :  { %4231 = vmatprep.mubr.msk.bf16.mxu1 %vm836_vm7, %v2757_v40 }
 0xf84   :  { %4232 = vmatmul.mubr.msk.bf16.vlgmr.msra.gmra.mxu1 %vm836_vm7, %v2756_v16 }
 0xf85   :  { %3184 = vmatprep.mubr.bf16.mxu1 %v4644_v0 }
0x1001   :  { %v4209_v26 = vpop.f32.mrf.mxu0 }
0x1003   :  { %v2608_v37 = vpop.f32.mrf.mxu0 }
0x1005   :  { %v4210_v62 = vpop.f32.mrf.mxu0 }
0x1007   :  { %v4217_v49 = vpop.f32.mrf.mxu1  ;;  %v2611_v3 = vpop.f32.mrf.mxu0 }
0x1009   :  { %v2676_v42 = vpop.f32.mrf.mxu1 }
0x100b   :  { %v4218_v48 = vpop.f32.mrf.mxu1 }
0x100d   :  { %v2679_v11 = vpop.f32.mrf.mxu1 }
0x1017   :  { %v4225_v57 = vpop.f32.mrf.mxu0 }
0x1019   :  { %v2739_v21 = vpop.f32.mrf.mxu0 }
0x101b   :  { %v4226_v7 = vpop.f32.mrf.mxu0 }
0x101d   :  { %v2742_v43 = vpop.f32.mrf.mxu0 }
0x101e   :  { %v4321_v24 = vpack.i.bf16 %v2742_v43, %v2739_v21 }
0x1020   :  { %4322 = vrot.lane.b32.xlu1 %v4321_v24, %s4647_s27 }
0x1044   :  { %v4233_v63 = vpop.f32.mrf.mxu1 }
0x1046   :  { %v2806_v14 = vpop.f32.mrf.mxu1 }
0x1047   :  { %v4326_v50 = vpack.i.bf16 %v2806_v14, %v4225_v57 }
0x1048   :  { %v4234_v17 = vpop.f32.mrf.mxu1 }
0x1049   :  { %4327 = vrot.lane.b32.xlu0 %v4326_v50, %s4647_s27 }
0x104a   :  { %v2809_v38 = vpop.f32.mrf.mxu1 }
0x104b   :  { %v4331_v19 = vpack.i.bf16 %v4233_v63, %v2809_v38 }
0x104d   :  { %4332 = vrot.lane.b32.xlu1 %v4331_v19, %s4647_s27  ;;  %v4410_v19 = vld [vmem:[%s5960_s13 + $0x74] ss:$8 sps:$4 sm:$0xff]  }
0x104e   :  { %3160 = vmatprep.subr.bf16.mxu1 %v4410_v19 }
0x1092   :  { %v4323_v28 = vpop.permute.xlu1 %4322 }
0x1093   :  { %v4325_v47 = vunpack.i.h.bf16 %v4323_v28  ;;  %v4324_v60 = vunpack.i.l.bf16 %v4323_v28  ;;  %v4408_v28 = vld [vmem:[%s5960_s13 + $0x70] ss:$8 sps:$4 sm:$0xff]  }
0x1094   :  { %3161 = vmatpush1.bf16.msra.mxu1 %v4408_v28 }
0x1095   :  { %v2845_v29 = vsel %vm546_vm2, %v2611_v3, %v4325_v47  ;;  %v2844_v55 = vsel %vm546_vm2, %v2608_v37, %v4324_v60  ;;  %v4413_v47 = vld [vmem:[%s5960_s13 + $0x64] ss:$8 sps:$4 sm:$0xff]   ;;  %v4411_v60 = vld [vmem:[%s5960_s13 + $0x60] ss:$8 sps:$4 sm:$0xff]  }
0x1096   :  { %v2850_v18 = vpack.c.bf16 %v2845_v29, %v2844_v55  ;;  %3162 = vmatprep.subr.bf16.mxu1 %v4413_v47  ;;  %v4416_v29 = vld [vmem:[%s5960_s13 + $0x54] ss:$8 sps:$4 sm:$0xff]   ;;  %v4414_v55 = vld [vmem:[%s5960_s13 + $0x50] ss:$8 sps:$4 sm:$0xff]  }
0x1098   :  { %4244 = vmatmul.mubr.msk.bf16.vlgmr.msra.gmra.mxu0 %vm200_vm0, %v2850_v18  ;;  %3163 = vmatpush1.bf16.msra.mxu1 %v4411_v60  ;;  %v4419_v18 = vld [vmem:[%s5960_s13 + $0x44] ss:$8 sps:$4 sm:$0xff]  }
0x1099   :  { %4247 = vmatprep.mubr.msk.bf16.mxu0 %vm4650_vm8, %v4645_v2  ;;  %3164 = vmatprep.subr.bf16.mxu1 %v4416_v29 }
0x109c   :  { %3165 = vmatpush1.bf16.msra.mxu1 %v4414_v55 }
0x109d   :  { %3166 = vmatprep.subr.bf16.mxu1 %v4419_v18 }
0x10bb   :  { %v4328_v58 = vpop.permute.xlu0 %4327 }
0x10bc   :  { %v4330_v54 = vunpack.i.h.bf16 %v4328_v58  ;;  %v4329_v8 = vunpack.i.l.bf16 %v4328_v58 }
0x10be   :  { %v2847_v9 = vsel %vm546_vm2, %v2676_v42, %v4330_v54  ;;  %v2846_v33 = vsel %vm546_vm2, %v4209_v26, %v4329_v8  ;;  %v4417_v8 = vld [vmem:[%s5960_s13 + $0x40] ss:$8 sps:$4 sm:$0xff]  }
0x10bf   :  { %v2851_v4 = vpack.c.bf16 %v2847_v9, %v2846_v33  ;;  %v4333_v13 = vpop.permute.xlu1 %4332  ;;  %3167 = vmatpush1.bf16.msra.mxu1 %v4417_v8 }
0x10c0   :  { %v4335_v10 = vunpack.i.h.bf16 %v4333_v13  ;;  %v4334_v36 = vunpack.i.l.bf16 %v4333_v13  ;;  %4255 = vmatprep.subr.bf16.mxu1 %v4645_v2 }
0x10c1   :  { %4248 = vmatmul.mubr.msk.bf16.gmra.mxu0 %vm200_vm0, %v2851_v4 }
0x10c2   :  { %4251 = vmatprep.mubr.msk.bf16.mxu0 %vm4650_vm8, %v4645_v2  ;;  %v2849_v30 = vsel %vm546_vm2, %v4217_v49, %v4335_v10  ;;  %v2848_v22 = vsel %vm546_vm2, %v2679_v11, %v4334_v36 }
0x10c3   :  { %v2852_v23 = vpack.c.bf16 %v2849_v30, %v2848_v22 }
0x10c9   :  { %4252 = vmatmul.mubr.msk.bf16.gmra.mxu0 %vm200_vm0, %v2852_v23 }
0x1158   :  { %v2929_v39 = vpop.f32.mrf.mxu0 }
0x1159   :  { %v2952_v51 = vadd.f32 %v2929_v39, %v5382_v12 }
0x115a   :  { %v4245_v45 = vpop.f32.mrf.mxu0 }
0x115b   :  { %v5734_v15 = vadd.f32 %v3849_v41, %v2952_v51 }
0x115c   :  { %v2932_v53 = vpop.f32.mrf.mxu0 }
0x115d   :  { %v2953_v56 = vadd.f32 %v2932_v53, %v5387_v35  ;;  %v2976_v46 = vsel %vm200_vm0, %v5734_v15, 0.0 }
0x115e   :  { %2977 = vadd.xlane.f32.xlu0 %v2976_v46  ;;  %v4246_v6 = vpop.f32.mrf.mxu0 }
0x115f   :  { %v5739_v34 = vadd.f32 %v3849_v41, %v2953_v56 }
0x1161   :  { %v2979_v59 = vsel %vm200_vm0, %v5739_v34, 0.0 }
0x1162   :  { %2980 = vadd.xlane.f32.xlu1 %v2979_v59 }
0x1181   :  { %v2937_v16 = vpop.f32.mrf.mxu0 }
0x1182   :  { %v2954_v12 = vadd.f32 %v2937_v16, %v5392_v25 }
0x1183   :  { %v4249_v40 = vpop.f32.mrf.mxu0 }
0x1184   :  { %v5744_v5 = vadd.f32 %v3849_v41, %v2954_v12 }
0x1185   :  { %v2940_v20 = vpop.f32.mrf.mxu0 }
0x1186   :  { %v2955_v35 = vadd.f32 %v2940_v20, %v5397_v61  ;;  %v2982_v1 = vsel %vm200_vm0, %v5744_v5, 0.0 }
0x1187   :  { %2983 = vadd.xlane.f32.xlu0 %v2982_v1  ;;  %v4250_v26 = vpop.f32.mrf.mxu0 }
0x1188   :  { %v5749_v37 = vadd.f32 %v3849_v41, %v2955_v35 }
0x1189   :  { %v2945_v62 = vpop.f32.mrf.mxu0 }
0x118a   :  { %v2956_v49 = vadd.f32 %v2945_v62, %v5402_v32  ;;  %v2985_v42 = vsel %vm200_vm0, %v5749_v37, 0.0 }
0x118b   :  { %2986 = vadd.xlane.f32.xlu0 %v2985_v42  ;;  %v4253_v25 = vpop.f32.mrf.mxu0 }
0x118c   :  { %v5754_v48 = vadd.f32 %v3849_v41, %v2956_v49  ;;  %v3852_v49 = vld [vmem:[%s5961_s11 + $0x1] ss:$0 sm:$0xff] }
0x118d   :  { %v2948_v27 = vpop.f32.mrf.mxu0 }
0x118e   :  { %v2957_v61 = vadd.f32 %v2948_v27, %v5407_v31  ;;  %v2988_v3 = vsel %vm200_vm0, %v5754_v48, 0.0 }
0x118f   :  { %2989 = vadd.xlane.f32.xlu0 %v2988_v3  ;;  %v4254_v57 = vpop.f32.mrf.mxu0 }
0x1190   :  { %v5759_v21 = vadd.f32 %v3849_v41, %v2957_v61  ;;  %v3853_v61 = vld [vmem:[%s5962_s12 + $0x1] ss:$0 sm:$0xff] }
0x1192   :  { %v2991_v32 = vsel %vm200_vm0, %v5759_v21, 0.0 }
0x1193   :  { %2992 = vadd.xlane.f32.xlu1 %v2991_v32 }
0x11e7   :  { %v2978_v7 = vpop.xlane.xlu0 %2977 }
0x11e8   :  { %v2994_v43 = vmul.f32 0.015625, %v2978_v7 }
0x11ea   :  { %v3000_v24 = vsub.f32 %v5734_v15, %v2994_v43 }
0x11eb   :  { %v2981_v11 = vpop.xlane.xlu1 %2980 }
0x11ec   :  { %v2995_v63 = vmul.f32 0.015625, %v2981_v11  ;;  %v3006_v14 = vmul.f32 %v3000_v24, %v3000_v24 }
0x11ee   :  { %v3001_v31 = vsub.f32 %v5739_v34, %v2995_v63  ;;  %v3012_v50 = vsel %vm200_vm0, %v3006_v14, 0.0 }
0x11ef   :  { %3013 = vadd.xlane.f32.xlu0 %v3012_v50 }
0x11f0   :  { %v3007_v17 = vmul.f32 %v3001_v31, %v3001_v31 }
0x11f2   :  { %v3015_v38 = vsel %vm200_vm0, %v3007_v17, 0.0 }
0x11f3   :  { %3016 = vadd.xlane.f32.xlu1 %v3015_v38 }
0x1210   :  { %v2984_v58 = vpop.xlane.xlu0 %2983 }
0x1211   :  { %v2996_v54 = vmul.f32 0.015625, %v2984_v58 }
0x1213   :  { %v3002_v9 = vsub.f32 %v5744_v5, %v2996_v54 }
0x1214   :  { %v2987_v33 = vpop.xlane.xlu0 %2986 }
0x1215   :  { %v2997_v4 = vmul.f32 0.015625, %v2987_v33  ;;  %v3008_v13 = vmul.f32 %v3002_v9, %v3002_v9 }
0x1217   :  { %v3003_v10 = vsub.f32 %v5749_v37, %v2997_v4  ;;  %v3018_v36 = vsel %vm200_vm0, %v3008_v13, 0.0 }
0x1218   :  { %3019 = vadd.xlane.f32.xlu0 %v3018_v36  ;;  %v2990_v30 = vpop.xlane.xlu0 %2989 }
0x1219   :  { %v2998_v22 = vmul.f32 0.015625, %v2990_v30  ;;  %v3009_v23 = vmul.f32 %v3003_v10, %v3003_v10 }
0x121b   :  { %v3004_v39 = vsub.f32 %v5754_v48, %v2998_v22  ;;  %v3021_v41 = vsel %vm200_vm0, %v3009_v23, 0.0 }
0x121c   :  { %3022 = vadd.xlane.f32.xlu1 %v3021_v41  ;;  %v2993_v51 = vpop.xlane.xlu1 %2992 }
0x121d   :  { %v2999_v45 = vmul.f32 0.015625, %v2993_v51  ;;  %v3010_v53 = vmul.f32 %v3004_v39, %v3004_v39 }
0x121f   :  { %v3005_v56 = vsub.f32 %v5759_v21, %v2999_v45  ;;  %v3024_v46 = vsel %vm200_vm0, %v3010_v53, 0.0  ;;  %v4423_v53 = vld [vmem:[%s5963_s15 + $0xb0] sm:$0xff]  }
0x1220   :  { %3025 = vadd.xlane.f32.xlu0 %v3024_v46  ;;  %v4425_v46 = vld [vmem:[%s5963_s15 + $0xa8] sm:$0xff]  }
0x1221   :  { %v3011_v6 = vmul.f32 %v3005_v56, %v3005_v56 }
0x1223   :  { %v3027_v59 = vsel %vm200_vm0, %v3011_v6, 0.0  ;;  %v4426_v6 = vld [vmem:[%s5963_s15 + $0xe0] sm:$0xff]  }
0x1224   :  { %3028 = vadd.xlane.f32.xlu1 %v3027_v59  ;;  %v4427_v59 = vld [vmem:[%s5963_s15 + $0xa0] sm:$0xff]  }
0x1278   :  { %v3014_v16 = vpop.xlane.xlu0 %3013 }
0x1279   :  { %v3030_v12 = vmul.f32 0.015625, %v3014_v16  ;;  %v4428_v16 = vld [vmem:[%s5963_s15 + $0xd8] sm:$0xff]  }
0x127b   :  { %v3036_v40 = vadd.f32 1e-06, %v3030_v12  ;;  %v4429_v12 = vld [vmem:[%s5963_s15 + $0x98] sm:$0xff]  }
0x127c   :  { %v3017_v20 = vpop.xlane.xlu1 %3016 }
0x127d   :  { %4596 = vrsqrt.f32 %v3036_v40  ;;  %v3031_v35 = vmul.f32 0.015625, %v3017_v20  ;;  %v4430_v40 = vld [vmem:[%s5963_s15 + $0xd0] sm:$0xff]  }
0x127e   :  { %v4431_v20 = vld [vmem:[%s5963_s15 + $0x90] sm:$0xff]  }
0x127f   :  { %v3037_v1 = vadd.f32 1e-06, %v3031_v35  ;;  %v4432_v35 = vld [vmem:[%s5963_s15 + $0xc8] sm:$0xff]  }
0x1281   :  { %4598 = vrsqrt.f32 %v3037_v1  ;;  %v4433_v1 = vld [vmem:[%s5963_s15 + $0x88] sm:$0xff]  }
0x128a   :  { %v4597_v26 = vpop.eup %4596 }
0x128b   :  { %v3048_v62 = vmul.f32 %v4597_v26, %v3000_v24  ;;  %v4434_v26 = vld [vmem:[%s5963_s15 + $0xc0] sm:$0xff]  }
0x128d   :  { %v3060_v27 = vmul.f32 %v3852_v49, %v3048_v62  ;;  %v4435_v62 = vld [vmem:[%s5963_s15 + $0x80] sm:$0xff]  }
0x128e   :  { %v4599_v42 = vpop.eup %4598 }
0x128f   :  { %v3049_v25 = vmul.f32 %v4599_v42, %v3001_v31  ;;  %v3072_v57 = vadd.f32 %v3853_v61, %v3060_v27 }
0x1291   :  { %v3061_v3 = vmul.f32 %v3852_v49, %v3049_v25 }
0x1293   :  { %v3073_v32 = vadd.f32 %v3853_v61, %v3061_v3 }
0x1295   :  { %v3078_v7 = vpack.c.bf16 %v3073_v32, %v3072_v57 }
0x1297   :  { %3871 = vmatmul.mubr.msk.bf16.vlgmr.msra.gmra.mxu1 %vm200_vm0, %v3078_v7 }
0x1298   :  { %3194 = vmatprep.mubr.bf16.mxu1 %v4644_v0 }
0x12a1   :  { %v3020_v43 = vpop.xlane.xlu0 %3019 }
0x12a2   :  { %v3032_v24 = vmul.f32 0.015625, %v3020_v43 }
0x12a4   :  { %v3038_v11 = vadd.f32 1e-06, %v3032_v24 }
0x12a5   :  { %v3023_v63 = vpop.xlane.xlu1 %3022 }
0x12a6   :  { %4600 = vrsqrt.f32 %v3038_v11  ;;  %v3033_v14 = vmul.f32 0.015625, %v3023_v63 }
0x12a8   :  { %v3039_v31 = vadd.f32 1e-06, %v3033_v14 }
0x12a9   :  { %v3026_v50 = vpop.xlane.xlu0 %3025 }
0x12aa   :  { %4602 = vrsqrt.f32 %v3039_v31  ;;  %v3034_v17 = vmul.f32 0.015625, %v3026_v50 }
0x12ac   :  { %v3040_v38 = vadd.f32 1e-06, %v3034_v17 }
0x12ad   :  { %v3029_v19 = vpop.xlane.xlu1 %3028 }
0x12ae   :  { %4604 = vrsqrt.f32 %v3040_v38  ;;  %v3035_v28 = vmul.f32 0.015625, %v3029_v19 }
0x12b0   :  { %v3041_v47 = vadd.f32 1e-06, %v3035_v28 }
0x12b2   :  { %4606 = vrsqrt.f32 %v3041_v47 }
0x12b3   :  { %v4601_v60 = vpop.eup %4600 }
0x12b4   :  { %v3050_v29 = vmul.f32 %v4601_v60, %v3002_v9 }
0x12b6   :  { %v3062_v58 = vmul.f32 %v3852_v49, %v3050_v29 }
0x12b7   :  { %v4603_v55 = vpop.eup %4602 }
0x12b8   :  { %v3051_v18 = vmul.f32 %v4603_v55, %v3003_v10  ;;  %v3074_v33 = vadd.f32 %v3853_v61, %v3062_v58  ;;  %v4420_v10 = vld [vmem:[%s5963_s15 + $0xf8] sm:$0xff]  }
0x12b9   :  { %4046 = vmatprep.subr.bf16.mxu0 %v4420_v10 }
0x12ba   :  { %v3063_v54 = vmul.f32 %v3852_v49, %v3051_v18 }
0x12bb   :  { %v4605_v8 = vpop.eup %4604 }
0x12bc   :  { %v3075_v4 = vadd.f32 %v3853_v61, %v3063_v54  ;;  %v3052_v13 = vmul.f32 %v4605_v8, %v3004_v39  ;;  %v4421_v39 = vld [vmem:[%s5963_s15 + $0xb8] sm:$0xff]  }
0x12bd   :  { %4047 = vmatpush3.bf16.msra.mxu0 %v4421_v39 }
0x12be   :  { %v3079_v36 = vpack.c.bf16 %v3075_v4, %v3074_v33  ;;  %v3064_v23 = vmul.f32 %v3852_v49, %v3052_v13 }
0x12bf   :  { %v4607_v30 = vpop.eup %4606 }
0x12c0   :  { %3872 = vmatmul.mubr.msk.bf16.gmra.mxu1 %vm200_vm0, %v3079_v36  ;;  %v3053_v22 = vmul.f32 %v4607_v30, %v3005_v56  ;;  %v3076_v51 = vadd.f32 %v3853_v61, %v3064_v23  ;;  %v4424_v56 = vld [vmem:[%s5963_s15 + $0xe8] sm:$0xff]  }
0x12c1   :  { %3204 = vmatprep.mubr.bf16.mxu1 %v4644_v0  ;;  %v4422_v0 = vld [vmem:[%s5963_s15 + $0xf0] sm:$0xff]  }
0x12c2   :  { %v3065_v41 = vmul.f32 %v3852_v49, %v3053_v22  ;;  %4048 = vmatprep.subr.bf16.mxu0 %v4422_v0  ;;  %v3862_v49 = vld [vmem:[%s5964_s14 + $0x2] sm:$0x3] }
0x12c3   :  { %4049 = vmatpush3.bf16.msra.mxu0 %v4423_v53  ;;  %v3096_v42 = vrot.slane %v3862_v49, %v4978_v52  ;;  %v5866_v25 = vrot.slane %v3862_v49, %v4983_v44 }
0x12c4   :  { %v3077_v45 = vadd.f32 %v3853_v61, %v3065_v41  ;;  %4050 = vmatprep.subr.bf16.mxu0 %v4424_v56 }
0x12c6   :  { %v3080_v9 = vpack.c.bf16 %v3077_v45, %v3076_v51 }
0x12c7   :  { %4051 = vmatpush3.bf16.msra.mxu0 %v4425_v46 }
0x12c8   :  { %3873 = vmatmul.mubr.msk.bf16.gmra.mxu1 %vm200_vm0, %v3080_v9  ;;  %4052 = vmatprep.subr.bf16.mxu0 %v4426_v6 }
0x12c9   :  { %4263 = vmatprep.mubr.msk.bf16.mxu1 %vm4650_vm8, %v4645_v2 }
0x12cb   :  { %4053 = vmatpush3.bf16.msra.mxu0 %v4427_v59 }
0x12cc   :  { %4054 = vmatprep.subr.bf16.mxu0 %v4428_v16 }
0x12cf   :  { %4055 = vmatpush3.bf16.msra.mxu0 %v4429_v12 }
0x12d0   :  { %4056 = vmatprep.subr.bf16.mxu0 %v4430_v40 }
0x12d3   :  { %4057 = vmatpush3.bf16.msra.mxu0 %v4431_v20 }
0x12d4   :  { %4058 = vmatprep.subr.bf16.mxu0 %v4432_v35 }
0x12d7   :  { %4059 = vmatpush3.bf16.msra.mxu0 %v4433_v1 }
0x12d8   :  { %4060 = vmatprep.subr.bf16.mxu0 %v4434_v26 }
0x12db   :  { %4061 = vmatpush3.bf16.msra.mxu0 %v4435_v62 }
0x1357   :  { %v3186_v27 = vpop.f32.mrf.mxu1 }
0x1358   :  { %v3187_v61 = vadd.f32 %v3186_v27, %v3096_v42 }
0x1359   :  { %v3188_v3 = vpop.f32.mrf.mxu1 }
0x135a   :  { %v3189_v57 = vadd.f32 %v3188_v3, %v5866_v25  ;;  %v3227_v32 = vmul.f32 0.70710677, %v3187_v61  ;;  %v3215_v18 = vmul.f32 0.5, %v3187_v61 }
0x135b   :  { %v3190_v7 = vpop.f32.mrf.mxu1 }
0x135c   :  { %v3228_v43 = vmul.f32 0.70710677, %v3189_v57  ;;  %v3191_v24 = vadd.f32 %v3190_v7, %v3096_v42  ;;  %v3216_v60 = vmul.f32 0.5, %v3189_v57 }
0x135d   :  { %v3192_v11 = vpop.f32.mrf.mxu1 }
0x135e   :  { %4608 = verf.f32 %v3228_v43  ;;  %v3229_v63 = vmul.f32 0.70710677, %v3191_v24  ;;  %v3193_v14 = vadd.f32 %v3192_v11, %v5866_v25  ;;  %v3217_v47 = vmul.f32 0.5, %v3191_v24 }
0x135f   :  { %4610 = verf.f32 %v3227_v32 }
0x1360   :  { %4612 = verf.f32 %v3229_v63  ;;  %v3230_v52 = vmul.f32 0.70710677, %v3193_v14  ;;  %v3218_v29 = vmul.f32 0.5, %v3193_v14 }
0x1362   :  { %4614 = verf.f32 %v3230_v52 }
0x136b   :  { %v4609_v44 = vpop.eup %4608 }
0x136c   :  { %v4611_v31 = vpop.eup %4610  ;;  %v3252_v17 = vadd.f32 1.0, %v4609_v44 }
0x136d   :  { %v4613_v50 = vpop.eup %4612  ;;  %v3251_v28 = vadd.f32 1.0, %v4611_v31 }
0x136e   :  { %v3253_v38 = vadd.f32 1.0, %v4613_v50  ;;  %v3264_v54 = vmul.f32 %v3252_v17, %v3216_v60 }
0x136f   :  { %v4615_v19 = vpop.eup %4614  ;;  %v3263_v33 = vmul.f32 %v3251_v28, %v3215_v18 }
0x1370   :  { %v3254_v55 = vadd.f32 1.0, %v4615_v19  ;;  %v3265_v58 = vmul.f32 %v3253_v38, %v3217_v47 }
0x1372   :  { %v3266_v8 = vmul.f32 %v3254_v55, %v3218_v29  ;;  %v3275_v13 = vpack.c.bf16 %v3265_v58, %v3263_v33 }
0x1374   :  { %v3276_v4 = vpack.c.bf16 %v3266_v8, %v3264_v54 }
0x1376   :  { %3450 = vmatprep.mubr.bf16.mxu0 %v3276_v4 }
0x1377   :  { %3451 = vmatmul.mubr.bf16.vlgmr.msra.gmra.mxu0 %v3275_v13 }
0x1380   :  { %v3196_v36 = vpop.f32.mrf.mxu1 }
0x1381   :  { %v3197_v30 = vadd.f32 %v3196_v36, %v3096_v42 }
0x1382   :  { %v3198_v22 = vpop.f32.mrf.mxu1 }
0x1383   :  { %v3199_v23 = vadd.f32 %v3198_v22, %v5866_v25  ;;  %v3231_v41 = vmul.f32 0.70710677, %v3197_v30  ;;  %v3219_v63 = vmul.f32 0.5, %v3197_v30 }
0x1384   :  { %v3200_v51 = vpop.f32.mrf.mxu1 }
0x1385   :  { %v3232_v45 = vmul.f32 0.70710677, %v3199_v23  ;;  %v3201_v9 = vadd.f32 %v3200_v51, %v3096_v42  ;;  %v3220_v24 = vmul.f32 0.5, %v3199_v23 }
0x1386   :  { %v3202_v10 = vpop.f32.mrf.mxu1 }
0x1387   :  { %4616 = verf.f32 %v3232_v45  ;;  %v3233_v39 = vmul.f32 0.70710677, %v3201_v9  ;;  %v3203_v0 = vadd.f32 %v3202_v10, %v5866_v25  ;;  %v3221_v43 = vmul.f32 0.5, %v3201_v9 }
0x1388   :  { %4618 = verf.f32 %v3231_v41  ;;  %v3206_v53 = vpop.f32.mrf.mxu1  ;;  %v3907_v41 = vld [vmem:[%s5965_s16 + $0x1] ss:$0 sm:$0xff] }
0x1389   :  { %4620 = verf.f32 %v3233_v39  ;;  %v3234_v56 = vmul.f32 0.70710677, %v3203_v0  ;;  %v3207_v46 = vadd.f32 %v3206_v53, %v3096_v42  ;;  %v3222_v11 = vmul.f32 0.5, %v3203_v0 }
0x138a   :  { %v3208_v6 = vpop.f32.mrf.mxu1 }
0x138b   :  { %4622 = verf.f32 %v3234_v56  ;;  %v3209_v59 = vadd.f32 %v3208_v6, %v5866_v25  ;;  %v3235_v16 = vmul.f32 0.70710677, %v3207_v46  ;;  %v3223_v8 = vmul.f32 0.5, %v3207_v46 }
0x138c   :  { %v3210_v12 = vpop.f32.mrf.mxu1 }
0x138d   :  { %v3236_v40 = vmul.f32 0.70710677, %v3209_v59  ;;  %v3211_v20 = vadd.f32 %v3210_v12, %v3096_v42  ;;  %v3224_v18 = vmul.f32 0.5, %v3209_v59 }
0x138e   :  { %v3212_v35 = vpop.f32.mrf.mxu1 }
0x138f   :  { %4624 = verf.f32 %v3236_v40  ;;  %v3237_v1 = vmul.f32 0.70710677, %v3211_v20  ;;  %v3213_v26 = vadd.f32 %v3212_v35, %v5866_v25  ;;  %v3225_v55 = vmul.f32 0.5, %v3211_v20 }
0x1390   :  { %4626 = verf.f32 %v3235_v16 }
0x1391   :  { %4628 = verf.f32 %v3237_v1  ;;  %v3238_v62 = vmul.f32 0.70710677, %v3213_v26  ;;  %v3226_v58 = vmul.f32 0.5, %v3213_v26 }
0x1393   :  { %4630 = verf.f32 %v3238_v62 }
0x1394   :  { %v4617_v49 = vpop.eup %4616 }
0x1395   :  { %v4619_v27 = vpop.eup %4618  ;;  %v3256_v3 = vadd.f32 1.0, %v4617_v49 }
0x1396   :  { %v4621_v61 = vpop.eup %4620  ;;  %v3255_v7 = vadd.f32 1.0, %v4619_v27 }
0x1397   :  { %v3257_v57 = vadd.f32 1.0, %v4621_v61  ;;  %v3268_v52 = vmul.f32 %v3256_v3, %v3220_v24 }
0x1398   :  { %v4623_v32 = vpop.eup %4622  ;;  %v3267_v31 = vmul.f32 %v3255_v7, %v3219_v63 }
0x1399   :  { %v3258_v42 = vadd.f32 1.0, %v4623_v32  ;;  %v3269_v14 = vmul.f32 %v3257_v57, %v3221_v43 }
0x139b   :  { %v3270_v44 = vmul.f32 %v3258_v42, %v3222_v11  ;;  %v3277_v19 = vpack.c.bf16 %v3269_v14, %v3267_v31 }
0x139c   :  { %v4625_v25 = vpop.eup %4624 }
0x139d   :  { %v4627_v50 = vpop.eup %4626  ;;  %v3278_v17 = vpack.c.bf16 %v3270_v44, %v3268_v52  ;;  %v3260_v28 = vadd.f32 1.0, %v4625_v25 }
0x139e   :  { %v4629_v38 = vpop.eup %4628  ;;  %v3259_v29 = vadd.f32 1.0, %v4627_v50 }
0x139f   :  { %v3261_v47 = vadd.f32 1.0, %v4629_v38  ;;  %3458 = vmatprep.mubr.bf16.mxu0 %v3278_v17  ;;  %v3272_v4 = vmul.f32 %v3260_v28, %v3224_v18  ;;  %v4437_v28 = vld [vmem:[%s5966_s19 + $0x10] sm:$0xff]  }
0x13a0   :  { %v4631_v60 = vpop.eup %4630  ;;  %3459 = vmatmul.mubr.bf16.gmra.mxu0 %v3277_v19  ;;  %v3271_v36 = vmul.f32 %v3259_v29, %v3223_v8 }
0x13a1   :  { %v3262_v54 = vadd.f32 1.0, %v4631_v60  ;;  %v3273_v33 = vmul.f32 %v3261_v47, %v3225_v55  ;;  %v4438_v47 = vld [vmem:[%s5966_s19 + $0x8] sm:$0xff]   ;;  %v4439_v55 = vld [vmem:[%s5966_s19] sm:$0xff]  }
0x13a3   :  { %v3274_v13 = vmul.f32 %v3262_v54, %v3226_v58  ;;  %v3279_v22 = vpack.c.bf16 %v3273_v33, %v3271_v36 }
0x13a5   :  { %v3280_v30 = vpack.c.bf16 %v3274_v13, %v3272_v4 }
0x13a7   :  { %3466 = vmatprep.mubr.bf16.mxu0 %v3280_v30 }
0x13a8   :  { %3467 = vmatmul.mubr.bf16.gmra.mxu0 %v3279_v22 }
0x1437   :  { %v4062_v23 = vpop.f32.mrf.mxu0 }
0x1439   :  { %v4063_v51 = vpop.f32.mrf.mxu0 }
0x143a   :  { %v4064_v45 = vadd.f32 %v4063_v51, %v4062_v23 }
0x143b   :  { %v4065_v9 = vpop.f32.mrf.mxu0 }
0x143c   :  { %v3453_v10 = vadd.f32 %v4064_v45, %v3907_v41 }
0x143d   :  { %v4066_v39 = vpop.f32.mrf.mxu0 }
0x143e   :  { %v4067_v0 = vadd.f32 %v4066_v39, %v4065_v9  ;;  %v3475_v53 = vadd.f32 %v3453_v10, %v5734_v15 }
0x1440   :  { %v3456_v56 = vadd.f32 %v4067_v0, %v3907_v41  ;;  %v3483_v46 = vsel %vm200_vm0, %v3475_v53, 0.0 }
0x1441   :  { %3484 = vadd.xlane.f32.xlu0 %v3483_v46 }
0x1442   :  { %v3476_v6 = vadd.f32 %v3456_v56, %v5739_v34 }
0x1444   :  { %v3486_v59 = vsel %vm200_vm0, %v3476_v6, 0.0 }
0x1445   :  { %3487 = vadd.xlane.f32.xlu1 %v3486_v59 }
0x1460   :  { %v4068_v16 = vpop.f32.mrf.mxu0 }
0x1462   :  { %v4069_v12 = vpop.f32.mrf.mxu0 }
0x1463   :  { %v4070_v40 = vadd.f32 %v4069_v12, %v4068_v16 }
0x1464   :  { %v4071_v20 = vpop.f32.mrf.mxu0 }
0x1465   :  { %v3461_v35 = vadd.f32 %v4070_v40, %v3907_v41 }
0x1466   :  { %v4072_v1 = vpop.f32.mrf.mxu0 }
0x1467   :  { %v4073_v26 = vadd.f32 %v4072_v1, %v4071_v20  ;;  %v3477_v62 = vadd.f32 %v3461_v35, %v5744_v5  ;;  %v3924_v20 = vld [vmem:[%s5967_s17] ss:$0 sm:$0xff] }
0x1468   :  { %v4074_v49 = vpop.f32.mrf.mxu0 }
0x1469   :  { %v3464_v15 = vadd.f32 %v4073_v26, %v3907_v41  ;;  %v3489_v27 = vsel %vm200_vm0, %v3477_v62, 0.0 }
0x146a   :  { %v4075_v61 = vpop.f32.mrf.mxu0  ;;  %3490 = vadd.xlane.f32.xlu0 %v3489_v27 }
0x146b   :  { %v4076_v3 = vadd.f32 %v4075_v61, %v4074_v49  ;;  %v3478_v34 = vadd.f32 %v3464_v15, %v5749_v37 }
0x146c   :  { %v4077_v57 = vpop.f32.mrf.mxu0 }
0x146d   :  { %v3469_v32 = vadd.f32 %v4076_v3, %v3907_v41  ;;  %v3492_v7 = vsel %vm200_vm0, %v3478_v34, 0.0 }
0x146e   :  { %v4078_v43 = vpop.f32.mrf.mxu0  ;;  %3493 = vadd.xlane.f32.xlu1 %v3492_v7 }
0x146f   :  { %v4079_v24 = vadd.f32 %v4078_v43, %v4077_v57  ;;  %v3479_v11 = vadd.f32 %v3469_v32, %v5754_v48 }
0x1471   :  { %v3472_v42 = vadd.f32 %v4079_v24, %v3907_v41  ;;  %v3495_v5 = vsel %vm200_vm0, %v3479_v11, 0.0 }
0x1472   :  { %3496 = vadd.xlane.f32.xlu0 %v3495_v5 }
0x1473   :  { %v3480_v63 = vadd.f32 %v3472_v42, %v5759_v21  ;;  %v4436_v21 = vld [vmem:[%s5966_s19 + $0x18] sm:$0xff]  }
0x1474   :  { %4256 = vmatpush3.bf16.msra.mxu1 %v4436_v21 }
0x1475   :  { %v3498_v14 = vsel %vm200_vm0, %v3480_v63, 0.0  ;;  %4257 = vmatprep.subr.bf16.mxu1 %v4645_v2 }
0x1476   :  { %3499 = vadd.xlane.f32.xlu1 %v3498_v14 }
0x1478   :  { %4258 = vmatpush3.bf16.msra.mxu1 %v4437_v28 }
0x1479   :  { %4259 = vmatprep.subr.bf16.mxu1 %v4645_v2 }
0x147c   :  { %4260 = vmatpush3.bf16.msra.mxu1 %v4438_v47 }
0x147d   :  { %4261 = vmatprep.subr.bf16.mxu1 %v4645_v2 }
0x1480   :  { %4262 = vmatpush3.bf16.msra.mxu1 %v4439_v55 }
0x14ca   :  { %v3485_v52 = vpop.xlane.xlu0 %3484 }
0x14cb   :  { %v3501_v37 = vmul.f32 0.015625, %v3485_v52 }
0x14cd   :  { %v3507_v44 = vsub.f32 %v3475_v53, %v3501_v37 }
0x14ce   :  { %v3488_v25 = vpop.xlane.xlu1 %3487 }
0x14cf   :  { %v3502_v31 = vmul.f32 0.015625, %v3488_v25  ;;  %v3513_v50 = vmul.f32 %v3507_v44, %v3507_v44 }
0x14d1   :  { %v3508_v17 = vsub.f32 %v3476_v6, %v3502_v31  ;;  %v3519_v38 = vsel %vm200_vm0, %v3513_v50, 0.0 }
0x14d2   :  { %3520 = vadd.xlane.f32.xlu0 %v3519_v38 }
0x14d3   :  { %v3514_v48 = vmul.f32 %v3508_v17, %v3508_v17 }
0x14d5   :  { %v3522_v19 = vsel %vm200_vm0, %v3514_v48, 0.0 }
0x14d6   :  { %3523 = vadd.xlane.f32.xlu1 %v3522_v19 }
0x14f3   :  { %v3491_v60 = vpop.xlane.xlu0 %3490 }
0x14f4   :  { %v3503_v29 = vmul.f32 0.015625, %v3491_v60 }
0x14f6   :  { %v5906_v18 = vsub.f32 %v3477_v62, %v3503_v29  ;;  %v3925_v62 = vld [vmem:[%s5968_s18] ss:$0 sm:$0xff] }
0x14f7   :  { %v3494_v58 = vpop.xlane.xlu1 %3493 }
0x14f8   :  { %v3504_v54 = vmul.f32 0.015625, %v3494_v58  ;;  %v3515_v8 = vmul.f32 %v5906_v18, %v5906_v18 }
0x14fa   :  { %v3510_v33 = vsub.f32 %v3478_v34, %v3504_v54  ;;  %v3525_v4 = vsel %vm200_vm0, %v3515_v8, 0.0  ;;  %v3926_v54 = vld [vmem:[%s5969_s20] ss:$0 sm:$0xff] }
0x14fb   :  { %3526 = vadd.xlane.f32.xlu0 %v3525_v4  ;;  %v3497_v13 = vpop.xlane.xlu0 %3496 }
0x14fc   :  { %v3505_v36 = vmul.f32 0.015625, %v3497_v13  ;;  %v3516_v30 = vmul.f32 %v3510_v33, %v3510_v33 }
0x14fe   :  { %v3511_v22 = vsub.f32 %v3479_v11, %v3505_v36  ;;  %v3528_v23 = vsel %vm200_vm0, %v3516_v30, 0.0 }
0x14ff   :  { %3529 = vadd.xlane.f32.xlu1 %v3528_v23  ;;  %v3500_v41 = vpop.xlane.xlu1 %3499 }
0x1500   :  { %v3506_v51 = vmul.f32 0.015625, %v3500_v41  ;;  %v3517_v45 = vmul.f32 %v3511_v22, %v3511_v22 }
0x1502   :  { %v3512_v9 = vsub.f32 %v3480_v63, %v3506_v51  ;;  %v3531_v10 = vsel %vm200_vm0, %v3517_v45, 0.0 }
0x1503   :  { %3532 = vadd.xlane.f32.xlu0 %v3531_v10 }
0x1504   :  { %v3518_v39 = vmul.f32 %v3512_v9, %v3512_v9 }
0x1506   :  { %v3534_v0 = vsel %vm200_vm0, %v3518_v39, 0.0 }
0x1507   :  { %3535 = vadd.xlane.f32.xlu1 %v3534_v0 }
0x155b   :  { %v3521_v53 = vpop.xlane.xlu0 %3520 }
0x155c   :  { %v3537_v56 = vmul.f32 0.015625, %v3521_v53 }
0x155e   :  { %v3543_v46 = vadd.f32 1e-06, %v3537_v56 }
0x155f   :  { %v3524_v6 = vpop.xlane.xlu1 %3523 }
0x1560   :  { %4632 = vrsqrt.f32 %v3543_v46  ;;  %v3538_v59 = vmul.f32 0.015625, %v3524_v6 }
0x1562   :  { %v3544_v16 = vadd.f32 1e-06, %v3538_v59 }
0x1564   :  { %4634 = vrsqrt.f32 %v3544_v16 }
0x156d   :  { %v4633_v12 = vpop.eup %4632 }
0x156e   :  { %v3555_v40 = vmul.f32 %v4633_v12, %v3507_v44 }
0x1570   :  { %v3567_v1 = vmul.f32 %v3924_v20, %v3555_v40 }
0x1571   :  { %v4635_v35 = vpop.eup %4634 }
0x1572   :  { %v3556_v26 = vmul.f32 %v4635_v35, %v3508_v17  ;;  %v3579_v15 = vadd.f32 %v3925_v62, %v3567_v1 }
0x1574   :  { %v3568_v49 = vmul.f32 %v3924_v20, %v3556_v26 }
0x1576   :  { %v3580_v27 = vadd.f32 %v3925_v62, %v3568_v49 }
0x1578   :  { %v3585_v61 = vpack.c.bf16 %v3580_v27, %v3579_v15 }
0x157a   :  { %4264 = vmatmul.mubr.msk.bf16.vlgmr.msra.gmra.mxu1 %vm200_vm0, %v3585_v61 }
0x157b   :  { %4267 = vmatprep.mubr.msk.bf16.mxu1 %vm4650_vm8, %v4645_v2 }
0x1584   :  { %v3527_v3 = vpop.xlane.xlu0 %3526 }
0x1585   :  { %v3539_v34 = vmul.f32 0.015625, %v3527_v3 }
0x1587   :  { %v3545_v57 = vadd.f32 1e-06, %v3539_v34 }
0x1588   :  { %v3530_v32 = vpop.xlane.xlu1 %3529 }
0x1589   :  { %4636 = vrsqrt.f32 %v3545_v57  ;;  %v3540_v7 = vmul.f32 0.015625, %v3530_v32 }
0x158b   :  { %v3546_v43 = vadd.f32 1e-06, %v3540_v7 }
0x158c   :  { %v3533_v24 = vpop.xlane.xlu0 %3532 }
0x158d   :  { %4638 = vrsqrt.f32 %v3546_v43  ;;  %v3541_v11 = vmul.f32 0.015625, %v3533_v24 }
0x158f   :  { %v3547_v42 = vadd.f32 1e-06, %v3541_v11 }
0x1590   :  { %v3536_v5 = vpop.xlane.xlu1 %3535 }
0x1591   :  { %4640 = vrsqrt.f32 %v3547_v42  ;;  %v3542_v63 = vmul.f32 0.015625, %v3536_v5 }
0x1593   :  { %v3548_v14 = vadd.f32 1e-06, %v3542_v63 }
0x1595   :  { %4642 = vrsqrt.f32 %v3548_v14 }
0x1596   :  { %v4637_v52 = vpop.eup %4636 }
0x1597   :  { %v3557_v37 = vmul.f32 %v4637_v52, %v5906_v18 }
0x1599   :  { %v3569_v31 = vmul.f32 %v3924_v20, %v3557_v37 }
0x159a   :  { %v4639_v44 = vpop.eup %4638 }
0x159b   :  { %v3558_v25 = vmul.f32 %v4639_v44, %v3510_v33  ;;  %v3581_v38 = vadd.f32 %v3925_v62, %v3569_v31 }
0x159d   :  { %v3570_v50 = vmul.f32 %v3924_v20, %v3558_v25 }
0x159e   :  { %v4641_v17 = vpop.eup %4640 }
0x159f   :  { %v3582_v48 = vadd.f32 %v3925_v62, %v3570_v50  ;;  %v3559_v19 = vmul.f32 %v4641_v17, %v3511_v22 }
0x15a1   :  { %v3586_v21 = vpack.c.bf16 %v3582_v48, %v3581_v38  ;;  %v3571_v60 = vmul.f32 %v3924_v20, %v3559_v19 }
0x15a2   :  { %v4643_v28 = vpop.eup %4642 }
0x15a3   :  { %4268 = vmatmul.mubr.msk.bf16.gmra.mxu1 %vm200_vm0, %v3586_v21  ;;  %v3560_v47 = vmul.f32 %v4643_v28, %v3512_v9  ;;  %v3583_v55 = vadd.f32 %v3925_v62, %v3571_v60 }
0x15a4   :  { %4271 = vmatprep.mubr.msk.bf16.mxu1 %vm4650_vm8, %v4645_v2 }
0x15a5   :  { %v3572_v29 = vmul.f32 %v3924_v20, %v3560_v47 }
0x15a7   :  { %v3584_v18 = vadd.f32 %v3925_v62, %v3572_v29 }
0x15a9   :  { %v3587_v58 = vpack.c.bf16 %v3584_v18, %v3583_v55 }
0x15ab   :  { %4272 = vmatmul.mubr.msk.bf16.gmra.mxu1 %vm200_vm0, %v3587_v58 }
0x163a   :  { %v3670_v8 = vpop.f32.mrf.mxu1 }
0x163b   :  { %v3671_v33 = vadd.f32 %v3926_v54, %v3670_v8 }
0x163c   :  { %v4265_v4 = vpop.f32.mrf.mxu1 }
0x163d   :  { %3693 = vst [vmem:[%s5970_s21] sm:$0xff] %v3671_v33 }
0x163e   :  { %v3673_v13 = vpop.f32.mrf.mxu1 }
0x163f   :  { %v3674_v36 = vadd.f32 %v3926_v54, %v3673_v13 }
0x1640   :  { %v4266_v2 = vpop.f32.mrf.mxu1 }
0x1641   :  { %3694 = vst [vmem:[%s5970_s21 + $0x8] sm:$0xff] %v3674_v36 }
0x1663   :  { %v3678_v30 = vpop.f32.mrf.mxu1 }
0x1664   :  { %v3679_v22 = vadd.f32 %v3926_v54, %v3678_v30 }
0x1665   :  { %v4269_v23 = vpop.f32.mrf.mxu1 }
0x1666   :  { %3695 = vst [vmem:[%s5970_s21 + $0x10] sm:$0xff] %v3679_v22 }
0x1667   :  { %v3681_v41 = vpop.f32.mrf.mxu1 }
0x1668   :  { %v3682_v51 = vadd.f32 %v3926_v54, %v3681_v41 }
0x1669   :  { %v4270_v45 = vpop.f32.mrf.mxu1 }
0x166a   :  { %3696 = vst [vmem:[%s5970_s21 + $0x18] sm:$0xff] %v3682_v51 }
0x166b   :  { %v3686_v9 = vpop.f32.mrf.mxu1 }
0x166c   :  { %v3687_v10 = vadd.f32 %v3926_v54, %v3686_v9 }
0x166d   :  { %v4273_v39 = vpop.f32.mrf.mxu1 }
0x166e   :  { %3697 = vst [vmem:[%s5970_s21 + $0x20] sm:$0xff] %v3687_v10 }
0x166f   :  { %v3689_v0 = vpop.f32.mrf.mxu1 }
0x1670   :  { %v3690_v53 = vadd.f32 %v3926_v54, %v3689_v0 }
0x1671   :  { %v4274_v56 = vpop.f32.mrf.mxu1 }
0x1672   :  { %3698 = vst [vmem:[%s5970_s21 + $0x28] sm:$0xff] %v3690_v53 }

</bundles_post_ra>
